<compile_context>
chip_gen: v6e
topology: v6e:2x2x1
jax: 0.10.0
libtpu: 0.0.40
codegen_flags: <defaults>
</compile_context>

<pallas_src>
import functools

import jax
import jax.numpy as jnp
from jax import lax
from jax.experimental import pallas as pl
from jax.experimental.pallas import tpu as pltpu

EPS = 1e-5
LANE = 128


def _vmem_budget():
    """(per-step working-set budget, vmem_limit_bytes).

    Conservative default sized for v7x (64 MiB physical VMEM / TensorCore);
    raised when a 128-MiB-VMEM part (v5e / v6e) is positively identified.
    """
    kind = ""
    try:
        kind = jax.devices()[0].device_kind.lower()
    except Exception:
        pass
    if any(t in kind for t in ("v5 lite", "v5litepod", "v5e",
                               "v6 lite", "v6e", "trillium")):
        return 80 * 2**20, 100 * 2**20
    return 36 * 2**20, 56 * 2**20


def _choose_band(H, W, Cp, budget_bytes, band_rows=None):
    """Pick the row-band height TH, number of bands nb, padded height Hp."""
    if band_rows is not None:
        th = max(1, min(int(band_rows), H))
        nb = -(-H // th)
        return th, nb, nb * th

    def est(th):                                   # per-grid-step VMEM bytes
        xb = 2 * (th + 2) * (W + 2) * Cp * 4       # double-buffered input window
        yb = 2 * th * W * Cp * 4                   # double-buffered output block
        tmp = 4 * (th + 2) * (W + 2) * Cp * 4      # activation / bf16 / acc temps
        wb = 2 * 9 * Cp * Cp * 2                   # bf16 weights (2 buffers)
        return xb + yb + tmp + wb

    best = None
    for cand in range(8, 257, 8):
        if cand > H + 7 or est(cand) > budget_bytes:
            break
        nb = -(-H // cand)
        hp = nb * cand
        key = (hp, -cand)                          # least padding, then biggest band
        if best is None or key < best[0]:
            best = (key, cand, nb, hp)
    if best is None:
        cand = 8
        nb = -(-H // cand)
        best = (None, cand, nb, nb * cand)
    return best[1], best[2], best[3]


# ---------------------------------------------------------------------------
# Conv stage kernel: [optional per-channel scale/shift + PReLU + border mask]
# then 3x3 conv as 9 accumulating bf16 MXU matmuls, plus per-band BN partials.
# The halo'd input window is fetched by an in-kernel double-buffered DMA.
# ---------------------------------------------------------------------------
def _conv_bn_stats_kernel(x_hbm, scale_ref, shift_ref, alpha_ref, w_ref,
                          y_ref, stats_ref, xbuf, sem,
                          *, nb, H, Hp, W, TH, Cp, apply_norm_act):
    img = pl.program_id(0)
    band = pl.program_id(1)

    def window_copy(i, b, slot):
        row0 = pl.multiple_of(b * TH, TH)
        return pltpu.make_async_copy(
            x_hbm.at[i, pl.ds(row0, TH + 2)], xbuf.at[slot], sem.at[slot])

    # Prime the double buffer at the first band of every image.  (Band axis is
    # "arbitrary" => sequential per image; the image axis may be split across
    # TensorCores, and each core re-primes at the first band of its images.)
    @pl.when(band == 0)
    def _():
        window_copy(img, 0, 0).start()

    slot = lax.rem(band, 2)
    window_copy(img, band, slot).wait()            # this band's halo'd window

    @pl.when(band + 1 < nb)                        # prefetch next band, same image
    def _():
        window_copy(img, band + 1, 1 - slot).start()

    a = xbuf[slot]                                 # (TH+2, W+2, Cp) f32

    if apply_norm_act:
        # BN1 (folded scale/shift) + PReLU1 of the previous stage, in f32.
        a = a * scale_ref[0, :] + shift_ref[0, :]
        a = jnp.where(a > 0, a, alpha_ref[0, :] * a)
        # The conv zero-pads the *activation*: re-zero the spatial border and
        # any rows beyond the true H.  Cheap (TH+2, W+2, 1) mask, broadcast Cp.
        prow = lax.broadcasted_iota(jnp.int32, (TH + 2, W + 2, 1), 0) + band * TH
        pcol = lax.broadcasted_iota(jnp.int32, (TH + 2, W + 2, 1), 1)
        valid = (prow >= 1) & (prow <= H) & (pcol >= 1) & (pcol <= W)
        a = jnp.where(valid, a, 0.0)

    # 3x3 conv = 9 accumulating MXU matmuls (bf16 operands, f32 accumulate).
    a16 = a.astype(jnp.bfloat16)
    acc = None
    for t, (dy, dx) in enumerate([(dy, dx) for dy in range(3) for dx in range(3)]):
        patch = a16[dy:dy + TH, dx:dx + W, :].reshape(TH * W, Cp)
        part = jnp.dot(patch, w_ref[t], preferred_element_type=jnp.float32)
        acc = part if acc is None else acc + part

    y = acc.reshape(TH, W, Cp)
    if Hp != H:
        # Rows past the true image height would pollute the BN statistics;
        # zero them (they are sliced off at the very end).
        orow = lax.broadcasted_iota(jnp.int32, (TH, 1, 1), 0) + band * TH
        y = jnp.where(orow < H, y, 0.0)

    y_ref[...] = y[None]
    yf = y.reshape(TH * W, Cp)
    s = jnp.sum(yf, axis=0, keepdims=True)                  # (1, Cp)
    ss = jnp.sum(yf * yf, axis=0, keepdims=True)            # (1, Cp)
    stats_ref[...] = jnp.concatenate([s, ss], axis=0)[None, None]


# ---------------------------------------------------------------------------
# Wrapper
# ---------------------------------------------------------------------------
def resblock_pallas(x_nchw, params, *, band_rows=None):
    """Fused ResBlock forward.  x_nchw: (N, C, H, W) float32.  Returns NCHW."""
    (w1, b1, g1, be1, a1, w2, b2, g2, be2, a2) = params
    del b1, b2  # conv bias exactly cancels against training-mode BN mean subtraction
    N, Cin, H, W = x_nchw.shape
    Cout = w1.shape[0]
    # TODO(synk): in_channels != out_channels needs the bias-free 1x1-conv skip.
    assert Cin == Cout, "identity-skip configuration only (in_channels == out_channels)"

    f32 = jnp.float32
    Cp = -(-Cout // LANE) * LANE                   # lane-dense channel dim
    budget, vmem_limit = _vmem_budget()
    TH, nb, Hp = _choose_band(H, W, Cp, budget, band_rows)
    count = float(N * H * W)                       # BN population size

    # per-band valid element counts (per image) for the exact BN combine
    rows_valid = jnp.clip(H - TH * jnp.arange(nb), 0, TH).astype(f32)
    band_counts = rows_valid * W                   # (nb,)

    # ---- layout plumbing (single fused XLA pass): NCHW -> NHWC, channel pad,
    # ---- +1 halo border, +Hp-H zero tail rows --------------------------------
    x_nhwc = jnp.transpose(x_nchw, (0, 2, 3, 1)).astype(f32)        # (N,H,W,Cin)
    x_pad = jnp.pad(x_nhwc, ((0, 0), (1, Hp - H + 1), (1, 1), (0, Cp - Cin)))

    def prep_w(w_oihw):        # OIHW -> (9, Cp_in, Cp_out), bf16 (halves weight DMA)
        w = jnp.transpose(w_oihw, (2, 3, 1, 0)).astype(f32)         # (3,3,I,O)
        w = jnp.pad(w, ((0, 0), (0, 0), (0, Cp - w.shape[2]), (0, Cp - w.shape[3])))
        return w.reshape(9, Cp, Cp).astype(jnp.bfloat16)

    pad_c = lambda v: jnp.pad(v.astype(f32).reshape(-1), (0, Cp - Cout))
    row = lambda v: v.reshape(1, Cp)

    cparams = pltpu.CompilerParams(
        dimension_semantics=("parallel", "arbitrary"),
        vmem_limit_bytes=vmem_limit)

    def conv_stats(x_hbm_padded, scale, shift, alpha, w9, apply_norm_act):
        kern = functools.partial(_conv_bn_stats_kernel, nb=nb, H=H, Hp=Hp, W=W,
                                 TH=TH, Cp=Cp, apply_norm_act=apply_norm_act)
        flops = 2 * N * Hp * W * 9 * Cp * Cp
        bytes_acc = (4 * (x_hbm_padded.size + N * Hp * W * Cp + N * nb * 2 * Cp)
                     + 2 * w9.size)
        return pl.pallas_call(
            kern,
            out_shape=(jax.ShapeDtypeStruct((N, Hp, W, Cp), f32),
                       jax.ShapeDtypeStruct((N, nb, 2, Cp), f32)),
            grid=(N, nb),
            in_specs=[
                # halo'd windows are fetched by the in-kernel DMA
                pl.BlockSpec(memory_space=pl.ANY),
                pl.BlockSpec((1, Cp), lambda n, b: (0, 0)),
                pl.BlockSpec((1, Cp), lambda n, b: (0, 0)),
                pl.BlockSpec((1, Cp), lambda n, b: (0, 0)),
                # TODO(synk): pipeline_mode=pl.Buffered(1) on these grid-invariant
                # operands (weights + per-channel vectors) to drop the duplicate
                # pipeline buffer and free VMEM for a larger TH.
                pl.BlockSpec((9, Cp, Cp), lambda n, b: (0, 0, 0)),
            ],
            out_specs=(pl.BlockSpec((1, TH, W, Cp), lambda n, b: (n, b, 0, 0)),
                       pl.BlockSpec((1, 1, 2, Cp), lambda n, b: (n, b, 0, 0))),
            scratch_shapes=[pltpu.VMEM((2, TH + 2, W + 2, Cp), f32),
                            pltpu.SemaphoreType.DMA((2,))],
            compiler_params=cparams,
            cost_estimate=pl.CostEstimate(flops=flops, transcendentals=0,
                                          bytes_accessed=bytes_acc),
        )(x_hbm_padded, scale, shift, alpha, w9)

    def bn_fold(stats, gamma, beta):
        # Exact batch statistics from per-band partials via the parallel (Chan)
        # mean/M2 combine (better conditioned than global E[y^2]-E[y]^2).
        s = stats[..., 0, :]                                 # (N, nb, Cp)
        ss = stats[..., 1, :]
        cnt = band_counts[None, :, None]                     # (1, nb, 1)
        mean = jnp.sum(s, axis=(0, 1)) / count               # (Cp,)
        mean_b = s / cnt
        m2_b = ss - s * mean_b
        m2 = (jnp.sum(m2_b, axis=(0, 1))
              + jnp.sum(cnt * (mean_b - mean) ** 2, axis=(0, 1)))
        var = jnp.maximum(m2 / count, 0.0)                   # biased var (training BN)
        scale = gamma * lax.rsqrt(var + EPS)
        shift = beta - mean * scale
        return scale, shift                                  # (Cp,), (Cp,)

    ones_c, zeros_c = row(jnp.ones((Cp,), f32)), row(jnp.zeros((Cp,), f32))

    # ---- stage 1: conv1 + BN1 partial stats ----------------------------------
    y1, st1 = conv_stats(x_pad, ones_c, zeros_c, ones_c, prep_w(w1),
                         apply_norm_act=False)
    scale1, shift1 = bn_fold(st1, pad_c(g1), pad_c(be1))

    # ---- stage 2: BN1+PReLU1 folded into conv2 + BN2 partial stats -----------
    # TODO(synk): have stage 1 emit y1 directly in the halo-padded layout via a
    # manual output DMA to drop this one pad pass over the intermediate.
    y1p = jnp.pad(y1, ((0, 0), (1, 1), (1, 1), (0, 0)))
    a1v = row(jnp.full((Cp,), a1, f32))
    y2, st2 = conv_stats(y1p, row(scale1), row(shift1), a1v, prep_w(w2),
                         apply_norm_act=True)
    scale2, shift2 = bn_fold(st2, pad_c(g2), pad_c(be2))

    # ---- stage 3: BN2 + PReLU2 + identity skip + layout epilogue -------------
    # Plain jnp so XLA fuses the elementwise math with the Cout slice and the
    # NHWC -> NCHW transpose in a single HBM pass (per perf review).
    z = y2[:, :H, :, :Cout] * scale2[:Cout] + shift2[:Cout]
    z = jnp.where(z > 0, z, a2 * z)
    out_nhwc = z + x_nhwc
    return jnp.transpose(out_nhwc, (0, 3, 1, 2))             # back to NCHW


# ----------------------------- pure-JAX reference -----------------------------
def resblock_ref(x_nchw, params):
    (w1, b1, g1, be1, a1, w2, b2, g2, be2, a2) = params
    x = jnp.transpose(x_nchw, (0, 2, 3, 1)).astype(jnp.float32)     # NHWC

    def conv(x, w_oihw, b):
        w = jnp.transpose(w_oihw, (2, 3, 1, 0))                     # HWIO
        y = jax.lax.conv_general_dilated(
            x, w, window_strides=(1, 1), padding="SAME",
            dimension_numbers=("NHWC", "HWIO", "NHWC"))
        return y + b.reshape(1, 1, 1, -1)

    def bn(y, g, be):
        mu = jnp.mean(y, axis=(0, 1, 2), keepdims=True)
        var = jnp.mean((y - mu) ** 2, axis=(0, 1, 2), keepdims=True)
        return (y - mu) * jax.lax.rsqrt(var + EPS) * g.reshape(1, 1, 1, -1) \
            + be.reshape(1, 1, 1, -1)

    prelu = lambda y, a: jnp.where(y > 0, y, a * y)

    y = prelu(bn(conv(x, w1, b1), g1, be1), a1)
    y = prelu(bn(conv(y, w2, b2), g2, be2), a2)
    y = y + x                                                       # identity skip
    return jnp.transpose(y, (0, 3, 1, 2))


def init_params(key, in_ch, out_ch):
    k1, k2, k3, k4, kx = jax.random.split(key, 5)
    w1 = 0.1 * jax.random.normal(k1, (out_ch, in_ch, 3, 3), jnp.float32)
    b1 = 0.1 * jax.random.normal(k2, (out_ch,), jnp.float32)
    w2 = 0.1 * jax.random.normal(k3, (out_ch, out_ch, 3, 3), jnp.float32)
    b2 = 0.1 * jax.random.normal(k4, (out_ch,), jnp.float32)
    g1 = jnp.ones((out_ch,), jnp.float32)
    be1 = jnp.zeros((out_ch,), jnp.float32)
    g2 = jnp.ones((out_ch,), jnp.float32)
    be2 = jnp.zeros((out_ch,), jnp.float32)
    a1 = jnp.array(0.25, jnp.float32)                # PReLU default init
    a2 = jnp.array(0.25, jnp.float32)
    return (w1, b1, g1, be1, a1, w2, b2, g2, be2, a2), kx


if __name__ == "__main__":
    key = jax.random.PRNGKey(0)
    N, C, H, W = 2, 4, 16, 16                        # small test shapes
    params, kx = init_params(key, C, C)
    x = jax.random.normal(kx, (N, C, H, W), jnp.float32)

    ref = jax.block_until_ready(resblock_ref(x, params))

    # default band height, an explicit multi-band config (prefetch path), and a
    # ragged config (H % band_rows != 0) to exercise the tail-row masking path.
    for br in (None, 8, 6):
        fwd = jax.jit(functools.partial(resblock_pallas, band_rows=br))
        out = jax.block_until_ready(fwd(x, params))
        assert out.shape == (N, C, H, W)
        err = float(jnp.max(jnp.abs(out - ref)))
        # bf16 MXU operands (f32 accumulate) => looser tolerance than pure f32.
        assert jnp.allclose(out, ref, atol=5e-2, rtol=5e-2), (br, err)

    print("KERNEL_OK")
</pallas_src>

<mosaic_0001>
module attributes {stable_mosaic.version = 11 : i64} {
  func.func @_conv_bn_stats_kernel(%arg0: i32, %arg1: i32, %arg2: memref<2x18x18x128xf32, #tpu.memory_space<any>>, %arg3: memref<1x128xf32, #tpu.memory_space<vmem>>, %arg4: memref<1x128xf32, #tpu.memory_space<vmem>>, %arg5: memref<1x128xf32, #tpu.memory_space<vmem>>, %arg6: memref<9x128x128xbf16, #tpu.memory_space<vmem>>, %arg7: memref<1x16x16x128xf32, #tpu.memory_space<vmem>>, %arg8: memref<1x1x2x128xf32, #tpu.memory_space<vmem>>, %arg9: memref<2x18x18x128xf32, #tpu.memory_space<vmem>>, %arg10: memref<2x!tpu.dma_semaphore, #tpu.memory_space<semaphore_mem>>) attributes {dimension_semantics = [#tpu.dimension_semantics<parallel>, #tpu.dimension_semantics<arbitrary>], iteration_bounds = array<i64: 2, 1>, scalar_prefetch = 0 : i64, scratch_operands = 2 : i64, tpu.core_type = #tpu.core_type<tc>, window_params = [{}, {pipeline_mode = #tpu.pipeline_mode<synchronous>, transform_indices = @transform_1, window_bounds = array<i64: 1, 128>}, {pipeline_mode = #tpu.pipeline_mode<synchronous>, transform_indices = @transform_2, window_bounds = array<i64: 1, 128>}, {pipeline_mode = #tpu.pipeline_mode<synchronous>, transform_indices = @transform_3, window_bounds = array<i64: 1, 128>}, {pipeline_mode = #tpu.pipeline_mode<synchronous>, transform_indices = @transform_4, window_bounds = array<i64: 9, 128, 128>}, {transform_indices = @transform_5, window_bounds = array<i64: 1, 16, 16, 128>}, {transform_indices = @transform_6, window_bounds = array<i64: 1, 1, 2, 128>}]} {
    %c0_i32 = arith.constant 0 : i32
    %0 = arith.cmpi eq, %arg1, %c0_i32 : i32
    %1 = arith.extui %0 : i1 to i32
    %c0_i32_0 = arith.constant 0 : i32
    %2 = arith.cmpi ne, %1, %c0_i32_0 : i32
    scf.if %2 {
      %c0_i32_47 = arith.constant 0 : i32
      %85 = tpu.assume_multiple %c0_i32_47, 16 : i32
      %c0_i32_48 = arith.constant 0 : i32
      %c0_i32_49 = arith.constant 0 : i32
      %c0_i32_50 = arith.constant 0 : i32
      %c0_i32_51 = arith.constant 0 : i32
      %86 = tpu.memref_slice %arg2[%arg0, %85, %c0_i32_50, %c0_i32_51] : memref<2x18x18x128xf32, #tpu.memory_space<any>> -> memref<1x18x18x128xf32, #tpu.memory_space<any>>
      %87 = tpu.memref_squeeze %86 : memref<1x18x18x128xf32, #tpu.memory_space<any>> -> memref<18x18x128xf32, #tpu.memory_space<any>>
      %c0_i32_52 = arith.constant 0 : i32
      %c0_i32_53 = arith.constant 0 : i32
      %c0_i32_54 = arith.constant 0 : i32
      %88 = tpu.memref_slice %arg9[%c0_i32_48, %c0_i32_52, %c0_i32_53, %c0_i32_54] : memref<2x18x18x128xf32, #tpu.memory_space<vmem>> -> memref<1x18x18x128xf32, #tpu.memory_space<vmem>>
      %89 = tpu.memref_squeeze %88 : memref<1x18x18x128xf32, #tpu.memory_space<vmem>> -> memref<18x18x128xf32, #tpu.memory_space<vmem>>
      %90 = tpu.memref_slice %arg10[%c0_i32_49] : memref<2x!tpu.dma_semaphore, #tpu.memory_space<semaphore_mem>> -> memref<1x!tpu.dma_semaphore, #tpu.memory_space<semaphore_mem>>
      %91 = tpu.memref_squeeze %90 : memref<1x!tpu.dma_semaphore, #tpu.memory_space<semaphore_mem>> -> memref<!tpu.dma_semaphore, #tpu.memory_space<semaphore_mem>>
      tpu.enqueue_dma source(%87 : memref<18x18x128xf32, #tpu.memory_space<any>>) target(%89 : memref<18x18x128xf32, #tpu.memory_space<vmem>>) target_semaphore(%91 : memref<!tpu.dma_semaphore, #tpu.memory_space<semaphore_mem>>)
    } else {
    }
    %c2_i32 = arith.constant 2 : i32
    %3 = arith.remsi %arg1, %c2_i32 : i32
    %c16_i32 = arith.constant 16 : i32
    %4 = arith.muli %arg1, %c16_i32 : i32
    %5 = tpu.assume_multiple %4, 16 : i32
    %c0_i32_1 = arith.constant 0 : i32
    %c0_i32_2 = arith.constant 0 : i32
    %6 = tpu.memref_slice %arg2[%arg0, %5, %c0_i32_1, %c0_i32_2] : memref<2x18x18x128xf32, #tpu.memory_space<any>> -> memref<1x18x18x128xf32, #tpu.memory_space<any>>
    %7 = tpu.memref_squeeze %6 : memref<1x18x18x128xf32, #tpu.memory_space<any>> -> memref<18x18x128xf32, #tpu.memory_space<any>>
    %c0_i32_3 = arith.constant 0 : i32
    %c0_i32_4 = arith.constant 0 : i32
    %c0_i32_5 = arith.constant 0 : i32
    %8 = tpu.memref_slice %arg9[%3, %c0_i32_3, %c0_i32_4, %c0_i32_5] : memref<2x18x18x128xf32, #tpu.memory_space<vmem>> -> memref<1x18x18x128xf32, #tpu.memory_space<vmem>>
    %9 = tpu.memref_squeeze %8 : memref<1x18x18x128xf32, #tpu.memory_space<vmem>> -> memref<18x18x128xf32, #tpu.memory_space<vmem>>
    %10 = tpu.memref_slice %arg10[%3] : memref<2x!tpu.dma_semaphore, #tpu.memory_space<semaphore_mem>> -> memref<1x!tpu.dma_semaphore, #tpu.memory_space<semaphore_mem>>
    %11 = tpu.memref_squeeze %10 : memref<1x!tpu.dma_semaphore, #tpu.memory_space<semaphore_mem>> -> memref<!tpu.dma_semaphore, #tpu.memory_space<semaphore_mem>>
    tpu.wait_dma2 semaphore(%11 : memref<!tpu.dma_semaphore, #tpu.memory_space<semaphore_mem>>) src(%7 : memref<18x18x128xf32, #tpu.memory_space<any>>) dst(%9 : memref<18x18x128xf32, #tpu.memory_space<vmem>>)
    %c1_i32 = arith.constant 1 : i32
    %12 = arith.addi %arg1, %c1_i32 : i32
    %c1_i32_6 = arith.constant 1 : i32
    %13 = arith.cmpi slt, %12, %c1_i32_6 : i32
    %14 = arith.extui %13 : i1 to i32
    %c0_i32_7 = arith.constant 0 : i32
    %15 = arith.cmpi ne, %14, %c0_i32_7 : i32
    scf.if %15 {
      %c1_i32_47 = arith.constant 1 : i32
      %85 = arith.addi %arg1, %c1_i32_47 : i32
      %c1_i32_48 = arith.constant 1 : i32
      %86 = arith.subi %c1_i32_48, %3 : i32
      %c16_i32_49 = arith.constant 16 : i32
      %87 = arith.muli %85, %c16_i32_49 : i32
      %88 = tpu.assume_multiple %87, 16 : i32
      %c0_i32_50 = arith.constant 0 : i32
      %c0_i32_51 = arith.constant 0 : i32
      %89 = tpu.memref_slice %arg2[%arg0, %88, %c0_i32_50, %c0_i32_51] : memref<2x18x18x128xf32, #tpu.memory_space<any>> -> memref<1x18x18x128xf32, #tpu.memory_space<any>>
      %90 = tpu.memref_squeeze %89 : memref<1x18x18x128xf32, #tpu.memory_space<any>> -> memref<18x18x128xf32, #tpu.memory_space<any>>
      %c0_i32_52 = arith.constant 0 : i32
      %c0_i32_53 = arith.constant 0 : i32
      %c0_i32_54 = arith.constant 0 : i32
      %91 = tpu.memref_slice %arg9[%86, %c0_i32_52, %c0_i32_53, %c0_i32_54] : memref<2x18x18x128xf32, #tpu.memory_space<vmem>> -> memref<1x18x18x128xf32, #tpu.memory_space<vmem>>
      %92 = tpu.memref_squeeze %91 : memref<1x18x18x128xf32, #tpu.memory_space<vmem>> -> memref<18x18x128xf32, #tpu.memory_space<vmem>>
      %93 = tpu.memref_slice %arg10[%86] : memref<2x!tpu.dma_semaphore, #tpu.memory_space<semaphore_mem>> -> memref<1x!tpu.dma_semaphore, #tpu.memory_space<semaphore_mem>>
      %94 = tpu.memref_squeeze %93 : memref<1x!tpu.dma_semaphore, #tpu.memory_space<semaphore_mem>> -> memref<!tpu.dma_semaphore, #tpu.memory_space<semaphore_mem>>
      tpu.enqueue_dma source(%90 : memref<18x18x128xf32, #tpu.memory_space<any>>) target(%92 : memref<18x18x128xf32, #tpu.memory_space<vmem>>) target_semaphore(%94 : memref<!tpu.dma_semaphore, #tpu.memory_space<semaphore_mem>>)
    } else {
    }
    %16 = arith.index_cast %3 : i32 to index
    %c0 = arith.constant 0 : index
    %c0_8 = arith.constant 0 : index
    %c0_9 = arith.constant 0 : index
    %17 = vector.load %arg9[%16, %c0, %c0_8, %c0_9] : memref<2x18x18x128xf32, #tpu.memory_space<vmem>>, vector<1x18x18x128xf32>
    %18 = vector.shape_cast %17 : vector<1x18x18x128xf32> to vector<18x18x128xf32>
    %19 = arith.truncf %18 : vector<18x18x128xf32> to vector<18x18x128xbf16>
    %20 = vector.extract_strided_slice %19 {offsets = [0, 0, 0], sizes = [16, 16, 128], strides = [1, 1, 1]} : vector<18x18x128xbf16> to vector<16x16x128xbf16>
    %21 = vector.shape_cast %20 : vector<16x16x128xbf16> to vector<256x128xbf16>
    %c0_10 = arith.constant 0 : index
    %c0_11 = arith.constant 0 : index
    %c0_12 = arith.constant 0 : index
    %22 = vector.load %arg6[%c0_10, %c0_11, %c0_12] : memref<9x128x128xbf16, #tpu.memory_space<vmem>>, vector<1x128x128xbf16>
    %23 = vector.shape_cast %22 : vector<1x128x128xbf16> to vector<128x128xbf16>
    %cst = arith.constant dense<0.000000e+00> : vector<256x128xf32>
    %24 = tpu.matmul %21, %23, %cst {dimension_numbers = #tpu.dot_dimension_numbers<[1], [0], [0], [1], [0, 0, 1, 1], [], []>} : vector<256x128xbf16>, vector<128x128xbf16>, vector<256x128xf32> -> vector<256x128xf32>
    %25 = vector.extract_strided_slice %19 {offsets = [0, 1, 0], sizes = [16, 16, 128], strides = [1, 1, 1]} : vector<18x18x128xbf16> to vector<16x16x128xbf16>
    %26 = vector.shape_cast %25 : vector<16x16x128xbf16> to vector<256x128xbf16>
    %c1 = arith.constant 1 : index
    %c0_13 = arith.constant 0 : index
    %c0_14 = arith.constant 0 : index
    %27 = vector.load %arg6[%c1, %c0_13, %c0_14] : memref<9x128x128xbf16, #tpu.memory_space<vmem>>, vector<1x128x128xbf16>
    %28 = vector.shape_cast %27 : vector<1x128x128xbf16> to vector<128x128xbf16>
    %cst_15 = arith.constant dense<0.000000e+00> : vector<256x128xf32>
    %29 = tpu.matmul %26, %28, %cst_15 {dimension_numbers = #tpu.dot_dimension_numbers<[1], [0], [0], [1], [0, 0, 1, 1], [], []>} : vector<256x128xbf16>, vector<128x128xbf16>, vector<256x128xf32> -> vector<256x128xf32>
    %30 = arith.addf %24, %29 : vector<256x128xf32>
    %31 = vector.extract_strided_slice %19 {offsets = [0, 2, 0], sizes = [16, 16, 128], strides = [1, 1, 1]} : vector<18x18x128xbf16> to vector<16x16x128xbf16>
    %32 = vector.shape_cast %31 : vector<16x16x128xbf16> to vector<256x128xbf16>
    %c2 = arith.constant 2 : index
    %c0_16 = arith.constant 0 : index
    %c0_17 = arith.constant 0 : index
    %33 = vector.load %arg6[%c2, %c0_16, %c0_17] : memref<9x128x128xbf16, #tpu.memory_space<vmem>>, vector<1x128x128xbf16>
    %34 = vector.shape_cast %33 : vector<1x128x128xbf16> to vector<128x128xbf16>
    %cst_18 = arith.constant dense<0.000000e+00> : vector<256x128xf32>
    %35 = tpu.matmul %32, %34, %cst_18 {dimension_numbers = #tpu.dot_dimension_numbers<[1], [0], [0], [1], [0, 0, 1, 1], [], []>} : vector<256x128xbf16>, vector<128x128xbf16>, vector<256x128xf32> -> vector<256x128xf32>
    %36 = arith.addf %30, %35 : vector<256x128xf32>
    %37 = vector.extract_strided_slice %19 {offsets = [1, 0, 0], sizes = [16, 16, 128], strides = [1, 1, 1]} : vector<18x18x128xbf16> to vector<16x16x128xbf16>
    %38 = vector.shape_cast %37 : vector<16x16x128xbf16> to vector<256x128xbf16>
    %c3 = arith.constant 3 : index
    %c0_19 = arith.constant 0 : index
    %c0_20 = arith.constant 0 : index
    %39 = vector.load %arg6[%c3, %c0_19, %c0_20] : memref<9x128x128xbf16, #tpu.memory_space<vmem>>, vector<1x128x128xbf16>
    %40 = vector.shape_cast %39 : vector<1x128x128xbf16> to vector<128x128xbf16>
    %cst_21 = arith.constant dense<0.000000e+00> : vector<256x128xf32>
    %41 = tpu.matmul %38, %40, %cst_21 {dimension_numbers = #tpu.dot_dimension_numbers<[1], [0], [0], [1], [0, 0, 1, 1], [], []>} : vector<256x128xbf16>, vector<128x128xbf16>, vector<256x128xf32> -> vector<256x128xf32>
    %42 = arith.addf %36, %41 : vector<256x128xf32>
    %43 = vector.extract_strided_slice %19 {offsets = [1, 1, 0], sizes = [16, 16, 128], strides = [1, 1, 1]} : vector<18x18x128xbf16> to vector<16x16x128xbf16>
    %44 = vector.shape_cast %43 : vector<16x16x128xbf16> to vector<256x128xbf16>
    %c4 = arith.constant 4 : index
    %c0_22 = arith.constant 0 : index
    %c0_23 = arith.constant 0 : index
    %45 = vector.load %arg6[%c4, %c0_22, %c0_23] : memref<9x128x128xbf16, #tpu.memory_space<vmem>>, vector<1x128x128xbf16>
    %46 = vector.shape_cast %45 : vector<1x128x128xbf16> to vector<128x128xbf16>
    %cst_24 = arith.constant dense<0.000000e+00> : vector<256x128xf32>
    %47 = tpu.matmul %44, %46, %cst_24 {dimension_numbers = #tpu.dot_dimension_numbers<[1], [0], [0], [1], [0, 0, 1, 1], [], []>} : vector<256x128xbf16>, vector<128x128xbf16>, vector<256x128xf32> -> vector<256x128xf32>
    %48 = arith.addf %42, %47 : vector<256x128xf32>
    %49 = vector.extract_strided_slice %19 {offsets = [1, 2, 0], sizes = [16, 16, 128], strides = [1, 1, 1]} : vector<18x18x128xbf16> to vector<16x16x128xbf16>
    %50 = vector.shape_cast %49 : vector<16x16x128xbf16> to vector<256x128xbf16>
    %c5 = arith.constant 5 : index
    %c0_25 = arith.constant 0 : index
    %c0_26 = arith.constant 0 : index
    %51 = vector.load %arg6[%c5, %c0_25, %c0_26] : memref<9x128x128xbf16, #tpu.memory_space<vmem>>, vector<1x128x128xbf16>
    %52 = vector.shape_cast %51 : vector<1x128x128xbf16> to vector<128x128xbf16>
    %cst_27 = arith.constant dense<0.000000e+00> : vector<256x128xf32>
    %53 = tpu.matmul %50, %52, %cst_27 {dimension_numbers = #tpu.dot_dimension_numbers<[1], [0], [0], [1], [0, 0, 1, 1], [], []>} : vector<256x128xbf16>, vector<128x128xbf16>, vector<256x128xf32> -> vector<256x128xf32>
    %54 = arith.addf %48, %53 : vector<256x128xf32>
    %55 = vector.extract_strided_slice %19 {offsets = [2, 0, 0], sizes = [16, 16, 128], strides = [1, 1, 1]} : vector<18x18x128xbf16> to vector<16x16x128xbf16>
    %56 = vector.shape_cast %55 : vector<16x16x128xbf16> to vector<256x128xbf16>
    %c6 = arith.constant 6 : index
    %c0_28 = arith.constant 0 : index
    %c0_29 = arith.constant 0 : index
    %57 = vector.load %arg6[%c6, %c0_28, %c0_29] : memref<9x128x128xbf16, #tpu.memory_space<vmem>>, vector<1x128x128xbf16>
    %58 = vector.shape_cast %57 : vector<1x128x128xbf16> to vector<128x128xbf16>
    %cst_30 = arith.constant dense<0.000000e+00> : vector<256x128xf32>
    %59 = tpu.matmul %56, %58, %cst_30 {dimension_numbers = #tpu.dot_dimension_numbers<[1], [0], [0], [1], [0, 0, 1, 1], [], []>} : vector<256x128xbf16>, vector<128x128xbf16>, vector<256x128xf32> -> vector<256x128xf32>
    %60 = arith.addf %54, %59 : vector<256x128xf32>
    %61 = vector.extract_strided_slice %19 {offsets = [2, 1, 0], sizes = [16, 16, 128], strides = [1, 1, 1]} : vector<18x18x128xbf16> to vector<16x16x128xbf16>
    %62 = vector.shape_cast %61 : vector<16x16x128xbf16> to vector<256x128xbf16>
    %c7 = arith.constant 7 : index
    %c0_31 = arith.constant 0 : index
    %c0_32 = arith.constant 0 : index
    %63 = vector.load %arg6[%c7, %c0_31, %c0_32] : memref<9x128x128xbf16, #tpu.memory_space<vmem>>, vector<1x128x128xbf16>
    %64 = vector.shape_cast %63 : vector<1x128x128xbf16> to vector<128x128xbf16>
    %cst_33 = arith.constant dense<0.000000e+00> : vector<256x128xf32>
    %65 = tpu.matmul %62, %64, %cst_33 {dimension_numbers = #tpu.dot_dimension_numbers<[1], [0], [0], [1], [0, 0, 1, 1], [], []>} : vector<256x128xbf16>, vector<128x128xbf16>, vector<256x128xf32> -> vector<256x128xf32>
    %66 = arith.addf %60, %65 : vector<256x128xf32>
    %67 = vector.extract_strided_slice %19 {offsets = [2, 2, 0], sizes = [16, 16, 128], strides = [1, 1, 1]} : vector<18x18x128xbf16> to vector<16x16x128xbf16>
    %68 = vector.shape_cast %67 : vector<16x16x128xbf16> to vector<256x128xbf16>
    %c8 = arith.constant 8 : index
    %c0_34 = arith.constant 0 : index
    %c0_35 = arith.constant 0 : index
    %69 = vector.load %arg6[%c8, %c0_34, %c0_35] : memref<9x128x128xbf16, #tpu.memory_space<vmem>>, vector<1x128x128xbf16>
    %70 = vector.shape_cast %69 : vector<1x128x128xbf16> to vector<128x128xbf16>
    %cst_36 = arith.constant dense<0.000000e+00> : vector<256x128xf32>
    %71 = tpu.matmul %68, %70, %cst_36 {dimension_numbers = #tpu.dot_dimension_numbers<[1], [0], [0], [1], [0, 0, 1, 1], [], []>} : vector<256x128xbf16>, vector<128x128xbf16>, vector<256x128xf32> -> vector<256x128xf32>
    %72 = arith.addf %66, %71 : vector<256x128xf32>
    %73 = vector.shape_cast %72 : vector<256x128xf32> to vector<16x16x128xf32>
    %74 = vector.shape_cast %73 : vector<16x16x128xf32> to vector<1x16x16x128xf32>
    %c0_37 = arith.constant 0 : index
    %c0_38 = arith.constant 0 : index
    %c0_39 = arith.constant 0 : index
    %c0_40 = arith.constant 0 : index
    %75 = vector.load %arg7[%c0_37, %c0_38, %c0_39, %c0_40] : memref<1x16x16x128xf32, #tpu.memory_space<vmem>>, vector<1x16x16x128xf32>
    tpu.vector_store %arg7[%c0_37, %c0_38, %c0_39, %c0_40], %74 {strides = array<i32>} : memref<1x16x16x128xf32, #tpu.memory_space<vmem>>, vector<1x16x16x128xf32>,
    %76 = vector.shape_cast %73 : vector<16x16x128xf32> to vector<256x128xf32>
    %cst_41 = arith.constant dense<0.000000e+00> : vector<128xf32>
    %77 = vector.multi_reduction <add>, %76, %cst_41 [0] : vector<256x128xf32> to vector<128xf32>
    %78 = vector.shape_cast %77 : vector<128xf32> to vector<1x128xf32>
    %79 = arith.mulf %76, %76 : vector<256x128xf32>
    %cst_42 = arith.constant dense<0.000000e+00> : vector<128xf32>
    %80 = vector.multi_reduction <add>, %79, %cst_42 [0] : vector<256x128xf32> to vector<128xf32>
    %81 = vector.shape_cast %80 : vector<128xf32> to vector<1x128xf32>
    %82 = tpu.concatenate %78, %81 in 0 : vector<1x128xf32>, vector<1x128xf32> -> vector<2x128xf32>
    %83 = vector.shape_cast %82 : vector<2x128xf32> to vector<1x1x2x128xf32>
    %c0_43 = arith.constant 0 : index
    %c0_44 = arith.constant 0 : index
    %c0_45 = arith.constant 0 : index
    %c0_46 = arith.constant 0 : index
    %84 = vector.load %arg8[%c0_43, %c0_44, %c0_45, %c0_46] : memref<1x1x2x128xf32, #tpu.memory_space<vmem>>, vector<1x1x2x128xf32>
    tpu.vector_store %arg8[%c0_43, %c0_44, %c0_45, %c0_46], %83 {strides = array<i32>} : memref<1x1x2x128xf32, #tpu.memory_space<vmem>>, vector<1x1x2x128xf32>,
    return
  }
  func.func @transform_1(%arg0: i32, %arg1: i32) -> (i32, i32) {
    %c0_i32 = arith.constant 0 : i32
    %c0_i32_0 = arith.constant 0 : i32
    %c0_i32_1 = arith.constant 0 : i32
    return %c0_i32, %c0_i32_0 : i32, i32
  }
  func.func @transform_2(%arg0: i32, %arg1: i32) -> (i32, i32) {
    %c0_i32 = arith.constant 0 : i32
    %c0_i32_0 = arith.constant 0 : i32
    %c0_i32_1 = arith.constant 0 : i32
    return %c0_i32, %c0_i32_0 : i32, i32
  }
  func.func @transform_3(%arg0: i32, %arg1: i32) -> (i32, i32) {
    %c0_i32 = arith.constant 0 : i32
    %c0_i32_0 = arith.constant 0 : i32
    %c0_i32_1 = arith.constant 0 : i32
    return %c0_i32, %c0_i32_0 : i32, i32
  }
  func.func @transform_4(%arg0: i32, %arg1: i32) -> (i32, i32, i32) {
    %c0_i32 = arith.constant 0 : i32
    %c0_i32_0 = arith.constant 0 : i32
    %c0_i32_1 = arith.constant 0 : i32
    %c0_i32_2 = arith.constant 0 : i32
    return %c0_i32, %c0_i32_0, %c0_i32_1 : i32, i32, i32
  }
  func.func @transform_5(%arg0: i32, %arg1: i32) -> (i32, i32, i32, i32) {
    %c0_i32 = arith.constant 0 : i32
    %c0_i32_0 = arith.constant 0 : i32
    %c0_i32_1 = arith.constant 0 : i32
    return %arg0, %arg1, %c0_i32, %c0_i32_0 : i32, i32, i32, i32
  }
  func.func @transform_6(%arg0: i32, %arg1: i32) -> (i32, i32, i32, i32) {
    %c0_i32 = arith.constant 0 : i32
    %c0_i32_0 = arith.constant 0 : i32
    %c0_i32_1 = arith.constant 0 : i32
    return %arg0, %arg1, %c0_i32, %c0_i32_0 : i32, i32, i32, i32
  }
}

module attributes {stable_mosaic.version = 11 : i64} {
  func.func @_conv_bn_stats_kernel(%arg0: i32, %arg1: i32, %arg2: memref<2x18x18x128xf32, #tpu.memory_space<any>>, %arg3: memref<1x128xf32, #tpu.memory_space<vmem>>, %arg4: memref<1x128xf32, #tpu.memory_space<vmem>>, %arg5: memref<1x128xf32, #tpu.memory_space<vmem>>, %arg6: memref<9x128x128xbf16, #tpu.memory_space<vmem>>, %arg7: memref<1x16x16x128xf32, #tpu.memory_space<vmem>>, %arg8: memref<1x1x2x128xf32, #tpu.memory_space<vmem>>, %arg9: memref<2x18x18x128xf32, #tpu.memory_space<vmem>>, %arg10: memref<2x!tpu.dma_semaphore, #tpu.memory_space<semaphore_mem>>) attributes {dimension_semantics = [#tpu.dimension_semantics<parallel>, #tpu.dimension_semantics<arbitrary>], iteration_bounds = array<i64: 2, 1>, scalar_prefetch = 0 : i64, scratch_operands = 2 : i64, tpu.core_type = #tpu.core_type<tc>, window_params = [{}, {pipeline_mode = #tpu.pipeline_mode<synchronous>, transform_indices = @transform_1, window_bounds = array<i64: 1, 128>}, {pipeline_mode = #tpu.pipeline_mode<synchronous>, transform_indices = @transform_2, window_bounds = array<i64: 1, 128>}, {pipeline_mode = #tpu.pipeline_mode<synchronous>, transform_indices = @transform_3, window_bounds = array<i64: 1, 128>}, {pipeline_mode = #tpu.pipeline_mode<synchronous>, transform_indices = @transform_4, window_bounds = array<i64: 9, 128, 128>}, {transform_indices = @transform_5, window_bounds = array<i64: 1, 16, 16, 128>}, {transform_indices = @transform_6, window_bounds = array<i64: 1, 1, 2, 128>}]} {
    %c0_i32 = arith.constant 0 : i32
    %0 = arith.cmpi eq, %arg1, %c0_i32 : i32
    %1 = arith.extui %0 : i1 to i32
    %c0_i32_0 = arith.constant 0 : i32
    %2 = arith.cmpi ne, %1, %c0_i32_0 : i32
    scf.if %2 {
      %c0_i32_60 = arith.constant 0 : i32
      %123 = tpu.assume_multiple %c0_i32_60, 16 : i32
      %c0_i32_61 = arith.constant 0 : i32
      %c0_i32_62 = arith.constant 0 : i32
      %c0_i32_63 = arith.constant 0 : i32
      %c0_i32_64 = arith.constant 0 : i32
      %124 = tpu.memref_slice %arg2[%arg0, %123, %c0_i32_63, %c0_i32_64] : memref<2x18x18x128xf32, #tpu.memory_space<any>> -> memref<1x18x18x128xf32, #tpu.memory_space<any>>
      %125 = tpu.memref_squeeze %124 : memref<1x18x18x128xf32, #tpu.memory_space<any>> -> memref<18x18x128xf32, #tpu.memory_space<any>>
      %c0_i32_65 = arith.constant 0 : i32
      %c0_i32_66 = arith.constant 0 : i32
      %c0_i32_67 = arith.constant 0 : i32
      %126 = tpu.memref_slice %arg9[%c0_i32_61, %c0_i32_65, %c0_i32_66, %c0_i32_67] : memref<2x18x18x128xf32, #tpu.memory_space<vmem>> -> memref<1x18x18x128xf32, #tpu.memory_space<vmem>>
      %127 = tpu.memref_squeeze %126 : memref<1x18x18x128xf32, #tpu.memory_space<vmem>> -> memref<18x18x128xf32, #tpu.memory_space<vmem>>
      %128 = tpu.memref_slice %arg10[%c0_i32_62] : memref<2x!tpu.dma_semaphore, #tpu.memory_space<semaphore_mem>> -> memref<1x!tpu.dma_semaphore, #tpu.memory_space<semaphore_mem>>
      %129 = tpu.memref_squeeze %128 : memref<1x!tpu.dma_semaphore, #tpu.memory_space<semaphore_mem>> -> memref<!tpu.dma_semaphore, #tpu.memory_space<semaphore_mem>>
      tpu.enqueue_dma source(%125 : memref<18x18x128xf32, #tpu.memory_space<any>>) target(%127 : memref<18x18x128xf32, #tpu.memory_space<vmem>>) target_semaphore(%129 : memref<!tpu.dma_semaphore, #tpu.memory_space<semaphore_mem>>)
    } else {
    }
    %c2_i32 = arith.constant 2 : i32
    %3 = arith.remsi %arg1, %c2_i32 : i32
    %c16_i32 = arith.constant 16 : i32
    %4 = arith.muli %arg1, %c16_i32 : i32
    %5 = tpu.assume_multiple %4, 16 : i32
    %c0_i32_1 = arith.constant 0 : i32
    %c0_i32_2 = arith.constant 0 : i32
    %6 = tpu.memref_slice %arg2[%arg0, %5, %c0_i32_1, %c0_i32_2] : memref<2x18x18x128xf32, #tpu.memory_space<any>> -> memref<1x18x18x128xf32, #tpu.memory_space<any>>
    %7 = tpu.memref_squeeze %6 : memref<1x18x18x128xf32, #tpu.memory_space<any>> -> memref<18x18x128xf32, #tpu.memory_space<any>>
    %c0_i32_3 = arith.constant 0 : i32
    %c0_i32_4 = arith.constant 0 : i32
    %c0_i32_5 = arith.constant 0 : i32
    %8 = tpu.memref_slice %arg9[%3, %c0_i32_3, %c0_i32_4, %c0_i32_5] : memref<2x18x18x128xf32, #tpu.memory_space<vmem>> -> memref<1x18x18x128xf32, #tpu.memory_space<vmem>>
    %9 = tpu.memref_squeeze %8 : memref<1x18x18x128xf32, #tpu.memory_space<vmem>> -> memref<18x18x128xf32, #tpu.memory_space<vmem>>
    %10 = tpu.memref_slice %arg10[%3] : memref<2x!tpu.dma_semaphore, #tpu.memory_space<semaphore_mem>> -> memref<1x!tpu.dma_semaphore, #tpu.memory_space<semaphore_mem>>
    %11 = tpu.memref_squeeze %10 : memref<1x!tpu.dma_semaphore, #tpu.memory_space<semaphore_mem>> -> memref<!tpu.dma_semaphore, #tpu.memory_space<semaphore_mem>>
    tpu.wait_dma2 semaphore(%11 : memref<!tpu.dma_semaphore, #tpu.memory_space<semaphore_mem>>) src(%7 : memref<18x18x128xf32, #tpu.memory_space<any>>) dst(%9 : memref<18x18x128xf32, #tpu.memory_space<vmem>>)
    %c1_i32 = arith.constant 1 : i32
    %12 = arith.addi %arg1, %c1_i32 : i32
    %c1_i32_6 = arith.constant 1 : i32
    %13 = arith.cmpi slt, %12, %c1_i32_6 : i32
    %14 = arith.extui %13 : i1 to i32
    %c0_i32_7 = arith.constant 0 : i32
    %15 = arith.cmpi ne, %14, %c0_i32_7 : i32
    scf.if %15 {
      %c1_i32_60 = arith.constant 1 : i32
      %123 = arith.addi %arg1, %c1_i32_60 : i32
      %c1_i32_61 = arith.constant 1 : i32
      %124 = arith.subi %c1_i32_61, %3 : i32
      %c16_i32_62 = arith.constant 16 : i32
      %125 = arith.muli %123, %c16_i32_62 : i32
      %126 = tpu.assume_multiple %125, 16 : i32
      %c0_i32_63 = arith.constant 0 : i32
      %c0_i32_64 = arith.constant 0 : i32
      %127 = tpu.memref_slice %arg2[%arg0, %126, %c0_i32_63, %c0_i32_64] : memref<2x18x18x128xf32, #tpu.memory_space<any>> -> memref<1x18x18x128xf32, #tpu.memory_space<any>>
      %128 = tpu.memref_squeeze %127 : memref<1x18x18x128xf32, #tpu.memory_space<any>> -> memref<18x18x128xf32, #tpu.memory_space<any>>
      %c0_i32_65 = arith.constant 0 : i32
      %c0_i32_66 = arith.constant 0 : i32
      %c0_i32_67 = arith.constant 0 : i32
      %129 = tpu.memref_slice %arg9[%124, %c0_i32_65, %c0_i32_66, %c0_i32_67] : memref<2x18x18x128xf32, #tpu.memory_space<vmem>> -> memref<1x18x18x128xf32, #tpu.memory_space<vmem>>
      %130 = tpu.memref_squeeze %129 : memref<1x18x18x128xf32, #tpu.memory_space<vmem>> -> memref<18x18x128xf32, #tpu.memory_space<vmem>>
      %131 = tpu.memref_slice %arg10[%124] : memref<2x!tpu.dma_semaphore, #tpu.memory_space<semaphore_mem>> -> memref<1x!tpu.dma_semaphore, #tpu.memory_space<semaphore_mem>>
      %132 = tpu.memref_squeeze %131 : memref<1x!tpu.dma_semaphore, #tpu.memory_space<semaphore_mem>> -> memref<!tpu.dma_semaphore, #tpu.memory_space<semaphore_mem>>
      tpu.enqueue_dma source(%128 : memref<18x18x128xf32, #tpu.memory_space<any>>) target(%130 : memref<18x18x128xf32, #tpu.memory_space<vmem>>) target_semaphore(%132 : memref<!tpu.dma_semaphore, #tpu.memory_space<semaphore_mem>>)
    } else {
    }
    %16 = arith.index_cast %3 : i32 to index
    %c0 = arith.constant 0 : index
    %c0_8 = arith.constant 0 : index
    %c0_9 = arith.constant 0 : index
    %17 = vector.load %arg9[%16, %c0, %c0_8, %c0_9] : memref<2x18x18x128xf32, #tpu.memory_space<vmem>>, vector<1x18x18x128xf32>
    %18 = vector.shape_cast %17 : vector<1x18x18x128xf32> to vector<18x18x128xf32>
    %c0_10 = arith.constant 0 : index
    %c0_11 = arith.constant 0 : index
    %19 = vector.load %arg3[%c0_10, %c0_11] : memref<1x128xf32, #tpu.memory_space<vmem>>, vector<1x128xf32>
    %20 = vector.shape_cast %19 : vector<1x128xf32> to vector<128xf32>
    %21 = vector.shape_cast %20 : vector<128xf32> to vector<1x1x128xf32>
    %22 = vector.broadcast %21 : vector<1x1x128xf32> to vector<18x18x128xf32>
    %23 = arith.mulf %18, %22 : vector<18x18x128xf32>
    %c0_12 = arith.constant 0 : index
    %c0_13 = arith.constant 0 : index
    %24 = vector.load %arg4[%c0_12, %c0_13] : memref<1x128xf32, #tpu.memory_space<vmem>>, vector<1x128xf32>
    %25 = vector.shape_cast %24 : vector<1x128xf32> to vector<128xf32>
    %26 = vector.shape_cast %25 : vector<128xf32> to vector<1x1x128xf32>
    %27 = vector.broadcast %26 : vector<1x1x128xf32> to vector<18x18x128xf32>
    %28 = arith.addf %23, %27 : vector<18x18x128xf32>
    %cst = arith.constant 0.000000e+00 : f32
    %29 = vector.broadcast %cst : f32 to vector<18x18x128xf32>
    %30 = arith.cmpf ogt, %28, %29 : vector<18x18x128xf32>
    %c0_14 = arith.constant 0 : index
    %c0_15 = arith.constant 0 : index
    %31 = vector.load %arg5[%c0_14, %c0_15] : memref<1x128xf32, #tpu.memory_space<vmem>>, vector<1x128xf32>
    %32 = vector.shape_cast %31 : vector<1x128xf32> to vector<128xf32>
    %33 = vector.shape_cast %32 : vector<128xf32> to vector<1x1x128xf32>
    %34 = vector.broadcast %33 : vector<1x1x128xf32> to vector<18x18x128xf32>
    %35 = arith.mulf %34, %28 : vector<18x18x128xf32>
    %36 = arith.select %30, %28, %35 : vector<18x18x128xi1>, vector<18x18x128xf32>
    %37 = tpu.iota {dimensions = array<i32: 0>} : vector<18x18x1xi32>
    %c16_i32_16 = arith.constant 16 : i32
    %38 = arith.muli %arg1, %c16_i32_16 : i32
    %39 = vector.broadcast %38 : i32 to vector<18x18x1xi32>
    %40 = arith.addi %37, %39 : vector<18x18x1xi32>
    %41 = tpu.iota {dimensions = array<i32: 1>} : vector<18x18x1xi32>
    %c1_i32_17 = arith.constant 1 : i32
    %42 = vector.broadcast %c1_i32_17 : i32 to vector<18x18x1xi32>
    %43 = arith.cmpi sge, %40, %42 : vector<18x18x1xi32>
    %c16_i32_18 = arith.constant 16 : i32
    %44 = vector.broadcast %c16_i32_18 : i32 to vector<18x18x1xi32>
    %45 = arith.cmpi sle, %40, %44 : vector<18x18x1xi32>
    %46 = arith.andi %43, %45 : vector<18x18x1xi1>
    %c1_i32_19 = arith.constant 1 : i32
    %47 = vector.broadcast %c1_i32_19 : i32 to vector<18x18x1xi32>
    %48 = arith.cmpi sge, %41, %47 : vector<18x18x1xi32>
    %49 = arith.andi %46, %48 : vector<18x18x1xi1>
    %c16_i32_20 = arith.constant 16 : i32
    %50 = vector.broadcast %c16_i32_20 : i32 to vector<18x18x1xi32>
    %51 = arith.cmpi sle, %41, %50 : vector<18x18x1xi32>
    %52 = arith.andi %49, %51 : vector<18x18x1xi1>
    %cst_21 = arith.constant 0.000000e+00 : f32
    %53 = vector.shape_cast %52 : vector<18x18x1xi1> to vector<18x18x1xi1>
    %54 = vector.broadcast %53 : vector<18x18x1xi1> to vector<18x18x128xi1>
    %55 = vector.broadcast %cst_21 : f32 to vector<18x18x128xf32>
    %56 = arith.select %54, %36, %55 : vector<18x18x128xi1>, vector<18x18x128xf32>
    %57 = arith.truncf %56 : vector<18x18x128xf32> to vector<18x18x128xbf16>
    %58 = vector.extract_strided_slice %57 {offsets = [0, 0, 0], sizes = [16, 16, 128], strides = [1, 1, 1]} : vector<18x18x128xbf16> to vector<16x16x128xbf16>
    %59 = vector.shape_cast %58 : vector<16x16x128xbf16> to vector<256x128xbf16>
    %c0_22 = arith.constant 0 : index
    %c0_23 = arith.constant 0 : index
    %c0_24 = arith.constant 0 : index
    %60 = vector.load %arg6[%c0_22, %c0_23, %c0_24] : memref<9x128x128xbf16, #tpu.memory_space<vmem>>, vector<1x128x128xbf16>
    %61 = vector.shape_cast %60 : vector<1x128x128xbf16> to vector<128x128xbf16>
    %cst_25 = arith.constant dense<0.000000e+00> : vector<256x128xf32>
    %62 = tpu.matmul %59, %61, %cst_25 {dimension_numbers = #tpu.dot_dimension_numbers<[1], [0], [0], [1], [0, 0, 1, 1], [], []>} : vector<256x128xbf16>, vector<128x128xbf16>, vector<256x128xf32> -> vector<256x128xf32>
    %63 = vector.extract_strided_slice %57 {offsets = [0, 1, 0], sizes = [16, 16, 128], strides = [1, 1, 1]} : vector<18x18x128xbf16> to vector<16x16x128xbf16>
    %64 = vector.shape_cast %63 : vector<16x16x128xbf16> to vector<256x128xbf16>
    %c1 = arith.constant 1 : index
    %c0_26 = arith.constant 0 : index
    %c0_27 = arith.constant 0 : index
    %65 = vector.load %arg6[%c1, %c0_26, %c0_27] : memref<9x128x128xbf16, #tpu.memory_space<vmem>>, vector<1x128x128xbf16>
    %66 = vector.shape_cast %65 : vector<1x128x128xbf16> to vector<128x128xbf16>
    %cst_28 = arith.constant dense<0.000000e+00> : vector<256x128xf32>
    %67 = tpu.matmul %64, %66, %cst_28 {dimension_numbers = #tpu.dot_dimension_numbers<[1], [0], [0], [1], [0, 0, 1, 1], [], []>} : vector<256x128xbf16>, vector<128x128xbf16>, vector<256x128xf32> -> vector<256x128xf32>
    %68 = arith.addf %62, %67 : vector<256x128xf32>
    %69 = vector.extract_strided_slice %57 {offsets = [0, 2, 0], sizes = [16, 16, 128], strides = [1, 1, 1]} : vector<18x18x128xbf16> to vector<16x16x128xbf16>
    %70 = vector.shape_cast %69 : vector<16x16x128xbf16> to vector<256x128xbf16>
    %c2 = arith.constant 2 : index
    %c0_29 = arith.constant 0 : index
    %c0_30 = arith.constant 0 : index
    %71 = vector.load %arg6[%c2, %c0_29, %c0_30] : memref<9x128x128xbf16, #tpu.memory_space<vmem>>, vector<1x128x128xbf16>
    %72 = vector.shape_cast %71 : vector<1x128x128xbf16> to vector<128x128xbf16>
    %cst_31 = arith.constant dense<0.000000e+00> : vector<256x128xf32>
    %73 = tpu.matmul %70, %72, %cst_31 {dimension_numbers = #tpu.dot_dimension_numbers<[1], [0], [0], [1], [0, 0, 1, 1], [], []>} : vector<256x128xbf16>, vector<128x128xbf16>, vector<256x128xf32> -> vector<256x128xf32>
    %74 = arith.addf %68, %73 : vector<256x128xf32>
    %75 = vector.extract_strided_slice %57 {offsets = [1, 0, 0], sizes = [16, 16, 128], strides = [1, 1, 1]} : vector<18x18x128xbf16> to vector<16x16x128xbf16>
    %76 = vector.shape_cast %75 : vector<16x16x128xbf16> to vector<256x128xbf16>
    %c3 = arith.constant 3 : index
    %c0_32 = arith.constant 0 : index
    %c0_33 = arith.constant 0 : index
    %77 = vector.load %arg6[%c3, %c0_32, %c0_33] : memref<9x128x128xbf16, #tpu.memory_space<vmem>>, vector<1x128x128xbf16>
    %78 = vector.shape_cast %77 : vector<1x128x128xbf16> to vector<128x128xbf16>
    %cst_34 = arith.constant dense<0.000000e+00> : vector<256x128xf32>
    %79 = tpu.matmul %76, %78, %cst_34 {dimension_numbers = #tpu.dot_dimension_numbers<[1], [0], [0], [1], [0, 0, 1, 1], [], []>} : vector<256x128xbf16>, vector<128x128xbf16>, vector<256x128xf32> -> vector<256x128xf32>
    %80 = arith.addf %74, %79 : vector<256x128xf32>
    %81 = vector.extract_strided_slice %57 {offsets = [1, 1, 0], sizes = [16, 16, 128], strides = [1, 1, 1]} : vector<18x18x128xbf16> to vector<16x16x128xbf16>
    %82 = vector.shape_cast %81 : vector<16x16x128xbf16> to vector<256x128xbf16>
    %c4 = arith.constant 4 : index
    %c0_35 = arith.constant 0 : index
    %c0_36 = arith.constant 0 : index
    %83 = vector.load %arg6[%c4, %c0_35, %c0_36] : memref<9x128x128xbf16, #tpu.memory_space<vmem>>, vector<1x128x128xbf16>
    %84 = vector.shape_cast %83 : vector<1x128x128xbf16> to vector<128x128xbf16>
    %cst_37 = arith.constant dense<0.000000e+00> : vector<256x128xf32>
    %85 = tpu.matmul %82, %84, %cst_37 {dimension_numbers = #tpu.dot_dimension_numbers<[1], [0], [0], [1], [0, 0, 1, 1], [], []>} : vector<256x128xbf16>, vector<128x128xbf16>, vector<256x128xf32> -> vector<256x128xf32>
    %86 = arith.addf %80, %85 : vector<256x128xf32>
    %87 = vector.extract_strided_slice %57 {offsets = [1, 2, 0], sizes = [16, 16, 128], strides = [1, 1, 1]} : vector<18x18x128xbf16> to vector<16x16x128xbf16>
    %88 = vector.shape_cast %87 : vector<16x16x128xbf16> to vector<256x128xbf16>
    %c5 = arith.constant 5 : index
    %c0_38 = arith.constant 0 : index
    %c0_39 = arith.constant 0 : index
    %89 = vector.load %arg6[%c5, %c0_38, %c0_39] : memref<9x128x128xbf16, #tpu.memory_space<vmem>>, vector<1x128x128xbf16>
    %90 = vector.shape_cast %89 : vector<1x128x128xbf16> to vector<128x128xbf16>
    %cst_40 = arith.constant dense<0.000000e+00> : vector<256x128xf32>
    %91 = tpu.matmul %88, %90, %cst_40 {dimension_numbers = #tpu.dot_dimension_numbers<[1], [0], [0], [1], [0, 0, 1, 1], [], []>} : vector<256x128xbf16>, vector<128x128xbf16>, vector<256x128xf32> -> vector<256x128xf32>
    %92 = arith.addf %86, %91 : vector<256x128xf32>
    %93 = vector.extract_strided_slice %57 {offsets = [2, 0, 0], sizes = [16, 16, 128], strides = [1, 1, 1]} : vector<18x18x128xbf16> to vector<16x16x128xbf16>
    %94 = vector.shape_cast %93 : vector<16x16x128xbf16> to vector<256x128xbf16>
    %c6 = arith.constant 6 : index
    %c0_41 = arith.constant 0 : index
    %c0_42 = arith.constant 0 : index
    %95 = vector.load %arg6[%c6, %c0_41, %c0_42] : memref<9x128x128xbf16, #tpu.memory_space<vmem>>, vector<1x128x128xbf16>
    %96 = vector.shape_cast %95 : vector<1x128x128xbf16> to vector<128x128xbf16>
    %cst_43 = arith.constant dense<0.000000e+00> : vector<256x128xf32>
    %97 = tpu.matmul %94, %96, %cst_43 {dimension_numbers = #tpu.dot_dimension_numbers<[1], [0], [0], [1], [0, 0, 1, 1], [], []>} : vector<256x128xbf16>, vector<128x128xbf16>, vector<256x128xf32> -> vector<256x128xf32>
    %98 = arith.addf %92, %97 : vector<256x128xf32>
    %99 = vector.extract_strided_slice %57 {offsets = [2, 1, 0], sizes = [16, 16, 128], strides = [1, 1, 1]} : vector<18x18x128xbf16> to vector<16x16x128xbf16>
    %100 = vector.shape_cast %99 : vector<16x16x128xbf16> to vector<256x128xbf16>
    %c7 = arith.constant 7 : index
    %c0_44 = arith.constant 0 : index
    %c0_45 = arith.constant 0 : index
    %101 = vector.load %arg6[%c7, %c0_44, %c0_45] : memref<9x128x128xbf16, #tpu.memory_space<vmem>>, vector<1x128x128xbf16>
    %102 = vector.shape_cast %101 : vector<1x128x128xbf16> to vector<128x128xbf16>
    %cst_46 = arith.constant dense<0.000000e+00> : vector<256x128xf32>
    %103 = tpu.matmul %100, %102, %cst_46 {dimension_numbers = #tpu.dot_dimension_numbers<[1], [0], [0], [1], [0, 0, 1, 1], [], []>} : vector<256x128xbf16>, vector<128x128xbf16>, vector<256x128xf32> -> vector<256x128xf32>
    %104 = arith.addf %98, %103 : vector<256x128xf32>
    %105 = vector.extract_strided_slice %57 {offsets = [2, 2, 0], sizes = [16, 16, 128], strides = [1, 1, 1]} : vector<18x18x128xbf16> to vector<16x16x128xbf16>
    %106 = vector.shape_cast %105 : vector<16x16x128xbf16> to vector<256x128xbf16>
    %c8 = arith.constant 8 : index
    %c0_47 = arith.constant 0 : index
    %c0_48 = arith.constant 0 : index
    %107 = vector.load %arg6[%c8, %c0_47, %c0_48] : memref<9x128x128xbf16, #tpu.memory_space<vmem>>, vector<1x128x128xbf16>
    %108 = vector.shape_cast %107 : vector<1x128x128xbf16> to vector<128x128xbf16>
    %cst_49 = arith.constant dense<0.000000e+00> : vector<256x128xf32>
    %109 = tpu.matmul %106, %108, %cst_49 {dimension_numbers = #tpu.dot_dimension_numbers<[1], [0], [0], [1], [0, 0, 1, 1], [], []>} : vector<256x128xbf16>, vector<128x128xbf16>, vector<256x128xf32> -> vector<256x128xf32>
    %110 = arith.addf %104, %109 : vector<256x128xf32>
    %111 = vector.shape_cast %110 : vector<256x128xf32> to vector<16x16x128xf32>
    %112 = vector.shape_cast %111 : vector<16x16x128xf32> to vector<1x16x16x128xf32>
    %c0_50 = arith.constant 0 : index
    %c0_51 = arith.constant 0 : index
    %c0_52 = arith.constant 0 : index
    %c0_53 = arith.constant 0 : index
    %113 = vector.load %arg7[%c0_50, %c0_51, %c0_52, %c0_53] : memref<1x16x16x128xf32, #tpu.memory_space<vmem>>, vector<1x16x16x128xf32>
    tpu.vector_store %arg7[%c0_50, %c0_51, %c0_52, %c0_53], %112 {strides = array<i32>} : memref<1x16x16x128xf32, #tpu.memory_space<vmem>>, vector<1x16x16x128xf32>,
    %114 = vector.shape_cast %111 : vector<16x16x128xf32> to vector<256x128xf32>
    %cst_54 = arith.constant dense<0.000000e+00> : vector<128xf32>
    %115 = vector.multi_reduction <add>, %114, %cst_54 [0] : vector<256x128xf32> to vector<128xf32>
    %116 = vector.shape_cast %115 : vector<128xf32> to vector<1x128xf32>
    %117 = arith.mulf %114, %114 : vector<256x128xf32>
    %cst_55 = arith.constant dense<0.000000e+00> : vector<128xf32>
    %118 = vector.multi_reduction <add>, %117, %cst_55 [0] : vector<256x128xf32> to vector<128xf32>
    %119 = vector.shape_cast %118 : vector<128xf32> to vector<1x128xf32>
    %120 = tpu.concatenate %116, %119 in 0 : vector<1x128xf32>, vector<1x128xf32> -> vector<2x128xf32>
    %121 = vector.shape_cast %120 : vector<2x128xf32> to vector<1x1x2x128xf32>
    %c0_56 = arith.constant 0 : index
    %c0_57 = arith.constant 0 : index
    %c0_58 = arith.constant 0 : index
    %c0_59 = arith.constant 0 : index
    %122 = vector.load %arg8[%c0_56, %c0_57, %c0_58, %c0_59] : memref<1x1x2x128xf32, #tpu.memory_space<vmem>>, vector<1x1x2x128xf32>
    tpu.vector_store %arg8[%c0_56, %c0_57, %c0_58, %c0_59], %121 {strides = array<i32>} : memref<1x1x2x128xf32, #tpu.memory_space<vmem>>, vector<1x1x2x128xf32>,
    return
  }
  func.func @transform_1(%arg0: i32, %arg1: i32) -> (i32, i32) {
    %c0_i32 = arith.constant 0 : i32
    %c0_i32_0 = arith.constant 0 : i32
    %c0_i32_1 = arith.constant 0 : i32
    return %c0_i32, %c0_i32_0 : i32, i32
  }
  func.func @transform_2(%arg0: i32, %arg1: i32) -> (i32, i32) {
    %c0_i32 = arith.constant 0 : i32
    %c0_i32_0 = arith.constant 0 : i32
    %c0_i32_1 = arith.constant 0 : i32
    return %c0_i32, %c0_i32_0 : i32, i32
  }
  func.func @transform_3(%arg0: i32, %arg1: i32) -> (i32, i32) {
    %c0_i32 = arith.constant 0 : i32
    %c0_i32_0 = arith.constant 0 : i32
    %c0_i32_1 = arith.constant 0 : i32
    return %c0_i32, %c0_i32_0 : i32, i32
  }
  func.func @transform_4(%arg0: i32, %arg1: i32) -> (i32, i32, i32) {
    %c0_i32 = arith.constant 0 : i32
    %c0_i32_0 = arith.constant 0 : i32
    %c0_i32_1 = arith.constant 0 : i32
    %c0_i32_2 = arith.constant 0 : i32
    return %c0_i32, %c0_i32_0, %c0_i32_1 : i32, i32, i32
  }
  func.func @transform_5(%arg0: i32, %arg1: i32) -> (i32, i32, i32, i32) {
    %c0_i32 = arith.constant 0 : i32
    %c0_i32_0 = arith.constant 0 : i32
    %c0_i32_1 = arith.constant 0 : i32
    return %arg0, %arg1, %c0_i32, %c0_i32_0 : i32, i32, i32, i32
  }
  func.func @transform_6(%arg0: i32, %arg1: i32) -> (i32, i32, i32, i32) {
    %c0_i32 = arith.constant 0 : i32
    %c0_i32_0 = arith.constant 0 : i32
    %c0_i32_1 = arith.constant 0 : i32
    return %arg0, %arg1, %c0_i32, %c0_i32_0 : i32, i32, i32, i32
  }
}

</mosaic_0001>

<bundles_post_ra>
// kernel: resblock_pallas.2
= control target key start
LH: loop header
LB: loop body
LE: loop exit
PB: predicated region body
PF: predicated region fallthrough
CT: control target
= control target key end

     0   :  { %s4875_s21 = smov 0   ;;  %s4877_s22 = smov 0   ;;  %s6083_s0 = inlined_call_operand.vmem [shape: f32[2,18,18,128], index: 0, kind: input, shape index: {}]   ;;  %s6084_s1 = inlined_call_operand.vmem [shape: f32[1,128], index: 1, kind: input, shape index: {}, may-alias: {1,3}]   ;;  %s6085_s2 = inlined_call_operand.vmem [shape: f32[1,128], index: 2, kind: input, shape index: {}]   ;;  %s6086_s3 = inlined_call_operand.vmem [shape: f32[1,128], index: 3, kind: input, shape index: {}, may-alias: {1,3}]   ;;  %s6087_s4 = inlined_call_operand.vmem [shape: bf16[9,128,128], index: 4, kind: input, shape index: {}]   ;;  %s6088_s5 = inlined_call_operand.vmem [shape: f32[2,16,16,128], index: 5, kind: output, shape index: {0}]   ;;  %s6089_s6 = inlined_call_operand.vmem [shape: f32[2,1,2,128], index: 6, kind: output, shape index: {1}]  }
   0x1   :  { %s4879_s1 = smov 0  }
   0x2 LB: > { %s29_s2 = sadd.s32 1, %s4834_s22  ;;  %p3681_p0 = scmp.ge.s32.totalorder %s4838_s1, 1  ;;  %s4838_s1 = sphi %s4879_s1, %s17_s1   ;;  %s4834_s22 = sphi %s4877_s22, %s6205_s22   ;;  %s4830_s21 = sphi %s4875_s21, %s6204_s21  }
   0x3   : > { %p31_p1 = scmp.ge.s32.totalorder %s29_s2, 2  ;;  %p197_p2 = scmp.lt.s32.totalorder %s4838_s1, 3 }
   0x5   : > { %s6207_s2 = smov (%p31_p1, %s29_s2), 0  ;;  %p198_p3 = pnand %p3681_p0, %p197_p2 }
   0x7   : > { %201 = sbr.rel (%p198_p3) target bundleno = 587 (0x24b), region = 36 }
   0xc   : > { %p233_p4 = scmp.lt.s32.totalorder %s4830_s21, 1  ;;  %s256_s3 = smul.u32 432, %s4830_s21 }
   0xe   : > { %s6209_s21 = smov (!%p233_p4, %s4830_s21), 1  ;;  %s4896_s25 = scalar_lea.vmem %s6083_s0, %s256_s3 }
   0xf   : > { %s4053_s26 = sshll.u32 %s6209_s21, 8  ;;  %s3684_s27 = sshll.u32 %s6209_s21, 1  ;;  %v331_v0 = vld [vmem:[%s4896_s25] sm:$0xff]  ;;  %v333_v1 = vld [vmem:[%s4896_s25 + $0x8] sm:$0xff]  ;;  %v335_v2 = vld [vmem:[%s4896_s25 + $0x18] sm:$0xff] }
  0x10   : > { %s4904_s30 = scalar_lea.vmem %s6088_s5, %s4053_s26  ;;  %s4909_s9 = scalar_lea.vmem %s6089_s6, %s3684_s27  ;;  %332 = vst [vmem:[#allocation2 + $0x108] sm:$0xff] %v331_v0  ;;  %334 = vst [vmem:[#allocation2 + $0x138] sm:$0xff] %v333_v1  ;;  %v337_v3 = vld [vmem:[%s4896_s25 + $0x20] sm:$0xff]  ;;  %v339_v4 = vld [vmem:[%s4896_s25 + $0x30] sm:$0xff] }
  0x11   : > { %336 = vst [vmem:[#allocation2 + $0x18] sm:$0xff] %v335_v2  ;;  %v341_v5 = vld [vmem:[%s4896_s25 + $0x38] sm:$0xff]  ;;  %338 = vst [vmem:[#allocation2 + $0x68] sm:$0xff] %v337_v3  ;;  %v343_v6 = vld [vmem:[%s4896_s25 + $0x48] sm:$0xff] }
  0x12   : > { %340 = vst [vmem:[#allocation2 + $0xd0] sm:$0xff] %v339_v4  ;;  %342 = vst [vmem:[#allocation2 + $0x28] sm:$0xff] %v341_v5  ;;  %v345_v7 = vld [vmem:[%s4896_s25 + $0x50] sm:$0xff]  ;;  %v347_v8 = vld [vmem:[%s4896_s25 + $0x60] sm:$0xff] }
  0x13   : > { %344 = vst [vmem:[#allocation2 + $0x60] sm:$0xff] %v343_v6  ;;  %346 = vst [vmem:[#allocation2 + $0x118] sm:$0xff] %v345_v7  ;;  %v349_v9 = vld [vmem:[%s4896_s25 + $0x68] sm:$0xff]  ;;  %v351_v10 = vld [vmem:[%s4896_s25 + $0x78] sm:$0xff] }
  0x14   : > { %348 = vst [vmem:[#allocation2 + $0x188] sm:$0xff] %v347_v8  ;;  %v353_v11 = vld [vmem:[%s4896_s25 + $0x80] sm:$0xff]  ;;  %350 = vst [vmem:[#allocation2 + $0x198] sm:$0xff] %v349_v9  ;;  %v355_v12 = vld [vmem:[%s4896_s25 + $0x90] sm:$0xff] }
  0x15   : > { %352 = vst [vmem:[#allocation2 + $0xd8] sm:$0xff] %v351_v10  ;;  %354 = vst [vmem:[#allocation2 + $0x1a0] sm:$0xff] %v353_v11  ;;  %v357_v13 = vld [vmem:[%s4896_s25 + $0x98] sm:$0xff]  ;;  %v359_v14 = vld [vmem:[%s4896_s25 + $0xa8] sm:$0xff] }
  0x16   : > { %356 = vst [vmem:[#allocation2 + $0x88] sm:$0xff] %v355_v12  ;;  %358 = vst [vmem:[#allocation2 + $0x180] sm:$0xff] %v357_v13  ;;  %v361_v15 = vld [vmem:[%s4896_s25 + $0xb0] sm:$0xff]  ;;  %v363_v16 = vld [vmem:[%s4896_s25 + $0xc0] sm:$0xff] }
  0x17   : > { %360 = vst [vmem:[#allocation2 + $0x80] sm:$0xff] %v359_v14  ;;  %v365_v17 = vld [vmem:[%s4896_s25 + $0xc8] sm:$0xff]  ;;  %362 = vst [vmem:[#allocation2 + $0x140] sm:$0xff] %v361_v15  ;;  %v367_v18 = vld [vmem:[%s4896_s25 + $0xd8] sm:$0xff] }
  0x18   : > { %364 = vst [vmem:[#allocation2 + $0x130] sm:$0xff] %v363_v16  ;;  %366 = vst [vmem:[#allocation2 + $0x40] sm:$0xff] %v365_v17  ;;  %v369_v19 = vld [vmem:[%s4896_s25 + $0xe0] sm:$0xff]  ;;  %v371_v20 = vld [vmem:[%s4896_s25 + $0xf0] sm:$0xff] }
  0x19   : > { %368 = vst [vmem:[#allocation2 + $0x58] sm:$0xff] %v367_v18  ;;  %370 = vst [vmem:[#allocation2 + $0xb0] sm:$0xff] %v369_v19  ;;  %v373_v21 = vld [vmem:[%s4896_s25 + $0xf8] sm:$0xff]  ;;  %v375_v22 = vld [vmem:[%s4896_s25 + $0x108] sm:$0xff] }
  0x1a   : > { %372 = vst [vmem:[#allocation2 + $0x190] sm:$0xff] %v371_v20  ;;  %v377_v23 = vld [vmem:[%s4896_s25 + $0x110] sm:$0xff]  ;;  %374 = vst [vmem:[#allocation2 + $0xb8] sm:$0xff] %v373_v21  ;;  %v379_v24 = vld [vmem:[%s4896_s25 + $0x120] sm:$0xff] }
  0x1b   : > { %376 = vst [vmem:[#allocation2 + $0xe0] sm:$0xff] %v375_v22  ;;  %378 = vst [vmem:[#allocation2 + $0x158] sm:$0xff] %v377_v23  ;;  %v381_v25 = vld [vmem:[%s4896_s25 + $0x128] sm:$0xff]  ;;  %v383_v26 = vld [vmem:[%s4896_s25 + $0x138] sm:$0xff] }
  0x1c   : > { %380 = vst [vmem:[#allocation2 + $0xc0] sm:$0xff] %v379_v24  ;;  %382 = vst [vmem:[#allocation2 + $0xf8] sm:$0xff] %v381_v25  ;;  %v385_v27 = vld [vmem:[%s4896_s25 + $0x140] sm:$0xff]  ;;  %v387_v28 = vld [vmem:[%s4896_s25 + $0x150] sm:$0xff] }
  0x1d   : > { %384 = vst [vmem:[#allocation2 + $0x38] sm:$0xff] %v383_v26  ;;  %v389_v29 = vld [vmem:[%s4896_s25 + $0x158] sm:$0xff]  ;;  %386 = vst [vmem:[#allocation2] sm:$0xff] %v385_v27  ;;  %v391_v30 = vld [vmem:[%s4896_s25 + $0x168] sm:$0xff] }
  0x1e   : > { %388 = vst [vmem:[#allocation2 + $0xe8] sm:$0xff] %v387_v28  ;;  %390 = vst [vmem:[#allocation2 + $0x110] sm:$0xff] %v389_v29  ;;  %v393_v31 = vld [vmem:[%s4896_s25 + $0x170] sm:$0xff]  ;;  %v395_v32 = vld [vmem:[%s4896_s25 + $0x180] sm:$0xff] }
  0x1f   : > { %392 = vst [vmem:[#allocation2 + $0x1a8] sm:$0xff] %v391_v30  ;;  %394 = vst [vmem:[#allocation2 + $0x70] sm:$0xff] %v393_v31  ;;  %v397_v33 = vld [vmem:[%s4896_s25 + $0x188] sm:$0xff]  ;;  %v399_v34 = vld [vmem:[%s4896_s25 + $0x198] sm:$0xff] }
  0x20   : > { %396 = vst [vmem:[#allocation2 + $0x78] sm:$0xff] %v395_v32  ;;  %v401_v35 = vld [vmem:[%s4896_s25 + $0x1a0] sm:$0xff]  ;;  %398 = vst [vmem:[#allocation2 + $0xf0] sm:$0xff] %v397_v33  ;;  %v3685_v36 = vld [vmem:[%s4896_s25 + $0x10] sm:$0x3] }
  0x21   : > { %400 = vst [vmem:[#allocation2 + $0x100] sm:$0xff] %v399_v34  ;;  %402 = vst [vmem:[#allocation2 + $0x178] sm:$0xff] %v401_v35  ;;  %v3686_v37 = vld [vmem:[%s4896_s25 + $0x28] sm:$0x3]  ;;  %v3687_v38 = vld [vmem:[%s4896_s25 + $0x40] sm:$0x3] }
  0x22   : > { %414 = vst [vmem:[#allocation2 + $0x120] sm:$0x3] %v3685_v36  ;;  %416 = vst [vmem:[#allocation2 + $0x160] sm:$0x3] %v3686_v37  ;;  %v3688_v39 = vld [vmem:[%s4896_s25 + $0x58] sm:$0x3] }
  0x23   : > { %418 = vst [vmem:[#allocation2 + $0x128] sm:$0x3] %v3687_v38  ;;  %v3689_v40 = vld [vmem:[%s4896_s25 + $0x70] sm:$0x3]  ;;  %v3690_v41 = vld [vmem:[%s4896_s25 + $0x88] sm:$0x3] }
  0x24   : > { %420 = vst [vmem:[#allocation2 + $0x168] sm:$0x3] %v3688_v39  ;;  %422 = vst [vmem:[#allocation2 + $0xa0] sm:$0x3] %v3689_v40  ;;  %v3691_v42 = vld [vmem:[%s4896_s25 + $0xa0] sm:$0x3] }
  0x25   : > { %424 = vst [vmem:[#allocation2 + $0x48] sm:$0x3] %v3690_v41  ;;  %v3692_v43 = vld [vmem:[%s4896_s25 + $0xb8] sm:$0x3]  ;;  %v3693_v44 = vld [vmem:[%s4896_s25 + $0xd0] sm:$0x3] }
  0x26   : > { %426 = vst [vmem:[#allocation2 + $0x170] sm:$0x3] %v3691_v42  ;;  %428 = vst [vmem:[#allocation2 + $0x20] sm:$0x3] %v3692_v43  ;;  %v3694_v45 = vld [vmem:[%s4896_s25 + $0xe8] sm:$0x3] }
  0x27   : > { %430 = vst [vmem:[#allocation2 + $0x8] sm:$0x3] %v3693_v44  ;;  %v3695_v46 = vld [vmem:[%s4896_s25 + $0x100] sm:$0x3]  ;;  %v3696_v47 = vld [vmem:[%s4896_s25 + $0x118] sm:$0x3] }
  0x28   : > { %432 = vst [vmem:[#allocation2 + $0x90] sm:$0x3] %v3694_v45  ;;  %434 = vst [vmem:[#allocation2 + $0xa8] sm:$0x3] %v3695_v46  ;;  %v3697_v48 = vld [vmem:[%s4896_s25 + $0x130] sm:$0x3] }
  0x29   : > { %436 = vst [vmem:[#allocation2 + $0x98] sm:$0x3] %v3696_v47  ;;  %v3698_v49 = vld [vmem:[%s4896_s25 + $0x148] sm:$0x3]  ;;  %v3699_v50 = vld [vmem:[%s4896_s25 + $0x160] sm:$0x3] }
  0x2a   : > { %438 = vst [vmem:[#allocation2 + $0x50] sm:$0x3] %v3697_v48  ;;  %440 = vst [vmem:[#allocation2 + $0x30] sm:$0x3] %v3698_v49  ;;  %v3700_v51 = vld [vmem:[%s4896_s25 + $0x178] sm:$0x3] }
  0x2b   : > { %442 = vst [vmem:[#allocation2 + $0xc8] sm:$0x3] %v3699_v50  ;;  %v3701_v52 = vld [vmem:[%s4896_s25 + $0x190] sm:$0x3]  ;;  %v3702_v53 = vld [vmem:[%s4896_s25 + $0x1a8] sm:$0x3] }
  0x2c   : > { %444 = vst [vmem:[#allocation2 + $0x150] sm:$0x3] %v3700_v51  ;;  %446 = vst [vmem:[#allocation2 + $0x10] sm:$0x3] %v3701_v52 }
  0x2d   : > { %448 = vst [vmem:[#allocation2 + $0x148] sm:$0x3] %v3702_v53 }
  0x2e   : > { %452 = vsyncadd [#allocation3], 5184 }
  0x2f   : > { %4826 = dma.done.wait [#allocation3], 5184 }
  0x30   : > { %4827 = vsyncadd [#allocation3], 4294962112  ;;  %v4742_v54 = vld [vmem:[%s6087_s4 + $0x78] sm:$0xff]   ;;  %v4743_v55 = vld [vmem:[%s6087_s4 + $0x70] sm:$0xff]   ;;  %vm781_vm0 = vsmask.f32 7424 }
  0x31   : > { %4270 = vmatprep.subr.bf16.mxu0 %v4742_v54  ;;  %4702 = vmatprep.subr.bf16.mxu1 %v4742_v54  ;;  %v4744_v56 = vld [vmem:[%s6087_s4 + $0x68] sm:$0xff]   ;;  %v4745_v57 = vld [vmem:[%s6087_s4 + $0x60] sm:$0xff]   ;;  %v676_v59 = vld [vmem:[#allocation2 + $0x138] sm:$0xff]  ;;  %vm1457_vm1 = vcmask 1046528   ;;  %vm3504_vm2 = vcmask 1040384  }
  0x32   : > { %4271 = vmatpush3.bf16.msra.mxu0 %v4742_v54  ;;  %4710 = vmatpush3.bf16.msra.mxu1 %v4742_v54  ;;  %v675_v58 = vld [vmem:[#allocation2 + $0x108] sm:$0xff]  ;;  %v677_v60 = vld [vmem:[#allocation2 + $0x120] sm:$0x3]  ;;  %v699_v63 = vld [vmem:[#allocation2 + $0x130] sm:$0xff] }
  0x33   : > { %4272 = vmatprep.subr.bf16.mxu0 %v4743_v55  ;;  %4703 = vmatprep.subr.bf16.mxu1 %v4743_v55  ;;  %v4974_v61 = vpack.c.bf16 %v676_v59, %v675_v58  ;;  %v4976_v62 = vpack.c.bf16 %v677_v60, %v677_v60  ;;  %v700_v0 = vld [vmem:[#allocation2 + $0x40] sm:$0xff]  ;;  %v701_v1 = vld [vmem:[#allocation2 + $0x8] sm:$0x3]  ;;  %v678_v4 = vld [vmem:[#allocation2 + $0x18] sm:$0xff] }
  0x34   : > { %v4978_v2 = vpack.c.bf16 %v700_v0, %v699_v63  ;;  %v4980_v3 = vpack.c.bf16 %v701_v1, %v701_v1  ;;  %v679_v5 = vld [vmem:[#allocation2 + $0x68] sm:$0xff]  ;;  %v680_v6 = vld [vmem:[#allocation2 + $0x160] sm:$0x3]  ;;  %v702_v11 = vld [vmem:[#allocation2 + $0x58] sm:$0xff] }
  0x35   : > { %v783_v7 = vshrl.u32 %v4974_v61, 16  ;;  %v785_v8 = vshll.u32 %v4974_v61, 16  ;;  %v790_v9 = vshll.u32 %v4976_v62, 16  ;;  %v4985_v10 = vpack.c.bf16 %v679_v5, %v678_v4  ;;  %v703_v12 = vld [vmem:[#allocation2 + $0xb0] sm:$0xff]  ;;  %v4746_v13 = vld [vmem:[%s6087_s4 + $0x58] sm:$0xff]   ;;  %v682_v37 = vld [vmem:[#allocation2 + $0x28] sm:$0xff] }
  0x36   : > { %4273 = vmatpush3.bf16.msra.mxu0 %v4743_v55  ;;  %4711 = vmatpush3.bf16.msra.mxu1 %v4743_v55  ;;  %v879_v14 = vshrl.u32 %v4978_v2, 16  ;;  %v881_v15 = vshll.u32 %v4978_v2, 16  ;;  %v886_v16 = vshll.u32 %v4980_v3, 16  ;;  %v4993_v17 = vpack.c.bf16 %v680_v6, %v680_v6  ;;  %v704_v18 = vld [vmem:[#allocation2 + $0x90] sm:$0x3]  ;;  %v706_v44 = vld [vmem:[#allocation2 + $0xb8] sm:$0xff] }
  0x37   : > { %4274 = vmatprep.subr.bf16.mxu0 %v4744_v56  ;;  %4704 = vmatprep.subr.bf16.mxu1 %v4744_v56  ;;  %v787_v19 = vrot.slane %v785_v8, 1  ;;  %v792_v20 = vrot.slane %v790_v9, 1  ;;  %v797_v21 = vshll.u32 %v4985_v10, 16  ;;  %v4747_v22 = vld [vmem:[%s6087_s4 + $0x50] sm:$0xff]   ;;  %v4999_v25 = vpack.c.bf16 %v703_v12, %v702_v11  ;;  %v683_v40 = vld [vmem:[#allocation2 + $0x128] sm:$0x3] }
  0x38   : > { %v883_v23 = vrot.slane %v881_v15, 1  ;;  %v888_v24 = vrot.slane %v886_v16, 1  ;;  %v795_v27 = vshrl.u32 %v4985_v10, 16  ;;  %v802_v28 = vshll.u32 %v4993_v17, 16  ;;  %v681_v34 = vld [vmem:[#allocation2 + $0xd0] sm:$0xff]  ;;  %v684_v46 = vld [vmem:[#allocation2 + $0x60] sm:$0xff] }
  0x39   : > { %v788_v26 = vor.u32 %v787_v19, %v783_v7  ;;  %v5003_v29 = vpack.c.bf16 %v704_v18, %v704_v18  ;;  %v799_v31 = vrot.slane %v797_v21, 1  ;;  %v891_v32 = vshrl.u32 %v4999_v25, 16  ;;  %v705_v42 = vld [vmem:[#allocation2 + $0x190] sm:$0xff]  ;;  %v707_v45 = vld [vmem:[#allocation2 + $0xa8] sm:$0x3]  ;;  %v685_v51 = vld [vmem:[#allocation2 + $0x118] sm:$0xff] }
  0x3a   : > { %4275 = vmatpush3.bf16.msra.mxu0 %v4744_v56  ;;  %4712 = vmatpush3.bf16.msra.mxu1 %v4744_v56  ;;  %v884_v30 = vor.u32 %v883_v23, %v879_v14  ;;  %v893_v33 = vshll.u32 %v4999_v25, 16  ;;  %v5012_v41 = vpack.c.bf16 %v682_v37, %v681_v34  ;;  %v5014_v43 = vpack.c.bf16 %v683_v40, %v683_v40  ;;  %v4748_v47 = vld [vmem:[%s6087_s4 + $0x48] sm:$0xff]   ;;  %v709_v58 = vld [vmem:[#allocation2 + $0x158] sm:$0xff]  ;;  %v4749_v6 = vld [vmem:[%s6087_s4 + $0x40] sm:$0xff]  }
  0x3b   : > { %4276 = vmatprep.subr.bf16.mxu0 %v4745_v57  ;;  %4705 = vmatprep.subr.bf16.mxu1 %v4745_v57  ;;  %v793_v35 = vsel %vm781_vm0, %v788_v26, %v792_v20  ;;  %v898_v36 = vshll.u32 %v5003_v29, 16  ;;  %v804_v48 = vrot.slane %v802_v28, 1  ;;  %v5020_v50 = vpack.c.bf16 %v706_v44, %v705_v42  ;;  %v686_v52 = vld [vmem:[#allocation2 + $0x168] sm:$0x3]  ;;  %v710_v1 = vld [vmem:[#allocation2 + $0x98] sm:$0x3] }
  0x3c   : > { %4286 = vmatprep.mubr.bf16.mxu0 %v793_v35  ;;  %v5010_v38 = vsel %vm781_vm0, %v884_v30, %v888_v24  ;;  %v895_v39 = vrot.slane %v893_v33, 1  ;;  %v809_v49 = vshll.u32 %v5012_v41, 16  ;;  %v5023_v54 = vpack.c.bf16 %v707_v45, %v707_v45  ;;  %v4750_v18 = vld [vmem:[%s6087_s4 + $0x38] sm:$0xff]   ;;  %v687_v26 = vld [vmem:[#allocation2 + $0x188] sm:$0xff]  ;;  %v711_v34 = vld [vmem:[#allocation2 + $0xc0] sm:$0xff] }
  0x3d   : > { %4302 = vmatprep.mubr.bf16.mxu1 %v5010_v38  ;;  %v900_v53 = vrot.slane %v898_v36, 1  ;;  %v5025_v55 = vpack.c.bf16 %v685_v51, %v684_v46  ;;  %v5027_v56 = vpack.c.bf16 %v686_v52, %v686_v52  ;;  %v800_v59 = vor.u32 %v799_v31, %v795_v27  ;;  %v4751_v19 = vld [vmem:[%s6087_s4 + $0xb8] sm:$0xff]   ;;  %v713_v42 = vld [vmem:[#allocation2 + $0x50] sm:$0x3]  ;;  %v691_v45 = vld [vmem:[#allocation2 + $0x1a0] sm:$0xff] }
  0x3e   : > { %4277 = vmatpush3.bf16.msra.mxu0 %v4745_v57  ;;  %4713 = vmatpush3.bf16.msra.mxu1 %v4745_v57  ;;  %v708_v57 = vld [vmem:[#allocation2 + $0xe0] sm:$0xff]  ;;  %v896_v60 = vor.u32 %v895_v39, %v891_v32  ;;  %v814_v63 = vshll.u32 %v5014_v43, 16  ;;  %v905_v0 = vshll.u32 %v5020_v50, 16  ;;  %v807_v4 = vshrl.u32 %v5012_v41, 16  ;;  %v688_v27 = vld [vmem:[#allocation2 + $0x198] sm:$0xff]  ;;  %v4752_v46 = vld [vmem:[%s6087_s4 + $0x30] sm:$0xff]  }
  0x3f   : > { %4278 = vmatprep.subr.bf16.mxu0 %v4746_v13  ;;  %4706 = vmatprep.subr.bf16.mxu1 %v4746_v13  ;;  %v910_v5 = vshll.u32 %v5023_v54, 16  ;;  %v811_v7 = vrot.slane %v809_v49, 1  ;;  %v903_v8 = vshrl.u32 %v5020_v50, 16  ;;  %v821_v9 = vshll.u32 %v5025_v55, 16  ;;  %v689_v32 = vld [vmem:[#allocation2 + $0xa0] sm:$0x3] }
  0x40   : > { %v5038_v11 = vpack.c.bf16 %v709_v58, %v708_v57  ;;  %v907_v12 = vrot.slane %v905_v0, 1  ;;  %v5041_v14 = vpack.c.bf16 %v710_v1, %v710_v1  ;;  %v5044_v15 = vsel %vm781_vm0, %v800_v59, %v804_v48  ;;  %v712_v35 = vld [vmem:[#allocation2 + $0xf8] sm:$0xff]  ;;  %v715_v0 = vld [vmem:[#allocation2] sm:$0xff] }
  0x41   : > { %v5047_v16 = vsel %vm781_vm0, %v896_v60, %v900_v53  ;;  %v816_v20 = vrot.slane %v814_v63, 1  ;;  %v912_v21 = vrot.slane %v910_v5, 1  ;;  %v812_v28 = vor.u32 %v811_v7, %v807_v4  ;;  %v690_v44 = vld [vmem:[#allocation2 + $0xd8] sm:$0xff]  ;;  %v692_v53 = vld [vmem:[#allocation2 + $0x48] sm:$0x3] }
  0x42   : > { %4279 = vmatpush3.bf16.msra.mxu0 %v4746_v13  ;;  %4714 = vmatpush3.bf16.msra.mxu1 %v4746_v13  ;;  %v826_v13 = vshll.u32 %v5027_v56, 16  ;;  %v917_v23 = vshll.u32 %v5038_v11, 16  ;;  %v922_v24 = vshll.u32 %v5041_v14, 16  ;;  %v823_v30 = vrot.slane %v821_v9, 1  ;;  %v714_v63 = vld [vmem:[#allocation2 + $0x38] sm:$0xff] }
  0x43   : > { %4280 = vmatprep.subr.bf16.mxu0 %v4747_v22  ;;  %4707 = vmatprep.subr.bf16.mxu1 %v4747_v22  ;;  %v915_v31 = vshrl.u32 %v5038_v11, 16  ;;  %v5059_v33 = vpack.c.bf16 %v688_v27, %v687_v26  ;;  %v908_v36 = vor.u32 %v907_v12, %v903_v8  ;;  %v5061_v40 = vpack.c.bf16 %v689_v32, %v689_v32  ;;  %v716_v8 = vld [vmem:[#allocation2 + $0x30] sm:$0x3]  ;;  %v4755_v27 = vld [vmem:[%s6087_s4 + $0xa8] sm:$0xff]  }
  0x44   : > { %v828_v37 = vrot.slane %v826_v13, 1  ;;  %v919_v39 = vrot.slane %v917_v23, 1  ;;  %v924_v48 = vrot.slane %v922_v24, 1  ;;  %v5070_v51 = vpack.c.bf16 %v712_v35, %v711_v34  ;;  %v4754_v23 = vld [vmem:[%s6087_s4 + $0x28] sm:$0xff]  }
  0x45   : > { %v833_v49 = vshll.u32 %v5059_v33, 16  ;;  %v5072_v52 = vpack.c.bf16 %v713_v42, %v713_v42  ;;  %v831_v57 = vshrl.u32 %v5059_v33, 16  ;;  %v838_v58 = vshll.u32 %v5061_v40, 16  ;;  %v694_v42 = vld [vmem:[#allocation2 + $0x180] sm:$0xff] }
  0x46   : > { %4281 = vmatpush3.bf16.msra.mxu0 %v4747_v22  ;;  %4715 = vmatpush3.bf16.msra.mxu1 %v4747_v22  ;;  %v819_v22 = vshrl.u32 %v5025_v55, 16  ;;  %v5076_v59 = vpack.c.bf16 %v691_v45, %v690_v44  ;;  %v5078_v60 = vpack.c.bf16 %v692_v53, %v692_v53  ;;  %v920_v4 = vor.u32 %v919_v39, %v915_v31  ;;  %v695_v44 = vld [vmem:[#allocation2 + $0x170] sm:$0x3]  ;;  %v717_v53 = vld [vmem:[#allocation2 + $0xe8] sm:$0xff] }
  0x47   : > { %4282 = vmatprep.subr.bf16.mxu0 %v4748_v47  ;;  %4708 = vmatprep.subr.bf16.mxu1 %v4748_v47  ;;  %v835_v5 = vrot.slane %v833_v49, 1  ;;  %v929_v7 = vshll.u32 %v5070_v51, 16  ;;  %v934_v9 = vshll.u32 %v5072_v52, 16  ;;  %v5087_v13 = vsel %vm781_vm0, %v812_v28, %v816_v20 }
  0x48   : > { %v824_v1 = vor.u32 %v823_v30, %v819_v22  ;;  %v845_v12 = vshll.u32 %v5076_v59, 16  ;;  %v5090_v22 = vsel %vm781_vm0, %v908_v36, %v912_v21  ;;  %v850_v26 = vshll.u32 %v5078_v60, 16 }
  0x49   : > { %6096 = vst [vmem:[#allocation7_spill] sm:$0xff] %v5090_v22  ;;  %v931_v24 = vrot.slane %v929_v7, 1  ;;  %v836_v30 = vor.u32 %v835_v5, %v831_v57  ;;  %v840_v31 = vrot.slane %v838_v58, 1  ;;  %v5099_v20 = vpack.c.bf16 %v715_v0, %v714_v63  ;;  %v718_v57 = vld [vmem:[#allocation2 + $0x110] sm:$0xff]  ;;  %v719_v58 = vld [vmem:[#allocation2 + $0xc8] sm:$0x3] }
  0x4a   : > { %4283 = vmatpush3.bf16.msra.mxu0 %v4748_v47  ;;  %4716 = vmatpush3.bf16.msra.mxu1 %v4748_v47  ;;  %v4753_v47 = vld [vmem:[%s6087_s4 + $0xb0] sm:$0xff]   ;;  %v5101_v28 = vpack.c.bf16 %v716_v8, %v716_v8  ;;  %v5104_v21 = vsel %vm781_vm0, %v824_v1, %v828_v37  ;;  %v5107_v32 = vsel %vm781_vm0, %v920_v4, %v924_v48  ;;  %v936_v35 = vrot.slane %v934_v9, 1  ;;  %v696_v5 = vld [vmem:[#allocation2 + $0x80] sm:$0xff] }
  0x4b   : > { %4284 = vmatprep.subr.bf16.mxu0 %v4749_v6  ;;  %4709 = vmatprep.subr.bf16.mxu1 %v4749_v6  ;;  %6097 = vst [vmem:[#allocation8_spill] sm:$0xff] %v5107_v32  ;;  %v847_v36 = vrot.slane %v845_v12, 1  ;;  %v941_v39 = vshll.u32 %v5099_v20, 16  ;;  %v5113_v45 = vrot.slane %v850_v26, 1  ;;  %v939_v37 = vshrl.u32 %v5099_v20, 16  ;;  %v697_v7 = vld [vmem:[#allocation2 + $0x140] sm:$0xff] }
  0x4c   : > { %v5118_v49 = vpack.c.bf16 %v695_v44, %v695_v44  ;;  %v5121_v63 = vsel %vm781_vm0, %v836_v30, %v840_v31  ;;  %v946_v1 = vshll.u32 %v5101_v28, 16  ;;  %v5124_v4 = vpack.c.bf16 %v718_v57, %v717_v53  ;;  %v698_v8 = vld [vmem:[#allocation2 + $0x20] sm:$0x3] }
  0x4d   : > { %v943_v0 = vrot.slane %v941_v39, 1  ;;  %v720_v39 = vld [vmem:[#allocation2 + $0x1a8] sm:$0xff] }
  0x4e   : > { %4285 = vmatpush3.bf16.msra.mxu0 %v4749_v6  ;;  %4717 = vmatpush3.bf16.msra.mxu1 %v4749_v6  ;;  %v927_v6 = vshrl.u32 %v5070_v51, 16  ;;  %v862_v12 = vshll.u32 %v5118_v49, 16  ;;  %v951_v30 = vshrl.u32 %v5124_v4, 16  ;;  %v953_v31 = vshll.u32 %v5124_v4, 16 }
  0x4f   : > { %4318 = vmatprep.subr.bf16.mxu1 %v4750_v18  ;;  %4366 = vmatprep.subr.bf16.mxu0 %v4751_v19 }
  0x50   : > { %v932_v34 = vor.u32 %v931_v24, %v927_v6  ;;  %v4756_v6 = vld [vmem:[%s6087_s4 + $0x20] sm:$0xff]   ;;  %v5135_v24 = vpack.c.bf16 %v719_v58, %v719_v58  ;;  %v5147_v58 = vpack.c.bf16 %v698_v8, %v698_v8 }
  0x51   : > { %4287 = vmatmul.mubr.bf16.vlgmr.msra.gmra.mxu0 %v5044_v15  ;;  %4303 = vmatmul.mubr.bf16.vlgmr.msra.gmra.mxu1 %v5047_v16 }
  0x52   : > { %4319 = vmatpush3.bf16.msra.mxu1 %v4750_v18  ;;  %4367 = vmatpush3.bf16.msra.mxu0 %v4751_v19  ;;  %v843_v18 = vshrl.u32 %v5076_v59, 16  ;;  %v693_v19 = vld [vmem:[#allocation2 + $0x88] sm:$0xff]  ;;  %v5144_v44 = vsel %vm781_vm0, %v932_v34, %v936_v35  ;;  %v958_v57 = vshll.u32 %v5135_v24, 16  ;;  %v4759_v34 = vld [vmem:[%s6087_s4 + $0x98] sm:$0xff]   ;;  %v864_v35 = vrot.slane %v862_v12, 1 }
  0x53   : > { %4320 = vmatprep.subr.bf16.mxu1 %v4752_v46  ;;  %4368 = vmatprep.subr.bf16.mxu0 %v4753_v47  ;;  %v5116_v48 = vpack.c.bf16 %v694_v42, %v693_v19  ;;  %v5139_v19 = vpack.c.bf16 %v697_v7, %v696_v5  ;;  %v721_v42 = vld [vmem:[#allocation2 + $0x70] sm:$0xff]  ;;  %v948_v5 = vrot.slane %v946_v1, 1  ;;  %v4758_v7 = vld [vmem:[%s6087_s4 + $0x18] sm:$0xff]   ;;  %v874_v12 = vshll.u32 %v5147_v58, 16 }
  0x54   : > { %4290 = vmatprep.mubr.bf16.mxu0 %v5087_v13  ;;  %4306 = vmatprep.mubr.bf16.mxu1 %v5090_v22  ;;  %v848_v26 = vor.u32 %v847_v36, %v843_v18  ;;  %v722_v18 = vld [vmem:[#allocation2 + $0x150] sm:$0x3]  ;;  %v944_v36 = vor.u32 %v943_v0, %v939_v37  ;;  %v955_v22 = vrot.slane %v953_v31, 1  ;;  %v5156_v8 = vpack.c.bf16 %v721_v42, %v720_v39 }
  0x55   : > { %v857_v9 = vshll.u32 %v5116_v48, 16  ;;  %v867_v37 = vshrl.u32 %v5139_v19, 16  ;;  %v5161_v0 = vpack.c.bf16 %v722_v18, %v722_v18  ;;  %v4760_v1 = vld [vmem:[%s6087_s4 + $0x10] sm:$0xff]  }
  0x56   : > { %4321 = vmatpush3.bf16.msra.mxu1 %v4752_v46  ;;  %4369 = vmatpush3.bf16.msra.mxu0 %v4753_v47  ;;  %v4757_v46 = vld [vmem:[%s6087_s4 + $0xa0] sm:$0xff]   ;;  %v855_v47 = vshrl.u32 %v5116_v48, 16  ;;  %v965_v39 = vshll.u32 %v5156_v8, 16  ;;  %v5173_v42 = vsel %vm781_vm0, %v944_v36, %v948_v5  ;;  %v4762_v36 = vld [vmem:[%s6087_s4 + $0x8] sm:$0xff]  }
  0x57   : > { %4322 = vmatprep.subr.bf16.mxu1 %v4754_v23  ;;  %4370 = vmatprep.subr.bf16.mxu0 %v4755_v27  ;;  %v859_v53 = vrot.slane %v857_v9, 1  ;;  %v956_v9 = vor.u32 %v955_v22, %v951_v30  ;;  %v4761_v22 = vld [vmem:[%s6087_s4 + $0x90] sm:$0xff]   ;;  %v4763_v5 = vld [vmem:[%s6087_s4 + $0x88] sm:$0xff]  }
  0x59   : > { %4291 = vmatmul.mubr.bf16.gmra.mxu0 %v5104_v21  ;;  %4307 = vmatmul.mubr.bf16.gmra.mxu1 %v5107_v32  ;;  %v869_v32 = vshll.u32 %v5139_v19, 16 }
  0x5a   : > { %4323 = vmatpush3.bf16.msra.mxu1 %v4754_v23  ;;  %4371 = vmatpush3.bf16.msra.mxu0 %v4755_v27  ;;  %v860_v23 = vor.u32 %v859_v53, %v855_v47  ;;  %v960_v27 = vrot.slane %v958_v57, 1  ;;  %v5170_v47 = vsel %vm781_vm0, %v848_v26, %v5113_v45  ;;  %v963_v53 = vshrl.u32 %v5156_v8, 16 }
  0x5b   : > { %4324 = vmatprep.subr.bf16.mxu1 %v4756_v6  ;;  %4372 = vmatprep.subr.bf16.mxu0 %v4757_v46  ;;  %v871_v31 = vrot.slane %v869_v32, 1  ;;  %v970_v57 = vshll.u32 %v5161_v0, 16  ;;  %v967_v32 = vrot.slane %v965_v39, 1  ;;  %v876_v26 = vrot.slane %v874_v12, 1  ;;  %v4767_v12 = vld [vmem:[%s6087_s4 + $0x138] sm:$0xff]  }
  0x5c   : > { %4294 = vmatprep.mubr.bf16.mxu0 %v5121_v63  ;;  %4310 = vmatprep.mubr.bf16.mxu1 %v5144_v44  ;;  %v5183_v45 = vsel %vm781_vm0, %v860_v23, %v864_v35  ;;  %v1464_v39 = vrot.slane %v5012_v41, 1 }
  0x5d   : > { %v968_v30 = vor.u32 %v967_v32, %v963_v53  ;;  %v972_v18 = vrot.slane %v970_v57, 1  ;;  %v1465_v53 = vrot.slane %v5014_v43, 1  ;;  %v4768_v57 = vld [vmem:[%s6087_s4 + $0xf0] sm:$0xff]   ;;  %v1467_v43 = vrot.slane %v5025_v55, 1 }
  0x5e   : > { %4325 = vmatpush3.bf16.msra.mxu1 %v4756_v6  ;;  %4373 = vmatpush3.bf16.msra.mxu0 %v4757_v46  ;;  %v5186_v6 = vsel %vm781_vm0, %v956_v9, %v960_v27  ;;  %v872_v46 = vor.u32 %v871_v31, %v867_v37  ;;  %v4764_v27 = vld [vmem:[%s6087_s4] sm:$0xff]   ;;  %v1462_v9 = vrot.slane %v4993_v17, 1  ;;  %v4766_v31 = vld [vmem:[%s6087_s4 + $0xf8] sm:$0xff]   ;;  %v1468_v32 = vrot.slane %v5027_v56, 1 }
  0x5f   : > { %4326 = vmatprep.subr.bf16.mxu1 %v4758_v7  ;;  %4374 = vmatprep.subr.bf16.mxu0 %v4759_v34  ;;  %v5202_v23 = vsel %vm781_vm0, %v968_v30, %v972_v18  ;;  %v4765_v37 = vld [vmem:[%s6087_s4 + $0x80] sm:$0xff]   ;;  %v1471_v30 = vrot.slane %v5061_v40, 1  ;;  %v4771_v18 = vld [vmem:[%s6087_s4 + $0x128] sm:$0xff]  }
  0x60   : > { %v5199_v35 = vsel %vm781_vm0, %v872_v46, %v876_v26  ;;  %v1470_v46 = vrot.slane %v5059_v33, 1  ;;  %v4770_v26 = vld [vmem:[%s6087_s4 + $0xe8] sm:$0xff]   ;;  %v5251_v56 = vsel %vm1457_vm1, %v1467_v43, %v1468_v32  ;;  %v4772_v40 = vld [vmem:[%s6087_s4 + $0xe0] sm:$0xff]  }
  0x61   : > { %4295 = vmatmul.mubr.bf16.gmra.mxu0 %v5170_v47  ;;  %4311 = vmatmul.mubr.bf16.gmra.mxu1 %v5173_v42  ;;  %v4779_v43 = vld [vmem:[%s6087_s4 + $0x108] sm:$0xff]  }
  0x62   : > { %4327 = vmatpush3.bf16.msra.mxu1 %v4758_v7  ;;  %4375 = vmatpush3.bf16.msra.mxu0 %v4759_v34  ;;  %v1458_v7 = vrot.slane %v4974_v61, 1  ;;  %v1459_v34 = vrot.slane %v4976_v62, 1 }
  0x63   : > { %4328 = vmatprep.subr.bf16.mxu1 %v4760_v1  ;;  %4376 = vmatprep.subr.bf16.mxu0 %v4761_v22 }
  0x64   : > { %4298 = vmatprep.mubr.bf16.mxu0 %v5183_v45  ;;  %4314 = vmatprep.mubr.bf16.mxu1 %v5186_v6  ;;  %v1460_v62 = vsel %vm1457_vm1, %v1458_v7, %v1459_v34  ;;  %v1473_v7 = vrot.slane %v5076_v59, 1  ;;  %v1474_v34 = vrot.slane %v5078_v60, 1 }
  0x66   : > { %4329 = vmatpush3.bf16.msra.mxu1 %v4760_v1  ;;  %4377 = vmatpush3.bf16.msra.mxu0 %v4761_v22  ;;  %v1461_v1 = vrot.slane %v4985_v10, 1  ;;  %v5231_v22 = vsel %vm1457_vm1, %v1464_v39, %v1465_v53  ;;  %v1480_v39 = vrot.slane %v5147_v58, 1  ;;  %v1482_v53 = vrot.slane %v4978_v2, 1  ;;  %v4780_v58 = vld [vmem:[%s6087_s4 + $0xc0] sm:$0xff]  }
  0x67   : > { %4330 = vmatprep.subr.bf16.mxu1 %v4762_v36  ;;  %4378 = vmatprep.subr.bf16.mxu0 %v4763_v5 }
  0x68   : > { %v5225_v17 = vsel %vm1457_vm1, %v1461_v1, %v1462_v9  ;;  %v4775_v1 = vld [vmem:[%s6087_s4 + $0x118] sm:$0xff]   ;;  %v5277_v9 = vsel %vm1457_vm1, %v1473_v7, %v1474_v34  ;;  %v1491_v34 = vrot.slane %v5038_v11, 1 }
  0x69   : > { %4299 = vmatmul.mubr.bf16.gmra.mxu0 %v5199_v35  ;;  %4315 = vmatmul.mubr.bf16.gmra.mxu1 %v5202_v23  ;;  %v4783_v7 = vld [vmem:[%s6087_s4 + $0x1b8] sm:$0xff]  }
  0x6a   : > { %4331 = vmatpush3.bf16.msra.mxu1 %v4762_v36  ;;  %4379 = vmatpush3.bf16.msra.mxu0 %v4763_v5  ;;  %v5254_v36 = vsel %vm1457_vm1, %v1470_v46, %v1471_v30  ;;  %v4773_v5 = vld [vmem:[%s6087_s4 + $0x120] sm:$0xff]   ;;  %v1486_v30 = vrot.slane %v5003_v29, 1 }
  0x6b   : > { %4332 = vmatprep.subr.bf16.mxu1 %v4764_v27  ;;  %4380 = vmatprep.subr.bf16.mxu0 %v4765_v37  ;;  %v4781_v46 = vld [vmem:[%s6087_s4 + $0x100] sm:$0xff]  }
  0x6c   : > { %4334 = vmatprep.mubr.bf16.mxu1 %v4974_v61  ;;  %4382 = vmatprep.mubr.bf16.mxu0 %v1460_v62  ;;  %v4769_v61 = vld [vmem:[%s6087_s4 + $0x130] sm:$0xff]   ;;  %v4774_v62 = vld [vmem:[%s6087_s4 + $0xd8] sm:$0xff]  }
  0x6e   : > { %4333 = vmatpush3.bf16.msra.mxu1 %v4764_v27  ;;  %4381 = vmatpush3.bf16.msra.mxu0 %v4765_v37  ;;  %v1476_v27 = vrot.slane %v5116_v48, 1  ;;  %v1477_v37 = vrot.slane %v5118_v49, 1  ;;  %v4776_v49 = vld [vmem:[%s6087_s4 + $0xd0] sm:$0xff]  }
  0x6f   : > { %4414 = vmatprep.subr.bf16.mxu1 %v4766_v31  ;;  %4462 = vmatprep.subr.bf16.mxu0 %v4767_v12 }
  0x70   : > { %v5280_v60 = vsel %vm1457_vm1, %v1476_v27, %v1477_v37  ;;  %v1492_v27 = vrot.slane %v5041_v14, 1  ;;  %v1494_v37 = vrot.slane %v5070_v51, 1  ;;  %v1497_v14 = vrot.slane %v5099_v20, 1 }
  0x71   : > { %4335 = vmatmul.mubr.bf16.vlgmr.msra.gmra.mxu1 %v4985_v10  ;;  %4383 = vmatmul.mubr.bf16.vlgmr.msra.gmra.mxu0 %v5225_v17 }
  0x72   : > { %4415 = vmatpush3.bf16.msra.mxu1 %v4766_v31  ;;  %4463 = vmatpush3.bf16.msra.mxu0 %v4767_v12  ;;  %v4777_v31 = vld [vmem:[%s6087_s4 + $0x110] sm:$0xff]   ;;  %v1479_v12 = vrot.slane %v5139_v19, 1 }
  0x73   : > { %4338 = vmatprep.mubr.bf16.mxu1 %v5012_v41  ;;  %4386 = vmatprep.mubr.bf16.mxu0 %v5231_v22 }
  0x74   : > { %4416 = vmatprep.subr.bf16.mxu1 %v4768_v57  ;;  %4464 = vmatprep.subr.bf16.mxu0 %v4769_v61  ;;  %v5303_v32 = vsel %vm1457_vm1, %v1479_v12, %v1480_v39  ;;  %v1501_v12 = vrot.slane %v5135_v24, 1 }
  0x76   : > { %4417 = vmatpush3.bf16.msra.mxu1 %v4768_v57  ;;  %4465 = vmatpush3.bf16.msra.mxu0 %v4769_v61  ;;  %v1483_v57 = vrot.slane %v4980_v3, 1  ;;  %v4778_v61 = vld [vmem:[%s6087_s4 + $0xc8] sm:$0xff]  }
  0x77   : > { %4418 = vmatprep.subr.bf16.mxu1 %v4770_v26  ;;  %4466 = vmatprep.subr.bf16.mxu0 %v4771_v18 }
  0x78   : > { %v5309_v3 = vsel %vm1457_vm1, %v1482_v53, %v1483_v57  ;;  %v1504_v57 = vrot.slane %v5161_v0, 1  ;;  %v4788_v0 = vld [vmem:[%s6087_s4 + $0x160] sm:$0xff]  }
  0x79   : > { %4339 = vmatmul.mubr.bf16.gmra.mxu1 %v5025_v55  ;;  %4387 = vmatmul.mubr.bf16.gmra.mxu0 %v5251_v56 }
  0x7a   : > { %4342 = vmatprep.mubr.bf16.mxu1 %v5059_v33  ;;  %4390 = vmatprep.mubr.bf16.mxu0 %v5254_v36 }
  0x7b   : > { %4419 = vmatpush3.bf16.msra.mxu1 %v4770_v26  ;;  %4467 = vmatpush3.bf16.msra.mxu0 %v4771_v18  ;;  %v1485_v26 = vrot.slane %v4999_v25, 1  ;;  %v1488_v18 = vrot.slane %v5020_v50, 1 }
  0x7c   : > { %4420 = vmatprep.subr.bf16.mxu1 %v4772_v40  ;;  %4468 = vmatprep.subr.bf16.mxu0 %v4773_v5 }
  0x7d   : > { %v5329_v29 = vsel %vm1457_vm1, %v1485_v26, %v1486_v30  ;;  %v4791_v26 = vld [vmem:[%s6087_s4 + $0x198] sm:$0xff]   ;;  %v4792_v30 = vld [vmem:[%s6087_s4 + $0x150] sm:$0xff]  }
  0x7f   : > { %4421 = vmatpush3.bf16.msra.mxu1 %v4772_v40  ;;  %4469 = vmatpush3.bf16.msra.mxu0 %v4773_v5  ;;  %v1489_v40 = vrot.slane %v5023_v54, 1  ;;  %v4782_v5 = vld [vmem:[%s6087_s4 + $0x178] sm:$0xff]  }
  0x80   : > { %4422 = vmatprep.subr.bf16.mxu1 %v4774_v62  ;;  %4470 = vmatprep.subr.bf16.mxu0 %v4775_v1 }
  0x81   : > { %4343 = vmatmul.mubr.bf16.gmra.mxu1 %v5076_v59  ;;  %4391 = vmatmul.mubr.bf16.gmra.mxu0 %v5277_v9  ;;  %v5332_v54 = vsel %vm1457_vm1, %v1488_v18, %v1489_v40  ;;  %v4793_v18 = vld [vmem:[%s6087_s4 + $0x190] sm:$0xff]   ;;  %v4794_v40 = vld [vmem:[%s6087_s4 + $0x148] sm:$0xff]  }
  0x82   : > { %4346 = vmatprep.mubr.bf16.mxu1 %v5116_v48  ;;  %4394 = vmatprep.mubr.bf16.mxu0 %v5280_v60 }
  0x83   : > { %4423 = vmatpush3.bf16.msra.mxu1 %v4774_v62  ;;  %4471 = vmatpush3.bf16.msra.mxu0 %v4775_v1  ;;  %v1495_v62 = vrot.slane %v5072_v52, 1  ;;  %v5343_v1 = vsel %vm1457_vm1, %v1491_v34, %v1492_v27  ;;  %v1500_v52 = vrot.slane %v5124_v4, 1  ;;  %v4797_v34 = vld [vmem:[%s6087_s4 + $0x180] sm:$0xff]   ;;  %v4798_v27 = vld [vmem:[%s6087_s4 + $0x1f8] sm:$0xff]  }
  0x84   : > { %4424 = vmatprep.subr.bf16.mxu1 %v4776_v49  ;;  %4472 = vmatprep.subr.bf16.mxu0 %v4777_v31 }
  0x85   : > { %v5360_v53 = vsel %vm1457_vm1, %v1500_v52, %v1501_v12  ;;  %v724_v52 = vld [vmem:[#allocation2 + $0xf0] sm:$0xff] }
  0x87   : > { %4425 = vmatpush3.bf16.msra.mxu1 %v4776_v49  ;;  %4473 = vmatpush3.bf16.msra.mxu0 %v4777_v31  ;;  %v5346_v49 = vsel %vm1457_vm1, %v1494_v37, %v1495_v62  ;;  %v1498_v31 = vrot.slane %v5101_v28, 1  ;;  %v1503_v28 = vrot.slane %v5156_v8, 1  ;;  %v4799_v37 = vld [vmem:[%s6087_s4 + $0x238] sm:$0xff]   ;;  %v6098_v62 = vld [vmem:[#allocation7_spill] sm:$0xff] }
  0x88   : > { %4426 = vmatprep.subr.bf16.mxu1 %v4778_v61  ;;  %4474 = vmatprep.subr.bf16.mxu0 %v4779_v43 }
  0x89   : > { %4347 = vmatmul.mubr.bf16.gmra.mxu1 %v5139_v19  ;;  %4395 = vmatmul.mubr.bf16.gmra.mxu0 %v5303_v32  ;;  %v5357_v39 = vsel %vm1457_vm1, %v1497_v14, %v1498_v31  ;;  %v5369_v24 = vsel %vm1457_vm1, %v1503_v28, %v1504_v57  ;;  %v6099_v14 = vld [vmem:[#allocation8_spill] sm:$0xff]  ;;  %v723_v31 = vld [vmem:[#allocation2 + $0x78] sm:$0xff]  ;;  %v725_v28 = vld [vmem:[#allocation2 + $0x10] sm:$0x3] }
  0x8a   : > { %4350 = vmatprep.mubr.bf16.mxu1 %v4978_v2  ;;  %4398 = vmatprep.mubr.bf16.mxu0 %v5309_v3  ;;  %v5443_v12 = vpack.c.bf16 %v724_v52, %v723_v31  ;;  %v5449_v57 = vpack.c.bf16 %v725_v28, %v725_v28 }
  0x8b   : > { %4427 = vmatpush3.bf16.msra.mxu1 %v4778_v61  ;;  %4475 = vmatpush3.bf16.msra.mxu0 %v4779_v43  ;;  %v4784_v61 = vld [vmem:[%s6087_s4 + $0x170] sm:$0xff]  }
  0x8c   : > { %4428 = vmatprep.subr.bf16.mxu1 %v4780_v58  ;;  %4476 = vmatprep.subr.bf16.mxu0 %v4781_v46  ;;  %v4785_v43 = vld [vmem:[%s6087_s4 + $0x1b0] sm:$0xff]  }
  0x8f   : > { %4429 = vmatpush3.bf16.msra.mxu1 %v4780_v58  ;;  %4477 = vmatpush3.bf16.msra.mxu0 %v4781_v46  ;;  %v4789_v58 = vld [vmem:[%s6087_s4 + $0x1a0] sm:$0xff]   ;;  %v4790_v46 = vld [vmem:[%s6087_s4 + $0x158] sm:$0xff]  }
  0x90   : > { %4510 = vmatprep.subr.bf16.mxu1 %v4782_v5  ;;  %4558 = vmatprep.subr.bf16.mxu0 %v4783_v7 }
  0x91   : > { %4351 = vmatmul.mubr.bf16.gmra.mxu1 %v4999_v25  ;;  %4399 = vmatmul.mubr.bf16.gmra.mxu0 %v5329_v29 }
  0x92   : > { %4354 = vmatprep.mubr.bf16.mxu1 %v5020_v50  ;;  %4402 = vmatprep.mubr.bf16.mxu0 %v5332_v54 }
  0x99   : > { %4355 = vmatmul.mubr.bf16.gmra.mxu1 %v5038_v11  ;;  %4403 = vmatmul.mubr.bf16.gmra.mxu0 %v5343_v1 }
  0x9a   : > { %4358 = vmatprep.mubr.bf16.mxu1 %v5070_v51  ;;  %4406 = vmatprep.mubr.bf16.mxu0 %v5346_v49 }
  0xa1   : > { %4359 = vmatmul.mubr.bf16.gmra.mxu1 %v5099_v20  ;;  %4407 = vmatmul.mubr.bf16.gmra.mxu0 %v5357_v39 }
  0xa2   : > { %4362 = vmatprep.mubr.bf16.mxu1 %v5124_v4  ;;  %4410 = vmatprep.mubr.bf16.mxu0 %v5360_v53 }
  0xa9   : > { %4363 = vmatmul.mubr.bf16.gmra.mxu1 %v5156_v8  ;;  %4411 = vmatmul.mubr.bf16.gmra.mxu0 %v5369_v24 }
  0xaa   : > { %4430 = vmatprep.mubr.bf16.mxu1 %v4985_v10  ;;  %4478 = vmatprep.mubr.bf16.mxu0 %v5044_v15  ;;  %v4786_v10 = vld [vmem:[%s6087_s4 + $0x168] sm:$0xff]  }
  0xab   : > { %v4787_v15 = vld [vmem:[%s6087_s4 + $0x1a8] sm:$0xff]  }
  0xb1   : > { %4431 = vmatmul.mubr.bf16.vlgmr.msra.gmra.mxu1 %v5012_v41  ;;  %4479 = vmatmul.mubr.bf16.vlgmr.msra.gmra.mxu0 %v5087_v13 }
  0xb2   : > { %4511 = vmatpush3.bf16.msra.mxu1 %v4782_v5  ;;  %4559 = vmatpush3.bf16.msra.mxu0 %v4783_v7  ;;  %v4795_v5 = vld [vmem:[%s6087_s4 + $0x188] sm:$0xff]   ;;  %v4796_v7 = vld [vmem:[%s6087_s4 + $0x140] sm:$0xff]  }
  0xb3   : > { %4434 = vmatprep.mubr.bf16.mxu1 %v5025_v55  ;;  %4482 = vmatprep.mubr.bf16.mxu0 %v5104_v21 }
  0xb4   : > { %4512 = vmatprep.subr.bf16.mxu1 %v4784_v61  ;;  %4560 = vmatprep.subr.bf16.mxu0 %v4785_v43 }
  0xb6   : > { %4513 = vmatpush3.bf16.msra.mxu1 %v4784_v61  ;;  %4561 = vmatpush3.bf16.msra.mxu0 %v4785_v43  ;;  %v2041_v61 = vshll.u32 %v5443_v12, 16  ;;  %v2039_v43 = vshrl.u32 %v5443_v12, 16 }
  0xb7   : > { %4514 = vmatprep.subr.bf16.mxu1 %v4786_v10  ;;  %4562 = vmatprep.subr.bf16.mxu0 %v4787_v15 }
  0xb9   : > { %4435 = vmatmul.mubr.bf16.gmra.mxu1 %v5059_v33  ;;  %4483 = vmatmul.mubr.bf16.gmra.mxu0 %v5121_v63 }
  0xba   : > { %4438 = vmatprep.mubr.bf16.mxu1 %v5076_v59  ;;  %4486 = vmatprep.mubr.bf16.mxu0 %v5170_v47 }
  0xbb   : > { %4515 = vmatpush3.bf16.msra.mxu1 %v4786_v10  ;;  %4563 = vmatpush3.bf16.msra.mxu0 %v4787_v15  ;;  %v2043_v10 = vrot.slane %v2041_v61, 1  ;;  %v2046_v15 = vshll.u32 %v5449_v57, 16 }
  0xbc   : > { %4516 = vmatprep.subr.bf16.mxu1 %v4788_v0  ;;  %4564 = vmatprep.subr.bf16.mxu0 %v4789_v58 }
  0xbf   : > { %4517 = vmatpush3.bf16.msra.mxu1 %v4788_v0  ;;  %4565 = vmatpush3.bf16.msra.mxu0 %v4789_v58  ;;  %v2044_v0 = vor.u32 %v2043_v10, %v2039_v43  ;;  %v2048_v58 = vrot.slane %v2046_v15, 1 }
  0xc0   : > { %4518 = vmatprep.subr.bf16.mxu1 %v4790_v46  ;;  %4566 = vmatprep.subr.bf16.mxu0 %v4791_v26 }
  0xc1   : > { %4439 = vmatmul.mubr.bf16.gmra.mxu1 %v5116_v48  ;;  %4487 = vmatmul.mubr.bf16.gmra.mxu0 %v5183_v45 }
  0xc2   : > { %4442 = vmatprep.mubr.bf16.mxu1 %v5139_v19  ;;  %4490 = vmatprep.mubr.bf16.mxu0 %v5199_v35 }
  0xc3   : > { %4519 = vmatpush3.bf16.msra.mxu1 %v4790_v46  ;;  %4567 = vmatpush3.bf16.msra.mxu0 %v4791_v26  ;;  %v5459_v46 = vsel %vm781_vm0, %v2044_v0, %v2048_v58  ;;  %v4800_v26 = vld [vmem:[%s6087_s4 + $0x1f0] sm:$0xff]  }
  0xc4   : > { %4520 = vmatprep.subr.bf16.mxu1 %v4792_v30  ;;  %4568 = vmatprep.subr.bf16.mxu0 %v4793_v18  ;;  %6100 = vst [vmem:[#allocation7_spill] sm:$0xff] %v5459_v46 }
  0xc7   : > { %4521 = vmatpush3.bf16.msra.mxu1 %v4792_v30  ;;  %4569 = vmatpush3.bf16.msra.mxu0 %v4793_v18  ;;  %v4801_v30 = vld [vmem:[%s6087_s4 + $0x230] sm:$0xff]   ;;  %v4806_v18 = vld [vmem:[%s6087_s4 + $0x1d8] sm:$0xff]  }
  0xc8   : > { %4522 = vmatprep.subr.bf16.mxu1 %v4794_v40  ;;  %4570 = vmatprep.subr.bf16.mxu0 %v4795_v5 }
  0xc9   : > { %4443 = vmatmul.mubr.bf16.gmra.mxu1 %v4978_v2  ;;  %4491 = vmatmul.mubr.bf16.gmra.mxu0 %v5010_v38 }
  0xca   : > { %4446 = vmatprep.mubr.bf16.mxu1 %v4999_v25  ;;  %4494 = vmatprep.mubr.bf16.mxu0 %v5047_v16 }
  0xcb   : > { %4523 = vmatpush3.bf16.msra.mxu1 %v4794_v40  ;;  %4571 = vmatpush3.bf16.msra.mxu0 %v4795_v5  ;;  %v4807_v40 = vld [vmem:[%s6087_s4 + $0x218] sm:$0xff]   ;;  %v4810_v5 = vld [vmem:[%s6087_s4 + $0x1c8] sm:$0xff]  }
  0xcc   : > { %4524 = vmatprep.subr.bf16.mxu1 %v4796_v7  ;;  %4572 = vmatprep.subr.bf16.mxu0 %v4797_v34 }
  0xcf   : > { %4525 = vmatpush3.bf16.msra.mxu1 %v4796_v7  ;;  %4573 = vmatpush3.bf16.msra.mxu0 %v4797_v34  ;;  %v4811_v7 = vld [vmem:[%s6087_s4 + $0x208] sm:$0xff]  }
  0xd0   : > { %4606 = vmatprep.subr.bf16.mxu1 %v4798_v27  ;;  %4654 = vmatprep.subr.bf16.mxu0 %v4799_v37 }
  0xd1   : > { %4447 = vmatmul.mubr.bf16.gmra.mxu1 %v5020_v50  ;;  %4495 = vmatmul.mubr.bf16.gmra.mxu0 %v6098_v62 }
  0xd2   : > { %4450 = vmatprep.mubr.bf16.mxu1 %v5038_v11  ;;  %4498 = vmatprep.mubr.bf16.mxu0 %v6099_v14 }
  0xd9   : > { %4451 = vmatmul.mubr.bf16.gmra.mxu1 %v5070_v51  ;;  %4499 = vmatmul.mubr.bf16.gmra.mxu0 %v5144_v44 }
  0xda   : > { %4454 = vmatprep.mubr.bf16.mxu1 %v5099_v20  ;;  %4502 = vmatprep.mubr.bf16.mxu0 %v5173_v42 }
  0xe1   : > { %4455 = vmatmul.mubr.bf16.gmra.mxu1 %v5124_v4  ;;  %4503 = vmatmul.mubr.bf16.gmra.mxu0 %v5186_v6 }
  0xe2   : > { %4458 = vmatprep.mubr.bf16.mxu1 %v5156_v8  ;;  %4506 = vmatprep.mubr.bf16.mxu0 %v5202_v23 }
  0xe9   : > { %4459 = vmatmul.mubr.bf16.gmra.mxu1 %v5443_v12  ;;  %4507 = vmatmul.mubr.bf16.gmra.mxu0 %v5459_v46 }
  0xea   : > { %4526 = vmatprep.mubr.bf16.mxu1 %v5225_v17  ;;  %4574 = vmatprep.mubr.bf16.mxu0 %v5012_v41  ;;  %v4802_v41 = vld [vmem:[%s6087_s4 + $0x1e8] sm:$0xff]  }
  0xeb   : > { %v4803_v17 = vld [vmem:[%s6087_s4 + $0x228] sm:$0xff]  }
  0xf1   : > { %4527 = vmatmul.mubr.bf16.vlgmr.msra.gmra.mxu1 %v5231_v22  ;;  %4575 = vmatmul.mubr.bf16.vlgmr.msra.gmra.mxu0 %v5025_v55  ;;  %v4804_v55 = vld [vmem:[%s6087_s4 + $0x1e0] sm:$0xff]  }
  0xf2   : > { %4607 = vmatpush3.bf16.msra.mxu1 %v4798_v27  ;;  %4655 = vmatpush3.bf16.msra.mxu0 %v4799_v37 }
  0xf3   : > { %4530 = vmatprep.mubr.bf16.mxu1 %v5251_v56  ;;  %4578 = vmatprep.mubr.bf16.mxu0 %v5059_v33  ;;  %v4805_v33 = vld [vmem:[%s6087_s4 + $0x220] sm:$0xff]  }
  0xf4   : > { %4608 = vmatprep.subr.bf16.mxu1 %v4800_v26  ;;  %4656 = vmatprep.subr.bf16.mxu0 %v4801_v30 }
  0xf6   : > { %4609 = vmatpush3.bf16.msra.mxu1 %v4800_v26  ;;  %4657 = vmatpush3.bf16.msra.mxu0 %v4801_v30 }
  0xf7   : > { %4610 = vmatprep.subr.bf16.mxu1 %v4802_v41  ;;  %4658 = vmatprep.subr.bf16.mxu0 %v4803_v17 }
  0xf9   : > { %4531 = vmatmul.mubr.bf16.gmra.mxu1 %v5254_v36  ;;  %4579 = vmatmul.mubr.bf16.gmra.mxu0 %v5076_v59  ;;  %v4808_v59 = vld [vmem:[%s6087_s4 + $0x1d0] sm:$0xff]  }
  0xfa   : > { %4534 = vmatprep.mubr.bf16.mxu1 %v5277_v9  ;;  %4582 = vmatprep.mubr.bf16.mxu0 %v5116_v48  ;;  %v4809_v48 = vld [vmem:[%s6087_s4 + $0x210] sm:$0xff]  }
  0xfb   : > { %4611 = vmatpush3.bf16.msra.mxu1 %v4802_v41  ;;  %4659 = vmatpush3.bf16.msra.mxu0 %v4803_v17  ;;  %v726_v41 = vld [vmem:[#allocation2 + $0x100] sm:$0xff]  ;;  %v727_v17 = vld [vmem:[#allocation2 + $0x178] sm:$0xff] }
  0xfc   : > { %4612 = vmatprep.subr.bf16.mxu1 %v4804_v55  ;;  %4660 = vmatprep.subr.bf16.mxu0 %v4805_v33 }
  0xff   : > { %4613 = vmatpush3.bf16.msra.mxu1 %v4804_v55  ;;  %4661 = vmatpush3.bf16.msra.mxu0 %v4805_v33 }
 0x100   : > { %4614 = vmatprep.subr.bf16.mxu1 %v4806_v18  ;;  %4662 = vmatprep.subr.bf16.mxu0 %v4807_v40 }
 0x101   : > { %4535 = vmatmul.mubr.bf16.gmra.mxu1 %v5280_v60  ;;  %4583 = vmatmul.mubr.bf16.gmra.mxu0 %v5139_v19  ;;  %v4813_v19 = vld [vmem:[%s6087_s4 + $0x200] sm:$0xff]  }
 0x102   : > { %4538 = vmatprep.mubr.bf16.mxu1 %v5303_v32  ;;  %4586 = vmatprep.mubr.bf16.mxu0 %v4978_v2  ;;  %v4812_v2 = vld [vmem:[%s6087_s4 + $0x1c0] sm:$0xff]  }
 0x103   : > { %4615 = vmatpush3.bf16.msra.mxu1 %v4806_v18  ;;  %4663 = vmatpush3.bf16.msra.mxu0 %v4807_v40 }
 0x104   : > { %4616 = vmatprep.subr.bf16.mxu1 %v4808_v59  ;;  %4664 = vmatprep.subr.bf16.mxu0 %v4809_v48 }
 0x107   : > { %4617 = vmatpush3.bf16.msra.mxu1 %v4808_v59  ;;  %4665 = vmatpush3.bf16.msra.mxu0 %v4809_v48  ;;  %v5573_v59 = vpack.c.bf16 %v727_v17, %v726_v41 }
 0x108   : > { %4618 = vmatprep.subr.bf16.mxu1 %v4810_v5  ;;  %4666 = vmatprep.subr.bf16.mxu0 %v4811_v7 }
 0x109   : > { %4539 = vmatmul.mubr.bf16.gmra.mxu1 %v5309_v3  ;;  %4587 = vmatmul.mubr.bf16.gmra.mxu0 %v4999_v25 }
 0x10a   : > { %4542 = vmatprep.mubr.bf16.mxu1 %v5329_v29  ;;  %4590 = vmatprep.mubr.bf16.mxu0 %v5020_v50 }
 0x10b   : > { %4619 = vmatpush3.bf16.msra.mxu1 %v4810_v5  ;;  %4667 = vmatpush3.bf16.msra.mxu0 %v4811_v7 }
 0x10c   : > { %4620 = vmatprep.subr.bf16.mxu1 %v4812_v2  ;;  %4668 = vmatprep.subr.bf16.mxu0 %v4813_v19 }
 0x10f   : > { %4621 = vmatpush3.bf16.msra.mxu1 %v4812_v2  ;;  %4669 = vmatpush3.bf16.msra.mxu0 %v4813_v19 }
 0x111   : > { %v4288_v34 = vpop.f32.mrf.mxu0  ;;  %v5523_v27 = vpop.f32.mrf.mxu1  ;;  %4543 = vmatmul.mubr.bf16.gmra.mxu1 %v5332_v54  ;;  %4591 = vmatmul.mubr.bf16.gmra.mxu0 %v5038_v11 }
 0x112   : > { %4546 = vmatprep.mubr.bf16.mxu1 %v5343_v1  ;;  %4594 = vmatprep.mubr.bf16.mxu0 %v5070_v51 }
 0x113   : > { %v1089_v25 = vpop.f32.mrf.mxu0  ;;  %v5529_v37 = vpop.f32.mrf.mxu1 }
 0x115   : > { %v4289_v50 = vpop.f32.mrf.mxu0  ;;  %v5531_v31 = vpop.f32.mrf.mxu1 }
 0x117   : > { %v1092_v52 = vpop.f32.mrf.mxu0  ;;  %v5533_v28 = vpop.f32.mrf.mxu1 }
 0x119   : > { %v5535_v61 = vpop.f32.mrf.mxu0  ;;  %v5537_v43 = vpop.f32.mrf.mxu1  ;;  %4547 = vmatmul.mubr.bf16.gmra.mxu1 %v5346_v49  ;;  %4595 = vmatmul.mubr.bf16.gmra.mxu0 %v5099_v20  ;;  %v2311_v20 = vrot.slane %v5443_v12, 1 }
 0x11a   : > { %4550 = vmatprep.mubr.bf16.mxu1 %v5357_v39  ;;  %4598 = vmatprep.mubr.bf16.mxu0 %v5124_v4  ;;  %v2312_v4 = vrot.slane %v5449_v57, 1 }
 0x11b   : > { %v5543_v11 = vpop.f32.mrf.mxu0  ;;  %v5545_v51 = vpop.f32.mrf.mxu1 }
 0x11d   : > { %v5547_v10 = vpop.f32.mrf.mxu0  ;;  %v5549_v15 = vpop.f32.mrf.mxu1 }
 0x11f   : > { %v5551_v0 = vpop.f32.mrf.mxu0  ;;  %v5553_v58 = vpop.f32.mrf.mxu1 }
 0x121   : > { %v5555_v26 = vpop.f32.mrf.mxu0  ;;  %v5557_v30 = vpop.f32.mrf.mxu1  ;;  %4551 = vmatmul.mubr.bf16.gmra.mxu1 %v5360_v53  ;;  %4599 = vmatmul.mubr.bf16.gmra.mxu0 %v5156_v8  ;;  %v5576_v8 = vsel %vm1457_vm1, %v2311_v20, %v2312_v4 }
 0x122   : > { %6101 = vst [vmem:[#allocation8_spill] sm:$0xff] %v5557_v30  ;;  %4554 = vmatprep.mubr.bf16.mxu1 %v5369_v24  ;;  %4602 = vmatprep.mubr.bf16.mxu0 %v5443_v12  ;;  %6104 = vst [vmem:[#allocation11_spill] sm:$0xff] %v5576_v8 }
 0x123   : > { %v5565_v55 = vpop.f32.mrf.mxu0  ;;  %v5567_v33 = vpop.f32.mrf.mxu1 }
 0x124   : > { %6102 = vst [vmem:[#allocation9_spill] sm:$0xff] %v5567_v33 }
 0x125   : > { %v5569_v18 = vpop.f32.mrf.mxu0  ;;  %v5571_v40 = vpop.f32.mrf.mxu1 }
 0x126   : > { %6103 = vst [vmem:[#allocation10_spill] sm:$0xff] %v5571_v40 }
 0x127   : > { %v5578_v48 = vpop.f32.mrf.mxu0  ;;  %v5580_v12 = vpop.f32.mrf.mxu1 }
 0x128   : > { %6105 = vst [vmem:[#allocation12_spill] sm:$0xff] %v5580_v12 }
 0x129   : > { %v5582_v57 = vpop.f32.mrf.mxu0  ;;  %v5584_v5 = vpop.f32.mrf.mxu1  ;;  %4555 = vmatmul.mubr.bf16.gmra.mxu1 %v5576_v8  ;;  %4603 = vmatmul.mubr.bf16.gmra.mxu0 %v5573_v59 }
 0x12a   : > { %6106 = vst [vmem:[#allocation13_spill] sm:$0xff] %v5584_v5  ;;  %4622 = vmatprep.mubr.bf16.mxu1 %v5087_v13  ;;  %4670 = vmatprep.mubr.bf16.mxu0 %v5231_v22 }
 0x12b   : > { %v5590_v7 = vpop.f32.mrf.mxu0  ;;  %v5592_v2 = vpop.f32.mrf.mxu1 }
 0x12c   : > { %6107 = vst [vmem:[#allocation14_spill] sm:$0xff] %v5592_v2 }
 0x12d   : > { %v5594_v19 = vpop.f32.mrf.mxu0  ;;  %v5596_v20 = vpop.f32.mrf.mxu1 }
 0x12e   : > { %6108 = vst [vmem:[#allocation15_spill] sm:$0xff] %v5596_v20 }
 0x12f   : > { %v5598_v4 = vpop.f32.mrf.mxu0  ;;  %v5600_v41 = vpop.f32.mrf.mxu1 }
 0x130   : > { %6109 = vst [vmem:[#allocation16_spill] sm:$0xff] %v5600_v41 }
 0x131   : > { %v4336_v17 = vpop.f32.mrf.mxu1  ;;  %v4384_v5 = vpop.f32.mrf.mxu0  ;;  %4623 = vmatmul.mubr.bf16.vlgmr.msra.gmra.mxu1 %v5104_v21  ;;  %4671 = vmatmul.mubr.bf16.vlgmr.msra.gmra.mxu0 %v5251_v56 }
 0x132   : > { %v1307_v13 = vadd.f32 %v4336_v17, %v4288_v34  ;;  %4626 = vmatprep.mubr.bf16.mxu1 %v5121_v63  ;;  %4674 = vmatprep.mubr.bf16.mxu0 %v5254_v36 }
 0x133   : > { %v1298_v22 = vpop.f32.mrf.mxu1  ;;  %v1621_v2 = vpop.f32.mrf.mxu0 }
 0x134   : > { %v5606_v12 = vadd.f32 %v4384_v5, %v1307_v13  ;;  %v1299_v20 = vadd.f32 %v1298_v22, %v1089_v25 }
 0x135   : > { %v4337_v40 = vpop.f32.mrf.mxu1  ;;  %v4385_v33 = vpop.f32.mrf.mxu0 }
 0x136   : > { %v5608_v8 = vadd.f32 %v1621_v2, %v1299_v20  ;;  %v1310_v41 = vadd.f32 %v4337_v40, %v4289_v50 }
 0x137   : > { %v1301_v46 = vpop.f32.mrf.mxu1  ;;  %v1624_v30 = vpop.f32.mrf.mxu0 }
 0x138   : > { %v5610_v21 = vadd.f32 %v4385_v33, %v1310_v41  ;;  %v1302_v56 = vadd.f32 %v1301_v46, %v1092_v52 }
 0x139   : > { %v4340_v34 = vpop.f32.mrf.mxu1  ;;  %v4388_v17 = vpop.f32.mrf.mxu0  ;;  %4627 = vmatmul.mubr.bf16.gmra.mxu1 %v5170_v47  ;;  %4675 = vmatmul.mubr.bf16.gmra.mxu0 %v5277_v9 }
 0x13a   : > { %v5614_v63 = vadd.f32 %v1624_v30, %v1302_v56  ;;  %v1323_v36 = vadd.f32 %v4340_v34, %v5535_v61  ;;  %4630 = vmatprep.mubr.bf16.mxu1 %v5183_v45  ;;  %4678 = vmatprep.mubr.bf16.mxu0 %v5280_v60 }
 0x13b   : > { %v1314_v25 = vpop.f32.mrf.mxu1  ;;  %v1637_v50 = vpop.f32.mrf.mxu0 }
 0x13c   : > { %v5619_v40 = vadd.f32 %v4388_v17, %v1323_v36  ;;  %v1315_v46 = vadd.f32 %v1314_v25, %v5543_v11 }
 0x13d   : > { %v4341_v52 = vpop.f32.mrf.mxu1  ;;  %v4389_v33 = vpop.f32.mrf.mxu0 }
 0x13e   : > { %v5622_v5 = vadd.f32 %v1637_v50, %v1315_v46  ;;  %v1326_v47 = vadd.f32 %v4341_v52, %v5547_v10 }
 0x13f   : > { %v1317_v9 = vpop.f32.mrf.mxu1  ;;  %v1640_v30 = vpop.f32.mrf.mxu0 }
 0x140   : > { %v5625_v2 = vadd.f32 %v4389_v33, %v1326_v47  ;;  %v1318_v45 = vadd.f32 %v1317_v9, %v5551_v0 }
 0x141   : > { %v4344_v61 = vpop.f32.mrf.mxu1  ;;  %v4392_v60 = vpop.f32.mrf.mxu0  ;;  %4631 = vmatmul.mubr.bf16.gmra.mxu1 %v5199_v35  ;;  %4679 = vmatmul.mubr.bf16.gmra.mxu0 %v5303_v32 }
 0x142   : > { %v5630_v20 = vadd.f32 %v1640_v30, %v1318_v45  ;;  %v1339_v11 = vadd.f32 %v4344_v61, %v5555_v26  ;;  %4634 = vmatprep.mubr.bf16.mxu1 %v5010_v38  ;;  %4682 = vmatprep.mubr.bf16.mxu0 %v5309_v3 }
 0x143   : > { %v1330_v10 = vpop.f32.mrf.mxu1  ;;  %v1653_v41 = vpop.f32.mrf.mxu0 }
 0x144   : > { %v5635_v13 = vadd.f32 %v4392_v60, %v1339_v11  ;;  %v1331_v0 = vadd.f32 %v1330_v10, %v5565_v55 }
 0x145   : > { %v4345_v22 = vpop.f32.mrf.mxu1  ;;  %v4393_v56 = vpop.f32.mrf.mxu0 }
 0x146   : > { %v5638_v34 = vadd.f32 %v1653_v41, %v1331_v0  ;;  %v1342_v35 = vadd.f32 %v4345_v22, %v5569_v18 }
 0x147   : > { %v1333_v32 = vpop.f32.mrf.mxu1  ;;  %v1656_v17 = vpop.f32.mrf.mxu0 }
 0x148   : > { %v5641_v36 = vadd.f32 %v4393_v56, %v1342_v35  ;;  %v1334_v38 = vadd.f32 %v1333_v32, %v5578_v48  ;;  %v2834_v35 = vshll.u32 %v5573_v59, 16 }
 0x149   : > { %v4348_v26 = vpop.f32.mrf.mxu1  ;;  %v4396_v3 = vpop.f32.mrf.mxu0  ;;  %4635 = vmatmul.mubr.bf16.gmra.mxu1 %v5047_v16  ;;  %4683 = vmatmul.mubr.bf16.gmra.mxu0 %v5329_v29 }
 0x14a   : > { %v5646_v25 = vadd.f32 %v1656_v17, %v1334_v38  ;;  %v1355_v55 = vadd.f32 %v4348_v26, %v5582_v57  ;;  %4638 = vmatprep.mubr.bf16.mxu1 %v6098_v62  ;;  %4686 = vmatprep.mubr.bf16.mxu0 %v5332_v54 }
 0x14b   : > { %v1346_v18 = vpop.f32.mrf.mxu1  ;;  %v1669_v50 = vpop.f32.mrf.mxu0 }
 0x14c   : > { %v5651_v46 = vadd.f32 %v4396_v3, %v1355_v55  ;;  %v1347_v48 = vadd.f32 %v1346_v18, %v5590_v7  ;;  %v2836_v55 = vrot.slane %v2834_v35, 1 }
 0x14d   : > { %v4349_v52 = vpop.f32.mrf.mxu1  ;;  %v4397_v33 = vpop.f32.mrf.mxu0 }
 0x14e   : > { %v5654_v47 = vadd.f32 %v1669_v50, %v1347_v48  ;;  %v1358_v16 = vadd.f32 %v4349_v52, %v5594_v19 }
 0x14f   : > { %v1349_v29 = vpop.f32.mrf.mxu1  ;;  %v1672_v9 = vpop.f32.mrf.mxu0 }
 0x150   : > { %v5657_v30 = vadd.f32 %v4397_v33, %v1358_v16  ;;  %v1350_v62 = vadd.f32 %v1349_v29, %v5598_v4 }
 0x151   : > { %v4352_v57 = vpop.f32.mrf.mxu1  ;;  %v4400_v54 = vpop.f32.mrf.mxu0  ;;  %4639 = vmatmul.mubr.bf16.gmra.mxu1 %v6099_v14  ;;  %4687 = vmatmul.mubr.bf16.gmra.mxu0 %v5343_v1  ;;  %v728_v14 = vld [vmem:[#allocation2 + $0x148] sm:$0x3] }
 0x152   : > { %v5662_v45 = vadd.f32 %v1672_v9, %v1350_v62  ;;  %v1371_v7 = vadd.f32 %v4352_v57, %v5523_v27  ;;  %4642 = vmatprep.mubr.bf16.mxu1 %v5144_v44  ;;  %4690 = vmatprep.mubr.bf16.mxu0 %v5346_v49  ;;  %v6110_v62 = vld [vmem:[#allocation8_spill] sm:$0xff] }
 0x153   : > { %v1362_v19 = vpop.f32.mrf.mxu1  ;;  %v1685_v61 = vpop.f32.mrf.mxu0 }
 0x154   : > { %v5667_v60 = vadd.f32 %v4400_v54, %v1371_v7  ;;  %v1363_v4 = vadd.f32 %v1362_v19, %v5529_v37  ;;  %v764_v37 = vpack.c.bf16 %v728_v14, %v728_v14  ;;  %v6111_v54 = vld [vmem:[#allocation7_spill] sm:$0xff]  ;;  %v3104_v7 = vrot.slane %v5573_v59, 1  ;;  %v6114_v14 = vld [vmem:[#allocation10_spill] sm:$0xff] }
 0x155   : > { %v4353_v11 = vpop.f32.mrf.mxu1  ;;  %v4401_v10 = vpop.f32.mrf.mxu0 }
 0x156   : > { %v5670_v41 = vadd.f32 %v1685_v61, %v1363_v4  ;;  %v1374_v1 = vadd.f32 %v4353_v11, %v5531_v31  ;;  %v2839_v18 = vshll.u32 %v764_v37, 16  ;;  %v3105_v19 = vrot.slane %v764_v37, 1  ;;  %v6115_v37 = vld [vmem:[#allocation12_spill] sm:$0xff] }
 0x157   : > { %v1365_v0 = vpop.f32.mrf.mxu1  ;;  %v1688_v22 = vpop.f32.mrf.mxu0 }
 0x158   : > { %v5673_v27 = vadd.f32 %v4401_v10, %v1374_v1  ;;  %v1366_v44 = vadd.f32 %v1365_v0, %v5533_v28  ;;  %v2841_v29 = vrot.slane %v2839_v18, 1  ;;  %v6117_v18 = vld [vmem:[#allocation14_spill] sm:$0xff] }
 0x159   : > { %v4356_v49 = vpop.f32.mrf.mxu1  ;;  %v4404_v56 = vpop.f32.mrf.mxu0  ;;  %4643 = vmatmul.mubr.bf16.gmra.mxu1 %v5173_v42  ;;  %4691 = vmatmul.mubr.bf16.gmra.mxu0 %v5357_v39  ;;  %v2832_v39 = vshrl.u32 %v5573_v59, 16 }
 0x15a   : > { %v5679_v32 = vadd.f32 %v1688_v22, %v1366_v44  ;;  %v1387_v31 = vadd.f32 %v4356_v49, %v5537_v43  ;;  %4646 = vmatprep.mubr.bf16.mxu1 %v5186_v6  ;;  %4694 = vmatprep.mubr.bf16.mxu0 %v5360_v53  ;;  %v3106_v44 = vsel %vm1457_vm1, %v3104_v7, %v3105_v19 }
 0x15b   : > { %v1378_v17 = vpop.f32.mrf.mxu1  ;;  %v1701_v38 = vpop.f32.mrf.mxu0 }
 0x15c   : > { %v5684_v28 = vadd.f32 %v4404_v56, %v1387_v31  ;;  %v1379_v26 = vadd.f32 %v1378_v17, %v5545_v51  ;;  %v2837_v51 = vor.u32 %v2836_v55, %v2832_v39 }
 0x15d   : > { %v4357_v42 = vpop.f32.mrf.mxu1  ;;  %v4405_v3 = vpop.f32.mrf.mxu0 }
 0x15e   : > { %v5688_v50 = vadd.f32 %v1701_v38, %v1379_v26  ;;  %v1390_v43 = vadd.f32 %v4357_v42, %v5549_v15  ;;  %v6112_v15 = vld [vmem:[#allocation11_spill] sm:$0xff]  ;;  %v2842_v22 = vsel %vm781_vm0, %v2837_v51, %v2841_v29  ;;  %v6116_v26 = vld [vmem:[#allocation13_spill] sm:$0xff] }
 0x15f   : > { %v1381_v48 = vpop.f32.mrf.mxu1  ;;  %v1704_v6 = vpop.f32.mrf.mxu0 }
 0x160   : > { %v5691_v52 = vadd.f32 %v4405_v3, %v1390_v43  ;;  %v1382_v53 = vadd.f32 %v1381_v48, %v5553_v58 }
 0x161   : > { %v4360_v33 = vpop.f32.mrf.mxu1  ;;  %v4408_v16 = vpop.f32.mrf.mxu0  ;;  %4647 = vmatmul.mubr.bf16.gmra.mxu1 %v5202_v23  ;;  %4695 = vmatmul.mubr.bf16.gmra.mxu0 %v5369_v24  ;;  %v6113_v23 = vld [vmem:[#allocation9_spill] sm:$0xff] }
 0x162   : > { %v5696_v9 = vadd.f32 %v1704_v6, %v1382_v53  ;;  %v1403_v57 = vadd.f32 %v4360_v33, %v6110_v62  ;;  %4650 = vmatprep.mubr.bf16.mxu1 %v6111_v54  ;;  %4698 = vmatprep.mubr.bf16.mxu0 %v6112_v15  ;;  %v6118_v33 = vld [vmem:[#allocation15_spill] sm:$0xff] }
 0x163   : > { %v1394_v58 = vpop.f32.mrf.mxu1  ;;  %v1717_v61 = vpop.f32.mrf.mxu0 }
 0x164   : > { %v5702_v4 = vadd.f32 %v4408_v16, %v1403_v57  ;;  %v1395_v11 = vadd.f32 %v1394_v58, %v6113_v23  ;;  %v6119_v57 = vld [vmem:[#allocation16_spill] sm:$0xff] }
 0x165   : > { %v4361_v24 = vpop.f32.mrf.mxu1  ;;  %v4409_v10 = vpop.f32.mrf.mxu0 }
 0x166   : > { %v5705_v1 = vadd.f32 %v1717_v61, %v1395_v11  ;;  %v1406_v0 = vadd.f32 %v4361_v24, %v6114_v14 }
 0x167   : > { %v1397_v49 = vpop.f32.mrf.mxu1  ;;  %v1720_v56 = vpop.f32.mrf.mxu0 }
 0x168   : > { %v5710_v59 = vadd.f32 %v4409_v10, %v1406_v0  ;;  %v1398_v35 = vadd.f32 %v1397_v49, %v6115_v37 }
 0x169   : > { %v4364_v31 = vpop.f32.mrf.mxu1  ;;  %v4412_v17 = vpop.f32.mrf.mxu0  ;;  %4651 = vmatmul.mubr.bf16.gmra.mxu1 %v2842_v22  ;;  %4699 = vmatmul.mubr.bf16.gmra.mxu0 %v3106_v44 }
 0x16a   : > { %v5713_v38 = vadd.f32 %v1720_v56, %v1398_v35  ;;  %v1419_v42 = vadd.f32 %v4364_v31, %v6116_v26 }
 0x16b   : > { %v1410_v3 = vpop.f32.mrf.mxu1  ;;  %v1733_v39 = vpop.f32.mrf.mxu0 }
 0x16c   : > { %v5716_v55 = vadd.f32 %v4412_v17, %v1419_v42  ;;  %v1411_v43 = vadd.f32 %v1410_v3, %v6117_v18 }
 0x16d   : > { %v4365_v48 = vpop.f32.mrf.mxu1  ;;  %v4413_v6 = vpop.f32.mrf.mxu0 }
 0x16e   : > { %v5719_v53 = vadd.f32 %v1733_v39, %v1411_v43  ;;  %v1422_v16 = vadd.f32 %v4365_v48, %v6118_v33 }
 0x16f   : > { %v1413_v51 = vpop.f32.mrf.mxu1  ;;  %v1736_v29 = vpop.f32.mrf.mxu0 }
 0x170   : > { %v5722_v62 = vadd.f32 %v4413_v6, %v1422_v16  ;;  %v1414_v54 = vadd.f32 %v1413_v51, %v6119_v57 }
 0x171   : > { %v4432_v15 = vpop.f32.mrf.mxu1  ;;  %v4480_v7 = vpop.f32.mrf.mxu0 }
 0x172   : > { %v5725_v19 = vadd.f32 %v1736_v29, %v1414_v54  ;;  %v2008_v58 = vadd.f32 %v4432_v15, %v5606_v12 }
 0x173   : > { %v1879_v61 = vpop.f32.mrf.mxu1  ;;  %v2150_v23 = vpop.f32.mrf.mxu0 }
 0x174   : > { %v5728_v11 = vadd.f32 %v4480_v7, %v2008_v58  ;;  %v2006_v24 = vadd.f32 %v1879_v61, %v5608_v8 }
 0x175   : > { %v4433_v10 = vpop.f32.mrf.mxu1  ;;  %v4481_v14 = vpop.f32.mrf.mxu0 }
 0x176   : > { %v5731_v0 = vadd.f32 %v2150_v23, %v2006_v24  ;;  %v2009_v22 = vadd.f32 %v4433_v10, %v5610_v21 }
 0x177   : > { %v1882_v44 = vpop.f32.mrf.mxu1  ;;  %v2153_v49 = vpop.f32.mrf.mxu0 }
 0x178   : > { %v5734_v56 = vadd.f32 %v4481_v14, %v2009_v22  ;;  %v2007_v37 = vadd.f32 %v1882_v44, %v5614_v63 }
 0x179   : > { %v4436_v35 = vpop.f32.mrf.mxu1  ;;  %v4484_v12 = vpop.f32.mrf.mxu0 }
 0x17a   : > { %v5737_v31 = vadd.f32 %v2153_v49, %v2007_v37  ;;  %v2012_v17 = vadd.f32 %v4436_v35, %v5619_v40 }
 0x17b   : > { %v1895_v26 = vpop.f32.mrf.mxu1  ;;  %v2166_v8 = vpop.f32.mrf.mxu0 }
 0x17c   : > { %v5740_v42 = vadd.f32 %v4484_v12, %v2012_v17  ;;  %v2010_v3 = vadd.f32 %v1895_v26, %v5622_v5 }
 0x17d   : > { %v4437_v39 = vpop.f32.mrf.mxu1  ;;  %v4485_v21 = vpop.f32.mrf.mxu0 }
 0x17e   : > { %v5743_v18 = vadd.f32 %v2166_v8, %v2010_v3  ;;  %v2013_v43 = vadd.f32 %v4437_v39, %v5625_v2 }
 0x17f   : > { %v1898_v48 = vpop.f32.mrf.mxu1  ;;  %v2169_v63 = vpop.f32.mrf.mxu0 }
 0x180   : > { %v5746_v6 = vadd.f32 %v4485_v21, %v2013_v43  ;;  %v2011_v33 = vadd.f32 %v1898_v48, %v5630_v20 }
 0x181   : > { %v4440_v16 = vpop.f32.mrf.mxu1  ;;  %v4488_v40 = vpop.f32.mrf.mxu0 }
 0x182   : > { %v5749_v51 = vadd.f32 %v2169_v63, %v2011_v33  ;;  %v2016_v29 = vadd.f32 %v4440_v16, %v5635_v13 }
 0x183   : > { %v1911_v57 = vpop.f32.mrf.mxu1  ;;  %v2182_v5 = vpop.f32.mrf.mxu0 }
 0x184   : > { %v5752_v54 = vadd.f32 %v4488_v40, %v2016_v29  ;;  %v2014_v15 = vadd.f32 %v1911_v57, %v5638_v34 }
 0x185   : > { %v4441_v7 = vpop.f32.mrf.mxu1  ;;  %v4489_v2 = vpop.f32.mrf.mxu0 }
 0x186   : > { %v5755_v58 = vadd.f32 %v2182_v5, %v2014_v15  ;;  %v2017_v61 = vadd.f32 %v4441_v7, %v5641_v36 }
 0x187   : > { %v1914_v23 = vpop.f32.mrf.mxu1  ;;  %v2185_v20 = vpop.f32.mrf.mxu0 }
 0x188   : > { %v5758_v24 = vadd.f32 %v4489_v2, %v2017_v61  ;;  %v2015_v10 = vadd.f32 %v1914_v23, %v5646_v25 }
 0x189   : > { %v4444_v14 = vpop.f32.mrf.mxu1  ;;  %v4492_v13 = vpop.f32.mrf.mxu0 }
 0x18a   : > { %v5761_v22 = vadd.f32 %v2185_v20, %v2015_v10  ;;  %v2020_v44 = vadd.f32 %v4444_v14, %v5651_v46 }
 0x18b   : > { %v1927_v49 = vpop.f32.mrf.mxu1  ;;  %v2198_v34 = vpop.f32.mrf.mxu0 }
 0x18c   : > { %v5764_v37 = vadd.f32 %v4492_v13, %v2020_v44  ;;  %v2018_v35 = vadd.f32 %v1927_v49, %v5654_v47 }
 0x18d   : > { %v4445_v12 = vpop.f32.mrf.mxu1  ;;  %v4493_v36 = vpop.f32.mrf.mxu0 }
 0x18e   : > { %v5767_v17 = vadd.f32 %v2198_v34, %v2018_v35  ;;  %v2021_v26 = vadd.f32 %v4445_v12, %v5657_v30 }
 0x18f   : > { %v1930_v8 = vpop.f32.mrf.mxu1  ;;  %v2201_v25 = vpop.f32.mrf.mxu0 }
 0x190   : > { %v5770_v3 = vadd.f32 %v4493_v36, %v2021_v26  ;;  %v2019_v39 = vadd.f32 %v1930_v8, %v5662_v45 }
 0x191   : > { %v4448_v21 = vpop.f32.mrf.mxu1  ;;  %v4496_v46 = vpop.f32.mrf.mxu0 }
 0x192   : > { %v5773_v43 = vadd.f32 %v2201_v25, %v2019_v39  ;;  %v2024_v48 = vadd.f32 %v4448_v21, %v5667_v60 }
 0x193   : > { %v1943_v63 = vpop.f32.mrf.mxu1  ;;  %v2214_v47 = vpop.f32.mrf.mxu0 }
 0x194   : > { %v5776_v33 = vadd.f32 %v4496_v46, %v2024_v48  ;;  %v2022_v16 = vadd.f32 %v1943_v63, %v5670_v41 }
 0x195   : > { %v4449_v40 = vpop.f32.mrf.mxu1  ;;  %v4497_v30 = vpop.f32.mrf.mxu0 }
 0x196   : > { %v5779_v29 = vadd.f32 %v2214_v47, %v2022_v16  ;;  %v2025_v57 = vadd.f32 %v4449_v40, %v5673_v27 }
 0x197   : > { %v1946_v5 = vpop.f32.mrf.mxu1  ;;  %v2217_v45 = vpop.f32.mrf.mxu0 }
 0x198   : > { %v5782_v15 = vadd.f32 %v4497_v30, %v2025_v57  ;;  %v2023_v7 = vadd.f32 %v1946_v5, %v5679_v32 }
 0x199   : > { %v4452_v2 = vpop.f32.mrf.mxu1  ;;  %v4500_v60 = vpop.f32.mrf.mxu0 }
 0x19a   : > { %6120 = vst [vmem:[#allocation8_spill] sm:$0xff] %v5782_v15  ;;  %v5785_v61 = vadd.f32 %v2217_v45, %v2023_v7  ;;  %v2028_v23 = vadd.f32 %v4452_v2, %v5684_v28 }
 0x19b   : > { %v1959_v20 = vpop.f32.mrf.mxu1  ;;  %v2230_v41 = vpop.f32.mrf.mxu0 }
 0x19c   : > { %6121 = vst [vmem:[#allocation7_spill] sm:$0xff] %v5785_v61  ;;  %v5788_v10 = vadd.f32 %v4500_v60, %v2028_v23  ;;  %v2026_v14 = vadd.f32 %v1959_v20, %v5688_v50 }
 0x19d   : > { %v4453_v13 = vpop.f32.mrf.mxu1  ;;  %v4501_v27 = vpop.f32.mrf.mxu0 }
 0x19e   : > { %6122 = vst [vmem:[#allocation11_spill] sm:$0xff] %v5788_v10  ;;  %v5791_v44 = vadd.f32 %v2230_v41, %v2026_v14  ;;  %v2029_v49 = vadd.f32 %v4453_v13, %v5691_v52 }
 0x19f   : > { %v1962_v34 = vpop.f32.mrf.mxu1  ;;  %v2233_v32 = vpop.f32.mrf.mxu0 }
 0x1a0   : > { %6123 = vst [vmem:[#allocation9_spill] sm:$0xff] %v5791_v44  ;;  %v5794_v35 = vadd.f32 %v4501_v27, %v2029_v49  ;;  %v2027_v12 = vadd.f32 %v1962_v34, %v5696_v9 }
 0x1a1   : > { %v4456_v36 = vpop.f32.mrf.mxu1  ;;  %v4504_v28 = vpop.f32.mrf.mxu0 }
 0x1a2   : > { %6124 = vst [vmem:[#allocation10_spill] sm:$0xff] %v5794_v35  ;;  %v5797_v26 = vadd.f32 %v2233_v32, %v2027_v12  ;;  %v2032_v8 = vadd.f32 %v4456_v36, %v5702_v4 }
 0x1a3   : > { %v1975_v25 = vpop.f32.mrf.mxu1  ;;  %v2246_v50 = vpop.f32.mrf.mxu0 }
 0x1a4   : > { %6125 = vst [vmem:[#allocation12_spill] sm:$0xff] %v5797_v26  ;;  %v5800_v39 = vadd.f32 %v4504_v28, %v2032_v8  ;;  %v2030_v21 = vadd.f32 %v1975_v25, %v5705_v1 }
 0x1a5   : > { %v4457_v46 = vpop.f32.mrf.mxu1  ;;  %v4505_v52 = vpop.f32.mrf.mxu0 }
 0x1a6   : > { %6126 = vst [vmem:[#allocation13_spill] sm:$0xff] %v5800_v39  ;;  %v5803_v48 = vadd.f32 %v2246_v50, %v2030_v21  ;;  %v2033_v63 = vadd.f32 %v4457_v46, %v5710_v59 }
 0x1a7   : > { %v1978_v47 = vpop.f32.mrf.mxu1  ;;  %v2249_v9 = vpop.f32.mrf.mxu0 }
 0x1a8   : > { %6127 = vst [vmem:[#allocation14_spill] sm:$0xff] %v5803_v48  ;;  %v5806_v16 = vadd.f32 %v4505_v52, %v2033_v63  ;;  %v2031_v40 = vadd.f32 %v1978_v47, %v5713_v38 }
 0x1a9   : > { %v4460_v30 = vpop.f32.mrf.mxu1  ;;  %v4508_v4 = vpop.f32.mrf.mxu0 }
 0x1aa   : > { %6128 = vst [vmem:[#allocation15_spill] sm:$0xff] %v5806_v16  ;;  %v5809_v57 = vadd.f32 %v2249_v9, %v2031_v40  ;;  %v2036_v5 = vadd.f32 %v4460_v30, %v5716_v55 }
 0x1ab   : > { %v1991_v45 = vpop.f32.mrf.mxu1  ;;  %v2262_v1 = vpop.f32.mrf.mxu0 }
 0x1ac   : > { %6129 = vst [vmem:[#allocation16_spill] sm:$0xff] %v5809_v57  ;;  %v5812_v7 = vadd.f32 %v4508_v4, %v2036_v5  ;;  %v2034_v2 = vadd.f32 %v1991_v45, %v5719_v53 }
 0x1ad   : > { %v4461_v60 = vpop.f32.mrf.mxu1  ;;  %v4509_v59 = vpop.f32.mrf.mxu0 }
 0x1ae   : > { %6130 = vst [vmem:[#allocation17_spill] sm:$0xff] %v5812_v7  ;;  %v5815_v23 = vadd.f32 %v2262_v1, %v2034_v2  ;;  %v2037_v20 = vadd.f32 %v4461_v60, %v5722_v62 }
 0x1af   : > { %v1994_v41 = vpop.f32.mrf.mxu1  ;;  %v2265_v38 = vpop.f32.mrf.mxu0 }
 0x1b0   : > { %6131 = vst [vmem:[#allocation18_spill] sm:$0xff] %v5815_v23  ;;  %v5818_v14 = vadd.f32 %v4509_v59, %v2037_v20  ;;  %v2035_v13 = vadd.f32 %v1994_v41, %v5725_v19 }
 0x1b1   : > { %v4528_v27 = vpop.f32.mrf.mxu1  ;;  %v5821_v55 = vpop.f32.mrf.mxu0 }
 0x1b2   : > { %6132 = vst [vmem:[#allocation19_spill] sm:$0xff] %v5818_v14  ;;  %v5823_v49 = vadd.f32 %v2265_v38, %v2035_v13 }
 0x1b3   : > { %v2414_v34 = vpop.f32.mrf.mxu1  ;;  %v5825_v32 = vpop.f32.mrf.mxu0 }
 0x1b4   : > { %6133 = vst [vmem:[#allocation20_spill] sm:$0xff] %v5823_v49 }
 0x1b5   : > { %v5827_v53 = vpop.f32.mrf.mxu1  ;;  %v5829_v12 = vpop.f32.mrf.mxu0 }
 0x1b7   : > { %v5831_v36 = vpop.f32.mrf.mxu1  ;;  %v5833_v62 = vpop.f32.mrf.mxu0 }
 0x1b9   : > { %v5835_v28 = vpop.f32.mrf.mxu1  ;;  %v5837_v8 = vpop.f32.mrf.mxu0 }
 0x1bb   : > { %v5839_v19 = vpop.f32.mrf.mxu1  ;;  %v5841_v25 = vpop.f32.mrf.mxu0 }
 0x1bd   : > { %v5843_v50 = vpop.f32.mrf.mxu1  ;;  %v5845_v21 = vpop.f32.mrf.mxu0 }
 0x1bf   : > { %v5847_v46 = vpop.f32.mrf.mxu1  ;;  %v5849_v52 = vpop.f32.mrf.mxu0 }
 0x1c1   : > { %v5851_v63 = vpop.f32.mrf.mxu1  ;;  %v5853_v47 = vpop.f32.mrf.mxu0 }
 0x1c3   : > { %v5855_v9 = vpop.f32.mrf.mxu1  ;;  %v5857_v40 = vpop.f32.mrf.mxu0 }
 0x1c5   : > { %v5859_v30 = vpop.f32.mrf.mxu1  ;;  %v5861_v4 = vpop.f32.mrf.mxu0 }
 0x1c7   : > { %v5863_v5 = vpop.f32.mrf.mxu1  ;;  %v5865_v45 = vpop.f32.mrf.mxu0 }
 0x1c9   : > { %v5867_v1 = vpop.f32.mrf.mxu1  ;;  %v5869_v2 = vpop.f32.mrf.mxu0 }
 0x1cb   : > { %v5871_v60 = vpop.f32.mrf.mxu1  ;;  %v5873_v59 = vpop.f32.mrf.mxu0 }
 0x1cd   : > { %v5875_v20 = vpop.f32.mrf.mxu1  ;;  %v5877_v41 = vpop.f32.mrf.mxu0 }
 0x1cf   : > { %v5879_v38 = vpop.f32.mrf.mxu1  ;;  %v5881_v13 = vpop.f32.mrf.mxu0 }
 0x1d1   : > { %v5883_v49 = vpop.f32.mrf.mxu1  ;;  %v5885_v14 = vpop.f32.mrf.mxu0 }
 0x1d3   : > { %v5887_v23 = vpop.f32.mrf.mxu1  ;;  %v5889_v7 = vpop.f32.mrf.mxu0 }
 0x1d4   : > { %6134 = vst [vmem:[#allocation21_spill] sm:$0xff] %v5889_v7 }
 0x1d5   : > { %v5891_v57 = vpop.f32.mrf.mxu1  ;;  %v5893_v16 = vpop.f32.mrf.mxu0 }
 0x1d6   : > { %6135 = vst [vmem:[#allocation22_spill] sm:$0xff] %v5891_v57  ;;  %6136 = vst [vmem:[#allocation23_spill] sm:$0xff] %v5893_v16 }
 0x1d7   : > { %v5895_v48 = vpop.f32.mrf.mxu1  ;;  %v5897_v39 = vpop.f32.mrf.mxu0 }
 0x1d8   : > { %6137 = vst [vmem:[#allocation24_spill] sm:$0xff] %v5895_v48  ;;  %6138 = vst [vmem:[#allocation25_spill] sm:$0xff] %v5897_v39 }
 0x1d9   : > { %v5899_v26 = vpop.f32.mrf.mxu1  ;;  %v5901_v35 = vpop.f32.mrf.mxu0 }
 0x1da   : > { %6139 = vst [vmem:[#allocation26_spill] sm:$0xff] %v5899_v26  ;;  %6140 = vst [vmem:[#allocation27_spill] sm:$0xff] %v5901_v35 }
 0x1db   : > { %v5903_v44 = vpop.f32.mrf.mxu1  ;;  %v5905_v10 = vpop.f32.mrf.mxu0 }
 0x1dc   : > { %6141 = vst [vmem:[#allocation28_spill] sm:$0xff] %v5903_v44  ;;  %6142 = vst [vmem:[#allocation29_spill] sm:$0xff] %v5905_v10 }
 0x1dd   : > { %v5907_v61 = vpop.f32.mrf.mxu1  ;;  %v5909_v15 = vpop.f32.mrf.mxu0 }
 0x1de   : > { %6143 = vst [vmem:[#allocation30_spill] sm:$0xff] %v5907_v61  ;;  %6144 = vst [vmem:[#allocation31_spill] sm:$0xff] %v5909_v15 }
 0x1df   : > { %v5911_v7 = vpop.f32.mrf.mxu1  ;;  %v5913_v57 = vpop.f32.mrf.mxu0 }
 0x1e0   : > { %6145 = vst [vmem:[#allocation32_spill] sm:$0xff] %v5911_v7  ;;  %6146 = vst [vmem:[#allocation33_spill] sm:$0xff] %v5913_v57 }
 0x1e1   : > { %v5915_v16 = vpop.f32.mrf.mxu1  ;;  %v5917_v48 = vpop.f32.mrf.mxu0 }
 0x1e2   : > { %6147 = vst [vmem:[#allocation34_spill] sm:$0xff] %v5915_v16  ;;  %6148 = vst [vmem:[#allocation35_spill] sm:$0xff] %v5917_v48  ;;  %v2543_v48 = vadd.f32 %v4528_v27, %v5728_v11  ;;  %v2542_v27 = vadd.f32 %v5831_v36, %v5737_v31 }
 0x1e3   : > { %v5919_v39 = vpop.f32.mrf.mxu1  ;;  %v5921_v26 = vpop.f32.mrf.mxu0 }
 0x1e4   : > { %6149 = vst [vmem:[#allocation36_spill] sm:$0xff] %v5919_v39  ;;  %6150 = vst [vmem:[#allocation37_spill] sm:$0xff] %v5921_v26 }
 0x1e5   : > { %v5923_v35 = vpop.f32.mrf.mxu1  ;;  %v5925_v44 = vpop.f32.mrf.mxu0 }
 0x1e6   : > { %6151 = vst [vmem:[#allocation38_spill] sm:$0xff] %v5923_v35  ;;  %6152 = vst [vmem:[#allocation39_spill] sm:$0xff] %v5925_v44  ;;  %v2541_v44 = vadd.f32 %v2414_v34, %v5731_v0 }
 0x1e7   : > { %v5927_v10 = vpop.f32.mrf.mxu1  ;;  %v5929_v61 = vpop.f32.mrf.mxu0 }
 0x1e8   : > { %6153 = vst [vmem:[#allocation40_spill] sm:$0xff] %v5927_v10  ;;  %6154 = vst [vmem:[#allocation41_spill] sm:$0xff] %v5929_v61  ;;  %v2801_v61 = vadd.f32 %v5821_v55, %v2543_v48  ;;  %v2799_v11 = vadd.f32 %v5825_v32, %v2541_v44  ;;  %v2547_v48 = vadd.f32 %v5835_v28, %v5740_v42 }
 0x1e9   : > { %v5931_v15 = vpop.f32.mrf.mxu1  ;;  %v5933_v7 = vpop.f32.mrf.mxu0  ;;  %v2545_v44 = vadd.f32 %v5839_v19, %v5743_v18  ;;  %v2551_v28 = vadd.f32 %v5851_v63, %v5752_v54 }
 0x1ea   : > { %6155 = vst [vmem:[#allocation42_spill] sm:$0xff] %v5933_v7  ;;  %v2544_v7 = vadd.f32 %v5827_v53, %v5734_v56 }
 0x1eb   : > { %v5935_v57 = vpop.f32.mrf.mxu1  ;;  %v5937_v16 = vpop.f32.mrf.mxu0  ;;  %v2803_v18 = vadd.f32 %v5841_v25, %v2545_v44  ;;  %v2809_v63 = vadd.f32 %v5853_v47, %v2551_v28  ;;  %v2552_v44 = vadd.f32 %v5859_v30, %v5758_v24 }
 0x1ec   : > { %6156 = vst [vmem:[#allocation43_spill] sm:$0xff] %v5935_v57  ;;  %6157 = vst [vmem:[#allocation44_spill] sm:$0xff] %v5937_v16  ;;  %v2802_v34 = vadd.f32 %v5829_v12, %v2544_v7  ;;  %v2805_v7 = vadd.f32 %v5837_v8, %v2547_v48 }
 0x1ed   : > { %v5940_v39 = vpop.f32.mrf.mxu1  ;;  %v5942_v26 = vpop.f32.mrf.mxu0 }
 0x1ee   : > { %6158 = vst [vmem:[#allocation45_spill] sm:$0xff] %v5940_v39  ;;  %6159 = vst [vmem:[#allocation46_spill] sm:$0xff] %v5942_v26 }
 0x1ef   : > { %v5945_v35 = vpop.f32.mrf.mxu1  ;;  %v5947_v10 = vpop.f32.mrf.mxu0 }
 0x1f0   : > { %6160 = vst [vmem:[#allocation47_spill] sm:$0xff] %v5945_v35  ;;  %6161 = vst [vmem:[#allocation48_spill] sm:$0xff] %v5947_v10  ;;  %v2800_v35 = vadd.f32 %v5833_v62, %v2542_v27 }
 0x1f1   : > { %v4624_v57 = vpop.f32.mrf.mxu1  ;;  %v4672_v16 = vpop.f32.mrf.mxu0 }
 0x1f2   : > { %v3072_v26 = vadd.f32 %v4624_v57, %v2801_v61 }
 0x1f3   : > { %v2943_v39 = vpop.f32.mrf.mxu1  ;;  %v3207_v0 = vpop.f32.mrf.mxu0 }
 0x1f4   : > { %v3336_v55 = vadd.f32 %v4672_v16, %v3072_v26  ;;  %v3070_v10 = vadd.f32 %v2943_v39, %v2799_v11  ;;  %v2548_v39 = vadd.f32 %v5843_v50, %v5746_v6  ;;  %v2546_v16 = vadd.f32 %v5847_v46, %v5749_v51 }
 0x1f5   : > { %v4625_v56 = vpop.f32.mrf.mxu1  ;;  %v4673_v53 = vpop.f32.mrf.mxu0 }
 0x1f6   : > { %3368 = vst [vmem:[%s4904_s30 + $0x10] sm:$0xff] %v3336_v55  ;;  %v3334_v31 = vadd.f32 %v3207_v0, %v3070_v10  ;;  %v3073_v61 = vadd.f32 %v4625_v56, %v2802_v34  ;;  %v2806_v51 = vadd.f32 %v5845_v21, %v2548_v39  ;;  %v2804_v46 = vadd.f32 %v5849_v52, %v2546_v16 }
 0x1f7   : > { %v2946_v57 = vpop.f32.mrf.mxu1  ;;  %v3210_v32 = vpop.f32.mrf.mxu0  ;;  %v3437_v34 = vmul.f32 %v3336_v55, %v3336_v55 }
 0x1f8   : > { %3366 = vst [vmem:[%s4904_s30] sm:$0xff] %v3334_v31  ;;  %v3337_v42 = vadd.f32 %v4673_v53, %v3073_v61  ;;  %v3071_v26 = vadd.f32 %v2946_v57, %v2800_v35  ;;  %v3435_v8 = vmul.f32 %v3334_v31, %v3334_v31  ;;  %v2549_v53 = vadd.f32 %v5855_v9, %v5755_v58 }
 0x1f9   : > { %v4628_v12 = vpop.f32.mrf.mxu1  ;;  %v4676_v36 = vpop.f32.mrf.mxu0 }
 0x1fa   : > { %3369 = vst [vmem:[%s4904_s30 + $0x18] sm:$0xff] %v3337_v42  ;;  %v3335_v10 = vadd.f32 %v3210_v32, %v3071_v26  ;;  %v3076_v62 = vadd.f32 %v4628_v12, %v2805_v7  ;;  %v3438_v52 = vmul.f32 %v3337_v42, %v3337_v42  ;;  %v2550_v7 = vadd.f32 %v5863_v5, %v5761_v22 }
 0x1fb   : > { %v2959_v19 = vpop.f32.mrf.mxu1  ;;  %v3223_v35 = vpop.f32.mrf.mxu0  ;;  %v2807_v12 = vadd.f32 %v5857_v40, %v2549_v53 }
 0x1fc   : > { %3367 = vst [vmem:[%s4904_s30 + $0x8] sm:$0xff] %v3335_v10  ;;  %v3398_v11 = vadd.f32 %v3335_v10, %v3334_v31  ;;  %v3436_v6 = vmul.f32 %v3335_v10, %v3335_v10  ;;  %v3340_v50 = vadd.f32 %v4676_v36, %v3076_v62  ;;  %v3074_v27 = vadd.f32 %v2959_v19, %v2803_v18 }
 0x1fd   : > { %v4629_v25 = vpop.f32.mrf.mxu1  ;;  %v4677_v0 = vpop.f32.mrf.mxu0  ;;  %v2810_v36 = vadd.f32 %v5861_v4, %v2552_v44  ;;  %v2808_v28 = vadd.f32 %v5865_v45, %v2550_v7  ;;  %v2553_v19 = vadd.f32 %v5871_v60, %v5767_v17  ;;  %v2557_v7 = vadd.f32 %v5887_v23, %v5779_v29 }
 0x1fe   : > { %v3399_v48 = vadd.f32 %v3398_v11, %v3336_v55  ;;  %v3467_v56 = vadd.f32 %v3436_v6, %v3435_v8  ;;  %3372 = vst [vmem:[%s4904_s30 + $0x30] sm:$0xff] %v3340_v50  ;;  %v3338_v54 = vadd.f32 %v3223_v35, %v3074_v27  ;;  %v3077_v31 = vadd.f32 %v4629_v25, %v2806_v51 }
 0x1ff   : > { %v2962_v21 = vpop.f32.mrf.mxu1  ;;  %v3226_v61 = vpop.f32.mrf.mxu0  ;;  %v2555_v8 = vadd.f32 %v5867_v1, %v5764_v37  ;;  %v3441_v11 = vmul.f32 %v3340_v50, %v3340_v50 }
 0x200   : > { %v3468_v57 = vadd.f32 %v3467_v56, %v3437_v34  ;;  %3370 = vst [vmem:[%s4904_s30 + $0x20] sm:$0xff] %v3338_v54  ;;  %v3400_v32 = vadd.f32 %v3399_v48, %v3337_v42  ;;  %v3075_v55 = vadd.f32 %v2962_v21, %v2804_v46  ;;  %v3439_v47 = vmul.f32 %v3338_v54, %v3338_v54 }
 0x201   : > { %v3341_v26 = vadd.f32 %v4677_v0, %v3077_v31  ;;  %v4632_v39 = vpop.f32.mrf.mxu1  ;;  %v4680_v58 = vpop.f32.mrf.mxu0  ;;  %v2556_v46 = vadd.f32 %v5875_v20, %v5770_v3  ;;  %v2813_v48 = vadd.f32 %v5869_v2, %v2555_v8  ;;  %v2811_v56 = vadd.f32 %v5873_v59, %v2553_v19 }
 0x202   : > { %v3401_v9 = vadd.f32 %v3400_v32, %v3338_v54  ;;  %v3469_v16 = vadd.f32 %v3468_v57, %v3438_v52  ;;  %v3339_v24 = vadd.f32 %v3226_v61, %v3075_v55  ;;  %v3080_v30 = vadd.f32 %v4632_v39, %v2809_v63 }
 0x203   : > { %3373 = vst [vmem:[%s4904_s30 + $0x38] sm:$0xff] %v3341_v26  ;;  %v2975_v18 = vpop.f32.mrf.mxu1  ;;  %v3239_v42 = vpop.f32.mrf.mxu0  ;;  %v3442_v25 = vmul.f32 %v3341_v26, %v3341_v26  ;;  %v2814_v44 = vadd.f32 %v5877_v41, %v2556_v46  ;;  %v2554_v31 = vadd.f32 %v5879_v38, %v5773_v43  ;;  %v2559_v21 = vadd.f32 %v5883_v49, %v5776_v33 }
 0x204   : > { %v3470_v10 = vadd.f32 %v3469_v16, %v3439_v47  ;;  %3371 = vst [vmem:[%s4904_s30 + $0x28] sm:$0xff] %v3339_v24  ;;  %v3402_v62 = vadd.f32 %v3401_v9, %v3339_v24  ;;  %v3440_v22 = vmul.f32 %v3339_v24, %v3339_v24  ;;  %v3344_v5 = vadd.f32 %v4680_v58, %v3080_v30  ;;  %v6162_v16 = vld [vmem:[#allocation8_spill] sm:$0xff]  ;;  %v6163_v24 = vld [vmem:[#allocation22_spill] sm:$0xff] }
 0x205   : > { %v3078_v40 = vadd.f32 %v2975_v18, %v2807_v12  ;;  %v4633_v35 = vpop.f32.mrf.mxu1  ;;  %v4681_v4 = vpop.f32.mrf.mxu0  ;;  %v2812_v58 = vadd.f32 %v5881_v13, %v2554_v31  ;;  %v2817_v9 = vadd.f32 %v5885_v14, %v2559_v21  ;;  %v2560_v30 = vadd.f32 %v6163_v24, %v6162_v16  ;;  %v6173_v31 = vld [vmem:[#allocation10_spill] sm:$0xff]  ;;  %v6177_v16 = vld [vmem:[#allocation12_spill] sm:$0xff] }
 0x206   : > { %v3403_v6 = vadd.f32 %v3402_v62, %v3340_v50  ;;  %v3471_v27 = vadd.f32 %v3470_v10, %v3440_v22  ;;  %3376 = vst [vmem:[%s4904_s30 + $0x50] sm:$0xff] %v3344_v5  ;;  %v3081_v51 = vadd.f32 %v4633_v35, %v2810_v36  ;;  %v3445_v47 = vmul.f32 %v3344_v5, %v3344_v5  ;;  %v6164_v10 = vld [vmem:[#allocation21_spill] sm:$0xff]  ;;  %v6165_v22 = vld [vmem:[#allocation7_spill] sm:$0xff]  ;;  %v6174_v21 = vld [vmem:[#allocation30_spill] sm:$0xff] }
 0x207   : > { %v3342_v45 = vadd.f32 %v3239_v42, %v3078_v40  ;;  %v2978_v0 = vpop.f32.mrf.mxu1  ;;  %v3242_v37 = vpop.f32.mrf.mxu0  ;;  %v2815_v62 = vadd.f32 %v6164_v10, %v2557_v7  ;;  %v6178_v24 = vld [vmem:[#allocation32_spill] sm:$0xff] }
 0x208   : > { %v3472_v1 = vadd.f32 %v3471_v27, %v3441_v11  ;;  %v3404_v34 = vadd.f32 %v3403_v6, %v3341_v26  ;;  %v3345_v17 = vadd.f32 %v4681_v4, %v3081_v51  ;;  %v3079_v60 = vadd.f32 %v2978_v0, %v2808_v28  ;;  %v6167_v11 = vld [vmem:[#allocation23_spill] sm:$0xff] }
 0x209   : > { %3374 = vst [vmem:[%s4904_s30 + $0x40] sm:$0xff] %v3342_v45  ;;  %v4636_v50 = vpop.f32.mrf.mxu1  ;;  %v4684_v54 = vpop.f32.mrf.mxu0  ;;  %v3443_v53 = vmul.f32 %v3342_v45, %v3342_v45  ;;  %v2818_v6 = vadd.f32 %v6167_v11, %v2560_v30  ;;  %v2562_v30 = vadd.f32 %v6178_v24, %v6177_v16  ;;  %v6182_v11 = vld [vmem:[#allocation33_spill] sm:$0xff] }
 0x20a   : > { %v3405_v63 = vadd.f32 %v3404_v34, %v3342_v45  ;;  %v3473_v3 = vadd.f32 %v3472_v1, %v3442_v25  ;;  %3377 = vst [vmem:[%s4904_s30 + $0x58] sm:$0xff] %v3345_v17  ;;  %v3343_v20 = vadd.f32 %v3242_v37, %v3079_v60  ;;  %v3084_v2 = vadd.f32 %v4636_v50, %v2813_v48  ;;  %v6168_v25 = vld [vmem:[#allocation11_spill] sm:$0xff]  ;;  %v6169_v45 = vld [vmem:[#allocation26_spill] sm:$0xff]  ;;  %v6170_v50 = vld [vmem:[#allocation25_spill] sm:$0xff] }
 0x20b   : > { %v2991_v61 = vpop.f32.mrf.mxu1  ;;  %v3255_v59 = vpop.f32.mrf.mxu0  ;;  %v3446_v23 = vmul.f32 %v3345_v17, %v3345_v17  ;;  %v2563_v0 = vadd.f32 %v6169_v45, %v6168_v25 }
 0x20c   : > { %v3474_v52 = vadd.f32 %v3473_v3, %v3443_v53  ;;  %3375 = vst [vmem:[%s4904_s30 + $0x48] sm:$0xff] %v3343_v20  ;;  %v3406_v57 = vadd.f32 %v3405_v63, %v3343_v20  ;;  %v3444_v32 = vmul.f32 %v3343_v20, %v3343_v20  ;;  %v3082_v55 = vadd.f32 %v2991_v61, %v2811_v56  ;;  %v6171_v63 = vld [vmem:[#allocation9_spill] sm:$0xff]  ;;  %v6172_v53 = vld [vmem:[#allocation28_spill] sm:$0xff] }
 0x20d   : > { %v3348_v41 = vadd.f32 %v4684_v54, %v3084_v2  ;;  %v4637_v26 = vpop.f32.mrf.mxu1  ;;  %v4685_v43 = vpop.f32.mrf.mxu0  ;;  %v2561_v3 = vadd.f32 %v6172_v53, %v6171_v63  ;;  %v2564_v2 = vadd.f32 %v6174_v21, %v6173_v31 }
 0x20e   : > { %v3407_v38 = vadd.f32 %v3406_v57, %v3344_v5  ;;  %v3475_v39 = vadd.f32 %v3474_v52, %v3444_v32  ;;  %v3346_v33 = vadd.f32 %v3255_v59, %v3082_v55  ;;  %v3085_v49 = vadd.f32 %v4637_v26, %v2814_v44  ;;  %v6166_v5 = vld [vmem:[#allocation24_spill] sm:$0xff]  ;;  %v6175_v55 = vld [vmem:[#allocation27_spill] sm:$0xff] }
 0x20f   : > { %3380 = vst [vmem:[%s4904_s30 + $0x70] sm:$0xff] %v3348_v41  ;;  %v2994_v12 = vpop.f32.mrf.mxu1  ;;  %v3258_v29 = vpop.f32.mrf.mxu0  ;;  %v2558_v28 = vadd.f32 %v6166_v5, %v6165_v22  ;;  %v3449_v61 = vmul.f32 %v3348_v41, %v3348_v41  ;;  %v2821_v7 = vadd.f32 %v6175_v55, %v2563_v0  ;;  %v6180_v5 = vld [vmem:[#allocation13_spill] sm:$0xff]  ;;  %v6185_v0 = vld [vmem:[#allocation15_spill] sm:$0xff] }
 0x210   : > { %v3476_v36 = vadd.f32 %v3475_v39, %v3445_v47  ;;  %3378 = vst [vmem:[%s4904_s30 + $0x60] sm:$0xff] %v3346_v33  ;;  %v3408_v18 = vadd.f32 %v3407_v38, %v3345_v17  ;;  %v3349_v42 = vadd.f32 %v4685_v43, %v3085_v49  ;;  %v3083_v13 = vadd.f32 %v2994_v12, %v2812_v58  ;;  %v6176_v58 = vld [vmem:[#allocation29_spill] sm:$0xff] }
 0x211   : > { %v4640_v14 = vpop.f32.mrf.mxu1  ;;  %v4688_v8 = vpop.f32.mrf.mxu0  ;;  %v3447_v40 = vmul.f32 %v3346_v33, %v3346_v33  ;;  %v2816_v54 = vadd.f32 %v6170_v50, %v2558_v28 }
 0x212   : > { %v3409_v19 = vadd.f32 %v3408_v18, %v3346_v33  ;;  %v3477_v35 = vadd.f32 %v3476_v36, %v3446_v23  ;;  %3381 = vst [vmem:[%s4904_s30 + $0x78] sm:$0xff] %v3349_v42  ;;  %v3088_v4 = vadd.f32 %v4640_v14, %v2817_v9  ;;  %v3347_v27 = vadd.f32 %v3258_v29, %v3083_v13  ;;  %v6179_v29 = vld [vmem:[#allocation31_spill] sm:$0xff] }
 0x213   : > { %v3007_v51 = vpop.f32.mrf.mxu1  ;;  %v3271_v46 = vpop.f32.mrf.mxu0  ;;  %v3450_v43 = vmul.f32 %v3349_v42, %v3349_v42  ;;  %v2819_v9 = vadd.f32 %v6176_v58, %v2561_v3  ;;  %v2822_v23 = vadd.f32 %v6179_v29, %v2564_v2  ;;  %v6192_v58 = vld [vmem:[#allocation17_spill] sm:$0xff] }
 0x214   : > { %v3478_v37 = vadd.f32 %v3477_v35, %v3447_v40  ;;  %v3352_v1 = vadd.f32 %v4688_v8, %v3088_v4  ;;  %v3086_v34 = vadd.f32 %v3007_v51, %v2815_v62  ;;  %3379 = vst [vmem:[%s4904_s30 + $0x68] sm:$0xff] %v3347_v27  ;;  %v3410_v17 = vadd.f32 %v3409_v19, %v3347_v27  ;;  %v6184_v51 = vld [vmem:[#allocation36_spill] sm:$0xff] }
 0x215   : > { %v3448_v60 = vmul.f32 %v3347_v27, %v3347_v27  ;;  %v4641_v48 = vpop.f32.mrf.mxu1  ;;  %v4689_v56 = vpop.f32.mrf.mxu0  ;;  %v6183_v27 = vld [vmem:[#allocation14_spill] sm:$0xff] }
 0x216   : > { %3384 = vst [vmem:[%s4904_s30 + $0x90] sm:$0xff] %v3352_v1  ;;  %v3350_v20 = vadd.f32 %v3271_v46, %v3086_v34  ;;  %v3089_v44 = vadd.f32 %v4641_v48, %v2818_v6  ;;  %v3411_v59 = vadd.f32 %v3410_v17, %v3348_v41  ;;  %v2820_v6 = vadd.f32 %v6182_v11, %v2562_v30 }
 0x217   : > { %v3479_v52 = vadd.f32 %v3478_v37, %v3448_v60  ;;  %v3010_v57 = vpop.f32.mrf.mxu1  ;;  %v3274_v32 = vpop.f32.mrf.mxu0  ;;  %v2565_v46 = vadd.f32 %v6184_v51, %v6183_v27  ;;  %v6186_v37 = vld [vmem:[#allocation38_spill] sm:$0xff]  ;;  %v3453_v17 = vmul.f32 %v3352_v1, %v3352_v1 }
 0x218   : > { %3382 = vst [vmem:[%s4904_s30 + $0x80] sm:$0xff] %v3350_v20  ;;  %v3353_v47 = vadd.f32 %v4689_v56, %v3089_v44  ;;  %v3087_v26 = vadd.f32 %v3010_v57, %v2816_v54  ;;  %v3412_v39 = vadd.f32 %v3411_v59, %v3349_v42  ;;  %v3451_v18 = vmul.f32 %v3350_v20, %v3350_v20  ;;  %v6181_v42 = vld [vmem:[#allocation34_spill] sm:$0xff]  ;;  %v6187_v54 = vld [vmem:[#allocation35_spill] sm:$0xff]  ;;  %v6190_v57 = vld [vmem:[#allocation40_spill] sm:$0xff] }
 0x219   : > { %v3480_v38 = vadd.f32 %v3479_v52, %v3449_v61  ;;  %v4644_v33 = vpop.f32.mrf.mxu1  ;;  %v4692_v49 = vpop.f32.mrf.mxu0  ;;  %v2567_v28 = vadd.f32 %v6181_v42, %v6180_v5  ;;  %v2568_v34 = vadd.f32 %v6186_v37, %v6185_v0  ;;  %v6188_v61 = vld [vmem:[#allocation37_spill] sm:$0xff]  ;;  %v6189_v52 = vld [vmem:[#allocation16_spill] sm:$0xff] }
 0x21a   : > { %3385 = vst [vmem:[%s4904_s30 + $0x98] sm:$0xff] %v3353_v47  ;;  %v3351_v41 = vadd.f32 %v3274_v32, %v3087_v26  ;;  %v3092_v12 = vadd.f32 %v4644_v33, %v2821_v7  ;;  %v3413_v36 = vadd.f32 %v3412_v39, %v3350_v20  ;;  %v3454_v20 = vmul.f32 %v3353_v47, %v3353_v47  ;;  %v6191_v7 = vld [vmem:[#allocation39_spill] sm:$0xff]  ;;  %v6199_v37 = vld [vmem:[#allocation44_spill] sm:$0xff] }
 0x21b   : > { %v3481_v10 = vadd.f32 %v3480_v38, %v3450_v43  ;;  %v3023_v62 = vpop.f32.mrf.mxu1  ;;  %v3287_v22 = vpop.f32.mrf.mxu0  ;;  %v2825_v63 = vadd.f32 %v6187_v54, %v2567_v28  ;;  %v2823_v59 = vadd.f32 %v6188_v61, %v2565_v46  ;;  %v2566_v32 = vadd.f32 %v6190_v57, %v6189_v52 }
 0x21c   : > { %3383 = vst [vmem:[%s4904_s30 + $0x88] sm:$0xff] %v3351_v41  ;;  %v3452_v13 = vmul.f32 %v3351_v41, %v3351_v41  ;;  %v3356_v14 = vadd.f32 %v4692_v49, %v3092_v12  ;;  %v3090_v8 = vadd.f32 %v3023_v62, %v2819_v9  ;;  %v3414_v40 = vadd.f32 %v3413_v36, %v3351_v41 }
 0x21d   : > { %v3482_v19 = vadd.f32 %v3481_v10, %v3451_v18  ;;  %v4645_v35 = vpop.f32.mrf.mxu1  ;;  %v4693_v4 = vpop.f32.mrf.mxu0  ;;  %v2826_v26 = vadd.f32 %v6191_v7, %v2568_v34  ;;  %v6194_v18 = vld [vmem:[#allocation18_spill] sm:$0xff]  ;;  %v6195_v10 = vld [vmem:[#allocation43_spill] sm:$0xff]  ;;  %v6200_v34 = vld [vmem:[#allocation20_spill] sm:$0xff] }
 0x21e   : > { %3388 = vst [vmem:[%s4904_s30 + $0xb0] sm:$0xff] %v3356_v14  ;;  %v3354_v25 = vadd.f32 %v3287_v22, %v3090_v8  ;;  %v3093_v45 = vadd.f32 %v4645_v35, %v2822_v23  ;;  %v3415_v60 = vadd.f32 %v3414_v40, %v3352_v1  ;;  %v6193_v23 = vld [vmem:[#allocation41_spill] sm:$0xff]  ;;  %v2569_v62 = vadd.f32 %v6195_v10, %v6194_v18  ;;  %v6197_v35 = vld [vmem:[#allocation19_spill] sm:$0xff] }
 0x21f   : > { %v3483_v48 = vadd.f32 %v3482_v19, %v3452_v13  ;;  %v3026_v56 = vpop.f32.mrf.mxu1  ;;  %v3290_v50 = vpop.f32.mrf.mxu0  ;;  %v2824_v36 = vadd.f32 %v6193_v23, %v2566_v32  ;;  %v3457_v42 = vmul.f32 %v3356_v14, %v3356_v14  ;;  %v6196_v19 = vld [vmem:[#allocation42_spill] sm:$0xff]  ;;  %v6203_v32 = vld [vmem:[#allocation48_spill] sm:$0xff] }
 0x220   : > { %3386 = vst [vmem:[%s4904_s30 + $0xa0] sm:$0xff] %v3354_v25  ;;  %v3357_v53 = vadd.f32 %v4693_v4, %v3093_v45  ;;  %v3091_v3 = vadd.f32 %v3026_v56, %v2820_v6  ;;  %v3416_v31 = vadd.f32 %v3415_v60, %v3353_v47  ;;  %v3455_v38 = vmul.f32 %v3354_v25, %v3354_v25  ;;  %v6198_v4 = vld [vmem:[#allocation45_spill] sm:$0xff] }
 0x221   : > { %v3484_v44 = vadd.f32 %v3483_v48, %v3453_v17  ;;  %v4648_v21 = vpop.f32.mrf.mxu1  ;;  %v4696_v2 = vpop.f32.mrf.mxu0  ;;  %v2571_v47 = vadd.f32 %v5931_v15, %v6192_v58  ;;  %v2572_v11 = vadd.f32 %v6198_v4, %v6197_v35  ;;  %v6201_v17 = vld [vmem:[#allocation47_spill] sm:$0xff] }
 0x222   : > { %3389 = vst [vmem:[%s4904_s30 + $0xb8] sm:$0xff] %v3357_v53  ;;  %v3355_v1 = vadd.f32 %v3290_v50, %v3091_v3  ;;  %v3096_v55 = vadd.f32 %v4648_v21, %v2825_v63  ;;  %v3417_v43 = vadd.f32 %v3416_v31, %v3354_v25  ;;  %v3458_v51 = vmul.f32 %v3357_v53, %v3357_v53 }
 0x223   : > { %v3485_v39 = vadd.f32 %v3484_v44, %v3454_v20  ;;  %v3039_v33 = vpop.f32.mrf.mxu1  ;;  %v3303_v49 = vpop.f32.mrf.mxu0  ;;  %v2829_v40 = vadd.f32 %v6196_v19, %v2571_v47  ;;  %v2570_v60 = vadd.f32 %v6201_v17, %v6200_v34  ;;  %v6202_v44 = vld [vmem:[#allocation46_spill] sm:$0xff] }
 0x224   : > { %3387 = vst [vmem:[%s4904_s30 + $0xa8] sm:$0xff] %v3355_v1  ;;  %v3456_v9 = vmul.f32 %v3355_v1, %v3355_v1  ;;  %v3360_v16 = vadd.f32 %v4696_v2, %v3096_v55  ;;  %v3094_v24 = vadd.f32 %v3039_v33, %v2823_v59  ;;  %v3418_v41 = vadd.f32 %v3417_v43, %v3355_v1 }
 0x225   : > { %v3486_v30 = vadd.f32 %v3485_v39, %v3455_v38  ;;  %v4649_v12 = vpop.f32.mrf.mxu1  ;;  %v4697_v29 = vpop.f32.mrf.mxu0  ;;  %v2830_v31 = vadd.f32 %v6202_v44, %v2572_v11  ;;  %v2828_v1 = vadd.f32 %v6203_v32, %v2570_v60 }
 0x226   : > { %3392 = vst [vmem:[%s4904_s30 + $0xd0] sm:$0xff] %v3360_v16  ;;  %v3358_v22 = vadd.f32 %v3303_v49, %v3094_v24  ;;  %v3097_v5 = vadd.f32 %v4649_v12, %v2826_v26  ;;  %v3419_v28 = vadd.f32 %v3418_v41, %v3356_v14  ;;  %v2827_v14 = vadd.f32 %v6199_v37, %v2569_v62 }
 0x227   : > { %v3487_v15 = vadd.f32 %v3486_v30, %v3456_v9  ;;  %v3042_v13 = vpop.f32.mrf.mxu1  ;;  %v3306_v8 = vpop.f32.mrf.mxu0  ;;  %v3461_v26 = vmul.f32 %v3360_v16, %v3360_v16 }
 0x228   : > { %3390 = vst [vmem:[%s4904_s30 + $0xc0] sm:$0xff] %v3358_v22  ;;  %v3361_v6 = vadd.f32 %v4697_v29, %v3097_v5  ;;  %v3095_v27 = vadd.f32 %v3042_v13, %v2824_v36  ;;  %v3420_v25 = vadd.f32 %v3419_v28, %v3357_v53  ;;  %v3459_v54 = vmul.f32 %v3358_v22, %v3358_v22 }
 0x229   : > { %v3488_v46 = vadd.f32 %v3487_v15, %v3457_v42  ;;  %v4652_v45 = vpop.f32.mrf.mxu1  ;;  %v4700_v0 = vpop.f32.mrf.mxu0 }
 0x22a   : > { %3393 = vst [vmem:[%s4904_s30 + $0xd8] sm:$0xff] %v3361_v6  ;;  %v3359_v48 = vadd.f32 %v3306_v8, %v3095_v27  ;;  %v3100_v56 = vadd.f32 %v4652_v45, %v2829_v40  ;;  %v3421_v50 = vadd.f32 %v3420_v25, %v3358_v22  ;;  %v3462_v58 = vmul.f32 %v3361_v6, %v3361_v6 }
 0x22b   : > { %v3489_v63 = vadd.f32 %v3488_v46, %v3458_v51  ;;  %v3055_v3 = vpop.f32.mrf.mxu1  ;;  %v3319_v20 = vpop.f32.mrf.mxu0 }
 0x22c   : > { %3391 = vst [vmem:[%s4904_s30 + $0xc8] sm:$0xff] %v3359_v48  ;;  %v3460_v53 = vmul.f32 %v3359_v48, %v3359_v48  ;;  %v3364_v21 = vadd.f32 %v4700_v0, %v3100_v56  ;;  %v3098_v2 = vadd.f32 %v3055_v3, %v2827_v14  ;;  %v3422_v59 = vadd.f32 %v3421_v50, %v3359_v48 }
 0x22d   : > { %v3490_v61 = vadd.f32 %v3489_v63, %v3459_v54  ;;  %v4653_v52 = vpop.f32.mrf.mxu1  ;;  %v4701_v57 = vpop.f32.mrf.mxu0 }
 0x22e   : > { %3396 = vst [vmem:[%s4904_s30 + $0xf0] sm:$0xff] %v3364_v21  ;;  %v3362_v55 = vadd.f32 %v3319_v20, %v3098_v2  ;;  %v3101_v7 = vadd.f32 %v4653_v52, %v2830_v31  ;;  %v3423_v43 = vadd.f32 %v3422_v59, %v3360_v16  ;;  %v3465_v10 = vmul.f32 %v3364_v21, %v3364_v21 }
 0x22f   : > { %v3491_v38 = vadd.f32 %v3490_v61, %v3460_v53  ;;  %v3058_v39 = vpop.f32.mrf.mxu1  ;;  %v3322_v24 = vpop.f32.mrf.mxu0 }
 0x230   : > { %3394 = vst [vmem:[%s4904_s30 + $0xe0] sm:$0xff] %v3362_v55  ;;  %v3365_v33 = vadd.f32 %v4701_v57, %v3101_v7  ;;  %v3099_v49 = vadd.f32 %v3058_v39, %v2828_v1  ;;  %v3424_v9 = vadd.f32 %v3423_v43, %v3361_v6  ;;  %v3463_v12 = vmul.f32 %v3362_v55, %v3362_v55 }
 0x231   : > { %v3492_v47 = vadd.f32 %v3491_v38, %v3461_v26 }
 0x232   : > { %3397 = vst [vmem:[%s4904_s30 + $0xf8] sm:$0xff] %v3365_v33  ;;  %v3363_v30 = vadd.f32 %v3322_v24, %v3099_v49  ;;  %v3425_v41 = vadd.f32 %v3424_v9, %v3362_v55  ;;  %v3466_v22 = vmul.f32 %v3365_v33, %v3365_v33 }
 0x233   : > { %v3493_v29 = vadd.f32 %v3492_v47, %v3462_v58 }
 0x234   : > { %3395 = vst [vmem:[%s4904_s30 + $0xe8] sm:$0xff] %v3363_v30  ;;  %v3464_v23 = vmul.f32 %v3363_v30, %v3363_v30  ;;  %v3426_v18 = vadd.f32 %v3425_v41, %v3363_v30 }
 0x235   : > { %v3494_v36 = vadd.f32 %v3493_v29, %v3463_v12 }
 0x236   : > { %v3427_v16 = vadd.f32 %v3426_v18, %v3364_v21 }
 0x237   : > { %v3495_v62 = vadd.f32 %v3494_v36, %v3464_v23 }
 0x238   : > { %v3428_v5 = vadd.f32 %v3427_v16, %v3365_v33 }
 0x239   : > { %v3496_v42 = vadd.f32 %v3495_v62, %v3465_v10 }
 0x23a   : > { %v3429_v28 = vrot.slane %v3428_v5, 4 }
 0x23b   : > { %v3497_v15 = vadd.f32 %v3496_v42, %v3466_v22 }
 0x23c   : > { %v3430_v13 = vadd.f32 %v3429_v28, %v3428_v5 }
 0x23d   : > { %v3498_v8 = vrot.slane %v3497_v15, 4 }
 0x23e   : > { %v3431_v19 = vrot.slane %v3430_v13, 2 }
 0x23f   : > { %v3499_v40 = vadd.f32 %v3498_v8, %v3497_v15 }
 0x240   : > { %v3432_v35 = vadd.f32 %v3431_v19, %v3430_v13 }
 0x241   : > { %v3500_v4 = vrot.slane %v3499_v40, 2 }
 0x242   : > { %v3433_v11 = vrot.slane %v3432_v35, 1 }
 0x243   : > { %v3501_v6 = vadd.f32 %v3500_v4, %v3499_v40 }
 0x244   : > { %v3434_v51 = vadd.f32 %v3433_v11, %v3432_v35 }
 0x245   : > { %v3502_v27 = vrot.slane %v3501_v6, 1 }
 0x247   : > { %v3503_v46 = vadd.f32 %v3502_v27, %v3501_v6 }
 0x249   : > { %v3505_v25 = vsel %vm3504_vm2, %v3434_v51, %v3503_v46 }
 0x24a   : > { %3506 = vst [vmem:[%s4909_s9] sm:$0x3] %v3505_v25 }
 0x24b PF: > { %s17_s1 = sadd.s32 1, %s4838_s1   ;;  %s6204_s21 = smov %s4834_s22 }
 0x24c   : > { %p14_p5 = scmp.ge.s32.totalorder %s17_s1, 4   ;;  %s6205_s22 = smov %s6207_s2 }
 0x24e   :  { %16 = sbr.rel (!%p14_p5) target bundleno = 2 (0x2), region = 200 }
 0x253   :  { %3559 = vsyncmov [#allocation3] }
 0x256   :  { %s3560_s30 = vpop.sfrf %3559 }
 0x257   :  { %p4051_p6 = scmp.ne.s32.totalorder %s3560_s30, 0 }
 0x259   :  { %3564 = shalt.err (%p4051_p6)  }
 0x25a   :  { %3566 = vsyncmov [#allocation3 + $0x1] }
 0x25d   :  { %s3567_s3 = vpop.sfrf %3566 }
 0x25e   :  { %p4052_p7 = scmp.ne.s32.totalorder %s3567_s3, 0 }
 0x260   :  { %3571 = shalt.err (%p4052_p7)  }

// kernel: resblock_pallas.3
= control target key start
LH: loop header
LB: loop body
LE: loop exit
PB: predicated region body
PF: predicated region fallthrough
CT: control target
= control target key end

     0   :  { %s5668_s21 = smov 0   ;;  %s5670_s22 = smov 0   ;;  %s7379_s0 = inlined_call_operand.vmem [shape: f32[2,18,18,128], index: 0, kind: input, shape index: {}]   ;;  %s7380_s1 = inlined_call_operand.vmem [shape: f32[1,128], index: 1, kind: input, shape index: {}]   ;;  %s7381_s2 = inlined_call_operand.vmem [shape: f32[1,128], index: 2, kind: input, shape index: {}]   ;;  %s7382_s3 = inlined_call_operand.vmem [shape: f32[1,128], index: 3, kind: input, shape index: {}]   ;;  %s7383_s4 = inlined_call_operand.vmem [shape: bf16[9,128,128], index: 4, kind: input, shape index: {}]   ;;  %s7384_s5 = inlined_call_operand.vmem [shape: f32[2,16,16,128], index: 5, kind: output, shape index: {0}]   ;;  %s7385_s6 = inlined_call_operand.vmem [shape: f32[2,1,2,128], index: 6, kind: output, shape index: {1}]  }
   0x1   :  { %s5672_s23 = smov 0  }
   0x2 LB: > { %s29_s24 = sadd.s32 1, %s5624_s22  ;;  %p4324_p0 = scmp.ge.s32.totalorder %s5628_s23, 1  ;;  %s5628_s23 = sphi %s5672_s23, %s17_s23   ;;  %s5624_s22 = sphi %s5670_s22, %s7610_s22   ;;  %s5620_s21 = sphi %s5668_s21, %s7609_s21  }
   0x3   : > { %p31_p1 = scmp.ge.s32.totalorder %s29_s24, 2  ;;  %p197_p2 = scmp.lt.s32.totalorder %s5628_s23, 3 }
   0x5   : > { %s7612_s24 = smov (%p31_p1, %s29_s24), 0  ;;  %p198_p3 = pnand %p4324_p0, %p197_p2 }
   0x7   : > { %201 = sbr.rel (%p198_p3) target bundleno = 638 (0x27e), region = 36 }
   0xc   : > { %p233_p4 = scmp.lt.s32.totalorder %s5620_s21, 1  ;;  %s256_s25 = smul.u32 432, %s5620_s21 }
   0xe   : > { %s7614_s21 = smov (!%p233_p4, %s5620_s21), 1  ;;  %s5689_s28 = scalar_lea.vmem %s7379_s0, %s256_s25 }
   0xf   : > { %s4837_s29 = sshll.u32 %s7614_s21, 8  ;;  %s4327_s30 = sshll.u32 %s7614_s21, 1  ;;  %v335_v0 = vld [vmem:[%s5689_s28 + $0x18] sm:$0xff]  ;;  %v337_v1 = vld [vmem:[%s5689_s28 + $0x20] sm:$0xff]  ;;  %v339_v2 = vld [vmem:[%s5689_s28 + $0x30] sm:$0xff] }
  0x10   : > { %s5695_s9 = scalar_lea.vmem %s7384_s5, %s4837_s29  ;;  %s5700_s12 = scalar_lea.vmem %s7385_s6, %s4327_s30  ;;  %336 = vst [vmem:[#allocation2 + $0x18] sm:$0xff] %v335_v0  ;;  %v341_v3 = vld [vmem:[%s5689_s28 + $0x38] sm:$0xff]  ;;  %338 = vst [vmem:[#allocation2 + $0x68] sm:$0xff] %v337_v1  ;;  %v343_v4 = vld [vmem:[%s5689_s28 + $0x48] sm:$0xff] }
  0x11   : > { %340 = vst [vmem:[#allocation2 + $0xd0] sm:$0xff] %v339_v2  ;;  %342 = vst [vmem:[#allocation2 + $0x28] sm:$0xff] %v341_v3  ;;  %v345_v5 = vld [vmem:[%s5689_s28 + $0x50] sm:$0xff]  ;;  %v347_v6 = vld [vmem:[%s5689_s28 + $0x60] sm:$0xff] }
  0x12   : > { %344 = vst [vmem:[#allocation2 + $0x60] sm:$0xff] %v343_v4  ;;  %346 = vst [vmem:[#allocation2 + $0x118] sm:$0xff] %v345_v5  ;;  %v349_v7 = vld [vmem:[%s5689_s28 + $0x68] sm:$0xff]  ;;  %v351_v8 = vld [vmem:[%s5689_s28 + $0x78] sm:$0xff] }
  0x13   : > { %348 = vst [vmem:[#allocation2 + $0x188] sm:$0xff] %v347_v6  ;;  %v353_v9 = vld [vmem:[%s5689_s28 + $0x80] sm:$0xff]  ;;  %350 = vst [vmem:[#allocation2 + $0x198] sm:$0xff] %v349_v7  ;;  %v355_v10 = vld [vmem:[%s5689_s28 + $0x90] sm:$0xff] }
  0x14   : > { %352 = vst [vmem:[#allocation2 + $0xd8] sm:$0xff] %v351_v8  ;;  %354 = vst [vmem:[#allocation2 + $0x1a0] sm:$0xff] %v353_v9  ;;  %v357_v11 = vld [vmem:[%s5689_s28 + $0x98] sm:$0xff]  ;;  %v359_v12 = vld [vmem:[%s5689_s28 + $0xa8] sm:$0xff] }
  0x15   : > { %356 = vst [vmem:[#allocation2 + $0x88] sm:$0xff] %v355_v10  ;;  %358 = vst [vmem:[#allocation2 + $0x180] sm:$0xff] %v357_v11  ;;  %v361_v13 = vld [vmem:[%s5689_s28 + $0xb0] sm:$0xff]  ;;  %v363_v14 = vld [vmem:[%s5689_s28 + $0xc0] sm:$0xff] }
  0x16   : > { %360 = vst [vmem:[#allocation2 + $0x80] sm:$0xff] %v359_v12  ;;  %v365_v15 = vld [vmem:[%s5689_s28 + $0xc8] sm:$0xff]  ;;  %362 = vst [vmem:[#allocation2 + $0x140] sm:$0xff] %v361_v13  ;;  %v367_v16 = vld [vmem:[%s5689_s28 + $0xd8] sm:$0xff] }
  0x17   : > { %364 = vst [vmem:[#allocation2 + $0x130] sm:$0xff] %v363_v14  ;;  %366 = vst [vmem:[#allocation2 + $0x40] sm:$0xff] %v365_v15  ;;  %v369_v17 = vld [vmem:[%s5689_s28 + $0xe0] sm:$0xff]  ;;  %v371_v18 = vld [vmem:[%s5689_s28 + $0xf0] sm:$0xff] }
  0x18   : > { %368 = vst [vmem:[#allocation2 + $0x58] sm:$0xff] %v367_v16  ;;  %370 = vst [vmem:[#allocation2 + $0xb0] sm:$0xff] %v369_v17  ;;  %v373_v19 = vld [vmem:[%s5689_s28 + $0xf8] sm:$0xff]  ;;  %v375_v20 = vld [vmem:[%s5689_s28 + $0x108] sm:$0xff] }
  0x19   : > { %372 = vst [vmem:[#allocation2 + $0x190] sm:$0xff] %v371_v18  ;;  %v377_v21 = vld [vmem:[%s5689_s28 + $0x110] sm:$0xff]  ;;  %374 = vst [vmem:[#allocation2 + $0xb8] sm:$0xff] %v373_v19  ;;  %v379_v22 = vld [vmem:[%s5689_s28 + $0x120] sm:$0xff] }
  0x1a   : > { %376 = vst [vmem:[#allocation2 + $0xe0] sm:$0xff] %v375_v20  ;;  %378 = vst [vmem:[#allocation2 + $0x158] sm:$0xff] %v377_v21  ;;  %v381_v23 = vld [vmem:[%s5689_s28 + $0x128] sm:$0xff]  ;;  %v383_v24 = vld [vmem:[%s5689_s28 + $0x138] sm:$0xff] }
  0x1b   : > { %380 = vst [vmem:[#allocation2 + $0xc0] sm:$0xff] %v379_v22  ;;  %382 = vst [vmem:[#allocation2 + $0xf8] sm:$0xff] %v381_v23  ;;  %v385_v25 = vld [vmem:[%s5689_s28 + $0x140] sm:$0xff]  ;;  %v387_v26 = vld [vmem:[%s5689_s28 + $0x150] sm:$0xff] }
  0x1c   : > { %384 = vst [vmem:[#allocation2 + $0x38] sm:$0xff] %v383_v24  ;;  %v389_v27 = vld [vmem:[%s5689_s28 + $0x158] sm:$0xff]  ;;  %386 = vst [vmem:[#allocation2] sm:$0xff] %v385_v25  ;;  %v391_v28 = vld [vmem:[%s5689_s28 + $0x168] sm:$0xff] }
  0x1d   : > { %388 = vst [vmem:[#allocation2 + $0xe8] sm:$0xff] %v387_v26  ;;  %390 = vst [vmem:[#allocation2 + $0x110] sm:$0xff] %v389_v27  ;;  %v393_v29 = vld [vmem:[%s5689_s28 + $0x170] sm:$0xff]  ;;  %v395_v30 = vld [vmem:[%s5689_s28 + $0x180] sm:$0xff] }
  0x1e   : > { %392 = vst [vmem:[#allocation2 + $0x1a8] sm:$0xff] %v391_v28  ;;  %394 = vst [vmem:[#allocation2 + $0x70] sm:$0xff] %v393_v29  ;;  %v397_v31 = vld [vmem:[%s5689_s28 + $0x188] sm:$0xff]  ;;  %v4330_v33 = vld [vmem:[%s5689_s28 + $0x40] sm:$0x3] }
  0x1f   : > { %396 = vst [vmem:[#allocation2 + $0x78] sm:$0xff] %v395_v30  ;;  %398 = vst [vmem:[#allocation2 + $0xf0] sm:$0xff] %v397_v31  ;;  %v4329_v32 = vld [vmem:[%s5689_s28 + $0x28] sm:$0x3]  ;;  %v4331_v34 = vld [vmem:[%s5689_s28 + $0x58] sm:$0x3] }
  0x20   : > { %416 = vst [vmem:[#allocation2 + $0x160] sm:$0x3] %v4329_v32  ;;  %418 = vst [vmem:[#allocation2 + $0x128] sm:$0x3] %v4330_v33  ;;  %v4332_v35 = vld [vmem:[%s5689_s28 + $0x70] sm:$0x3] }
  0x21   : > { %v4333_v36 = vld [vmem:[%s5689_s28 + $0x88] sm:$0x3]  ;;  %420 = vst [vmem:[#allocation2 + $0x168] sm:$0x3] %v4331_v34  ;;  %422 = vst [vmem:[#allocation2 + $0xa0] sm:$0x3] %v4332_v35 }
  0x22   : > { %424 = vst [vmem:[#allocation2 + $0x48] sm:$0x3] %v4333_v36  ;;  %v4334_v37 = vld [vmem:[%s5689_s28 + $0xa0] sm:$0x3]  ;;  %v4335_v38 = vld [vmem:[%s5689_s28 + $0xb8] sm:$0x3] }
  0x23   : > { %v4336_v39 = vld [vmem:[%s5689_s28 + $0xd0] sm:$0x3]  ;;  %426 = vst [vmem:[#allocation2 + $0x170] sm:$0x3] %v4334_v37  ;;  %428 = vst [vmem:[#allocation2 + $0x20] sm:$0x3] %v4335_v38 }
  0x24   : > { %430 = vst [vmem:[#allocation2 + $0x8] sm:$0x3] %v4336_v39  ;;  %v4337_v40 = vld [vmem:[%s5689_s28 + $0xe8] sm:$0x3]  ;;  %v4338_v41 = vld [vmem:[%s5689_s28 + $0x100] sm:$0x3] }
  0x25   : > { %v4339_v42 = vld [vmem:[%s5689_s28 + $0x118] sm:$0x3]  ;;  %432 = vst [vmem:[#allocation2 + $0x90] sm:$0x3] %v4337_v40  ;;  %434 = vst [vmem:[#allocation2 + $0xa8] sm:$0x3] %v4338_v41 }
  0x26   : > { %436 = vst [vmem:[#allocation2 + $0x98] sm:$0x3] %v4339_v42  ;;  %v4340_v43 = vld [vmem:[%s5689_s28 + $0x130] sm:$0x3]  ;;  %v4341_v44 = vld [vmem:[%s5689_s28 + $0x148] sm:$0x3] }
  0x27   : > { %v4342_v45 = vld [vmem:[%s5689_s28 + $0x160] sm:$0x3]  ;;  %438 = vst [vmem:[#allocation2 + $0x50] sm:$0x3] %v4340_v43  ;;  %440 = vst [vmem:[#allocation2 + $0x30] sm:$0x3] %v4341_v44 }
  0x28   : > { %442 = vst [vmem:[#allocation2 + $0xc8] sm:$0x3] %v4342_v45  ;;  %v4343_v46 = vld [vmem:[%s5689_s28 + $0x178] sm:$0x3]  ;;  %v4344_v47 = vld [vmem:[%s5689_s28 + $0x190] sm:$0x3] }
  0x29   : > { %444 = vst [vmem:[#allocation2 + $0x150] sm:$0x3] %v4343_v46  ;;  %446 = vst [vmem:[#allocation2 + $0x10] sm:$0x3] %v4344_v47 }
  0x2a   : > { %452 = vsyncadd [#allocation3], 5184 }
  0x2b   : > { %5616 = dma.done.wait [#allocation3], 5184 }
  0x2c   : > { %5617 = vsyncadd [#allocation3], 4294962112  ;;  %v5630_v48 = vmov 0   ;;  %v5529_v50 = vld [vmem:[%s7383_s4 + $0x78] sm:$0xff]   ;;  %v1038_v51 = vlaneseq  ;;  %v5530_v52 = vld [vmem:[%s7383_s4 + $0x70] sm:$0xff]  }
  0x2d   : > { %v5749_v49 = vrot.slane %v5630_v48, 1  ;;  %5054 = vmatprep.subr.bf16.mxu0 %v5529_v50  ;;  %5486 = vmatprep.subr.bf16.mxu1 %v5529_v50  ;;  %v5531_v53 = vld [vmem:[%s7383_s4 + $0x68] sm:$0xff]   ;;  %v5532_v55 = vld [vmem:[%s7383_s4 + $0x60] sm:$0xff]   ;;  %v699_v56 = vld [vmem:[#allocation2 + $0x130] sm:$0xff]  ;;  %vm1424_vm5 = vsmask.f32 7424 }
  0x2e   : > { %5055 = vmatpush3.bf16.msra.mxu0 %v5529_v50  ;;  %5494 = vmatpush3.bf16.msra.mxu1 %v5529_v50  ;;  %v5761_v54 = vshrl.u32 %v1038_v51, 7  ;;  %v700_v57 = vld [vmem:[#allocation2 + $0x40] sm:$0xff]  ;;  %v701_v58 = vld [vmem:[#allocation2 + $0x8] sm:$0x3]  ;;  %v678_v1 = vld [vmem:[#allocation2 + $0x18] sm:$0xff] }
  0x2f   : > { %7433 = vst [vmem:[#allocation7_spill] sm:$0xff] %v5749_v49  ;;  %5070 = vmatprep.mubr.bf16.mxu0 %v5749_v49  ;;  %5056 = vmatprep.subr.bf16.mxu0 %v5530_v52  ;;  %v5772_v60 = vld [vmem:[%s7380_s1] ss:$0 sm:$0xff]  ;;  %v679_v2 = vld [vmem:[#allocation2 + $0x68] sm:$0xff]  ;;  %v702_v8 = vld [vmem:[#allocation2 + $0x58] sm:$0xff] }
  0x30   : > { %5487 = vmatprep.subr.bf16.mxu1 %v5530_v52  ;;  %v5767_v59 = vadd.s32 16, %v5761_v54  ;;  %v5777_v61 = vld [vmem:[%s7381_s2] ss:$0 sm:$0xff]  ;;  %v760_v62 = vmul.f32 %v5772_v60, %v699_v56  ;;  %v761_v63 = vmul.f32 %v5772_v60, %v700_v57  ;;  %v762_v0 = vmul.f32 %v5772_v60, %v701_v58  ;;  %v5533_v9 = vld [vmem:[%s7383_s4 + $0x58] sm:$0xff]   ;;  %v5534_v20 = vld [vmem:[%s7383_s4 + $0x50] sm:$0xff]  }
  0x31   : > { %v680_v3 = vld [vmem:[#allocation2 + $0x160] sm:$0x3]  ;;  %vm1096_vm0 = vcmp.ge.s32.totalorder %v5761_v54, 1  ;;  %v739_v5 = vmul.f32 %v5772_v60, %v678_v1  ;;  %v740_v6 = vmul.f32 %v5772_v60, %v679_v2  ;;  %v763_v16 = vmul.f32 %v5772_v60, %v702_v8  ;;  %v703_v32 = vld [vmem:[#allocation2 + $0xb0] sm:$0xff]  ;;  %v5535_v38 = vld [vmem:[%s7383_s4 + $0x48] sm:$0xff]  }
  0x32   : > { %5057 = vmatpush3.bf16.msra.mxu0 %v5530_v52  ;;  %5495 = vmatpush3.bf16.msra.mxu1 %v5530_v52  ;;  %v5785_v4 = vld [vmem:[%s7382_s3] ss:$0 sm:$0xff]  ;;  %v741_v7 = vmul.f32 %v5772_v60, %v680_v3  ;;  %v821_v10 = vadd.f32 %v5777_v61, %v760_v62  ;;  %v822_v11 = vadd.f32 %v5777_v61, %v761_v63  ;;  %vm1155_vm1 = vcmp.le.s32.totalorder %v5767_v59, 16  ;;  %v704_v33 = vld [vmem:[#allocation2 + $0x90] sm:$0x3]  ;;  %v682_v1 = vld [vmem:[#allocation2 + $0x28] sm:$0xff] }
  0x33   : > { %5058 = vmatprep.subr.bf16.mxu0 %v5531_v53  ;;  %5488 = vmatprep.subr.bf16.mxu1 %v5531_v53  ;;  %v823_v12 = vadd.f32 %v5777_v61, %v762_v0  ;;  %v800_v13 = vadd.f32 %v5777_v61, %v739_v5  ;;  %v801_v14 = vadd.f32 %v5777_v61, %v740_v6  ;;  %v5536_v47 = vld [vmem:[%s7383_s4 + $0x40] sm:$0xff]   ;;  %v681_v0 = vld [vmem:[#allocation2 + $0xd0] sm:$0xff] }
  0x34   : > { %v802_v15 = vadd.f32 %v5777_v61, %v741_v7  ;;  %vm875_vm2 = vcmp.gt.f32.partialorder %v821_v10, 0.0  ;;  %vm876_vm3 = vcmp.gt.f32.partialorder %v822_v11, 0.0  ;;  %v936_v17 = vmul.f32 %v5785_v4, %v821_v10 }
  0x35   : > { %vm877_vm4 = vcmp.gt.f32.partialorder %v823_v12, 0.0  ;;  %v937_v18 = vmul.f32 %v5785_v4, %v822_v11  ;;  %v938_v19 = vmul.f32 %v5785_v4, %v823_v12  ;;  %vm854_vm6 = vcmp.gt.f32.partialorder %v800_v13, 0.0 }
  0x36   : > { %5059 = vmatpush3.bf16.msra.mxu0 %v5531_v53  ;;  %5496 = vmatpush3.bf16.msra.mxu1 %v5531_v53  ;;  %vm855_vm7 = vcmp.gt.f32.partialorder %v801_v14, 0.0  ;;  %v5808_v21 = vsel %vm875_vm2, %v821_v10, %v936_v17  ;;  %vm856_vm8 = vcmp.gt.f32.partialorder %v802_v15, 0.0  ;;  %v915_v22 = vmul.f32 %v5785_v4, %v800_v13 }
  0x37   : > { %5060 = vmatprep.subr.bf16.mxu0 %v5532_v55  ;;  %5489 = vmatprep.subr.bf16.mxu1 %v5532_v55  ;;  %7434 = vst [vmem:[#allocation8_spill] sm:$0xff] %v5808_v21  ;;  %v916_v23 = vmul.f32 %v5785_v4, %v801_v14  ;;  %v5813_v24 = vsel %vm876_vm3, %v822_v11, %v937_v18  ;;  %v1342_v26 = vsel %vm1096_vm0, %v5808_v21, 0.0  ;;  %v5537_v18 = vld [vmem:[%s7383_s4 + $0x38] sm:$0xff]  }
  0x38   : > { %7435 = vst [vmem:[#allocation9_spill] sm:$0xff] %v5813_v24  ;;  %v992_v25 = vsel %vm877_vm4, %v823_v12, %v938_v19  ;;  %v917_v27 = vmul.f32 %v5785_v4, %v802_v15  ;;  %v5823_v29 = vpack.c.bf16 %v5813_v24, %v1342_v26  ;;  %v969_v30 = vsel %vm854_vm6, %v800_v13, %v915_v22  ;;  %v5538_v19 = vld [vmem:[%s7383_s4 + $0xb8] sm:$0xff]  }
  0x39   : > { %v1344_v28 = vsel %vm1155_vm1, %v992_v25, 0.0  ;;  %v970_v31 = vsel %vm855_vm7, %v801_v14, %v916_v23  ;;  %v1321_v36 = vsel %vm1096_vm0, %v969_v30, 0.0  ;;  %v764_v45 = vmul.f32 %v5772_v60, %v703_v32  ;;  %v705_v14 = vld [vmem:[#allocation2 + $0x190] sm:$0xff]  ;;  %v706_v26 = vld [vmem:[#allocation2 + $0xb8] sm:$0xff] }
  0x3a   : > { %5061 = vmatpush3.bf16.msra.mxu0 %v5532_v55  ;;  %5497 = vmatpush3.bf16.msra.mxu1 %v5532_v55  ;;  %7436 = vst [vmem:[#allocation10_spill] sm:$0xff] %v5823_v29  ;;  %v5825_v34 = vpack.c.bf16 %v1344_v28, %v1344_v28  ;;  %v971_v35 = vsel %vm856_vm8, %v802_v15, %v917_v27  ;;  %v1522_v39 = vshrl.u32 %v5823_v29, 16  ;;  %v1524_v40 = vshll.u32 %v5823_v29, 16  ;;  %v707_v27 = vld [vmem:[#allocation2 + $0xa8] sm:$0x3] }
  0x3b   : > { %5062 = vmatprep.subr.bf16.mxu0 %v5533_v9  ;;  %5490 = vmatprep.subr.bf16.mxu1 %v5533_v9  ;;  %v5830_v37 = vpack.c.bf16 %v970_v31, %v969_v30  ;;  %v1323_v41 = vsel %vm1155_vm1, %v971_v35, 0.0  ;;  %v5839_v42 = vpack.c.bf16 %v970_v31, %v1321_v36  ;;  %v765_v46 = vmul.f32 %v5772_v60, %v704_v33  ;;  %v5540_v33 = vld [vmem:[%s7383_s4 + $0xb0] sm:$0xff]  }
  0x3c   : > { %7437 = vst [vmem:[#allocation11_spill] sm:$0xff] %v5825_v34  ;;  %v1529_v43 = vshll.u32 %v5825_v34, 16  ;;  %v5842_v44 = vpack.c.bf16 %v1323_v41, %v1323_v41  ;;  %v1526_v48 = vrot.slane %v1524_v40, 1  ;;  %v824_v52 = vadd.f32 %v5777_v61, %v763_v16 }
  0x3d   : > { %v1438_v50 = vshrl.u32 %v5839_v42, 16  ;;  %v1440_v51 = vshll.u32 %v5839_v42, 16  ;;  %v825_v56 = vadd.f32 %v5777_v61, %v764_v45  ;;  %v826_v57 = vadd.f32 %v5777_v61, %v765_v46 }
  0x3e   : > { %5063 = vmatpush3.bf16.msra.mxu0 %v5533_v9  ;;  %5498 = vmatpush3.bf16.msra.mxu1 %v5533_v9  ;;  %v1531_v53 = vrot.slane %v1529_v43, 1  ;;  %v1445_v55 = vshll.u32 %v5842_v44, 16  ;;  %v1527_v58 = vor.u32 %v1526_v48, %v1522_v39  ;;  %vm878_vm9 = vcmp.gt.f32.partialorder %v824_v52, 0.0  ;;  %v683_v9 = vld [vmem:[#allocation2 + $0x128] sm:$0x3] }
  0x3f   : > { %5064 = vmatprep.subr.bf16.mxu0 %v5534_v20  ;;  %5491 = vmatprep.subr.bf16.mxu1 %v5534_v20  ;;  %v1442_v62 = vrot.slane %v1440_v51, 1  ;;  %v939_v63 = vmul.f32 %v5785_v4, %v824_v52  ;;  %vm879_vm10 = vcmp.gt.f32.partialorder %v825_v56, 0.0  ;;  %vm880_vm11 = vcmp.gt.f32.partialorder %v826_v57, 0.0 }
  0x40   : > { %v1447_v2 = vrot.slane %v1445_v55, 1  ;;  %v940_v3 = vmul.f32 %v5785_v4, %v825_v56  ;;  %v5858_v5 = vsel %vm1424_vm5, %v1527_v58, %v1531_v53  ;;  %v941_v7 = vmul.f32 %v5785_v4, %v826_v57  ;;  %v5539_v53 = vld [vmem:[%s7383_s4 + $0x30] sm:$0xff]  }
  0x41   : > { %7438 = vst [vmem:[#allocation12_spill] sm:$0xff] %v5858_v5  ;;  %v1443_v6 = vor.u32 %v1442_v62, %v1438_v50  ;;  %v5861_v8 = vsel %vm878_vm9, %v824_v52, %v939_v63  ;;  %v742_v12 = vmul.f32 %v5772_v60, %v681_v0  ;;  %v743_v13 = vmul.f32 %v5772_v60, %v682_v1  ;;  %v685_v1 = vld [vmem:[#allocation2 + $0x118] sm:$0xff] }
  0x42   : > { %5065 = vmatpush3.bf16.msra.mxu0 %v5534_v20  ;;  %5499 = vmatpush3.bf16.msra.mxu1 %v5534_v20  ;;  %7439 = vst [vmem:[#allocation13_spill] sm:$0xff] %v5861_v8  ;;  %v5863_v10 = vsel %vm879_vm10, %v825_v56, %v940_v3  ;;  %v1345_v11 = vsel %vm1096_vm0, %v5861_v8, 0.0  ;;  %v995_v16 = vsel %vm880_vm11, %v826_v57, %v941_v7  ;;  %v5542_v3 = vld [vmem:[%s7383_s4 + $0xa8] sm:$0xff]  }
  0x43   : > { %5066 = vmatprep.subr.bf16.mxu0 %v5535_v38  ;;  %5492 = vmatprep.subr.bf16.mxu1 %v5535_v38  ;;  %7440 = vst [vmem:[#allocation14_spill] sm:$0xff] %v5863_v10  ;;  %v5871_v15 = vsel %vm1424_vm5, %v1443_v6, %v1447_v2  ;;  %v5875_v17 = vpack.c.bf16 %v5863_v10, %v1345_v11  ;;  %v1347_v20 = vsel %vm1155_vm1, %v995_v16, 0.0  ;;  %v686_v11 = vld [vmem:[#allocation2 + $0x168] sm:$0x3] }
  0x44   : > { %7441 = vst [vmem:[#allocation15_spill] sm:$0xff] %v5871_v15  ;;  %5086 = vmatprep.mubr.bf16.mxu1 %v5858_v5  ;;  %v744_v22 = vmul.f32 %v5772_v60, %v683_v9  ;;  %v803_v23 = vadd.f32 %v5777_v61, %v742_v12  ;;  %v804_v25 = vadd.f32 %v5777_v61, %v743_v13 }
  0x45   : > { %7442 = vst [vmem:[#allocation16_spill] sm:$0xff] %v5875_v17  ;;  %v5889_v28 = vpack.c.bf16 %v1347_v20, %v1347_v20  ;;  %v1534_v30 = vshrl.u32 %v5875_v17, 16  ;;  %v1536_v31 = vshll.u32 %v5875_v17, 16  ;;  %v766_v32 = vmul.f32 %v5772_v60, %v705_v14  ;;  %v5541_v14 = vld [vmem:[%s7383_s4 + $0x28] sm:$0xff]  }
  0x46   : > { %5067 = vmatpush3.bf16.msra.mxu0 %v5535_v38  ;;  %5500 = vmatpush3.bf16.msra.mxu1 %v5535_v38  ;;  %v805_v35 = vadd.f32 %v5777_v61, %v744_v22  ;;  %vm857_vm12 = vcmp.gt.f32.partialorder %v803_v23, 0.0  ;;  %vm858_vm13 = vcmp.gt.f32.partialorder %v804_v25, 0.0  ;;  %v918_v36 = vmul.f32 %v5785_v4, %v803_v23 }
  0x47   : > { %5068 = vmatprep.subr.bf16.mxu0 %v5536_v47  ;;  %5493 = vmatprep.subr.bf16.mxu1 %v5536_v47  ;;  %7443 = vst [vmem:[#allocation17_spill] sm:$0xff] %v5889_v28  ;;  %v1538_v38 = vrot.slane %v1536_v31, 1  ;;  %v1541_v39 = vshll.u32 %v5889_v28, 16  ;;  %v919_v40 = vmul.f32 %v5785_v4, %v804_v25  ;;  %v767_v41 = vmul.f32 %v5772_v60, %v706_v26 }
  0x48   : > { %vm859_vm14 = vcmp.gt.f32.partialorder %v805_v35, 0.0  ;;  %v920_v43 = vmul.f32 %v5785_v4, %v805_v35  ;;  %v5903_v45 = vsel %vm857_vm12, %v803_v23, %v918_v36  ;;  %v768_v46 = vmul.f32 %v5772_v60, %v707_v27  ;;  %v5544_v27 = vld [vmem:[%s7383_s4 + $0xa0] sm:$0xff]   ;;  %v709_v36 = vld [vmem:[#allocation2 + $0x158] sm:$0xff] }
  0x49   : > { %v1539_v48 = vor.u32 %v1538_v38, %v1534_v30  ;;  %v1543_v50 = vrot.slane %v1541_v39, 1  ;;  %v5908_v51 = vsel %vm858_vm13, %v804_v25, %v919_v40  ;;  %v1324_v52 = vsel %vm1096_vm0, %v5903_v45, 0.0 }
  0x4a   : > { %5069 = vmatpush3.bf16.msra.mxu0 %v5536_v47  ;;  %5501 = vmatpush3.bf16.msra.mxu1 %v5536_v47  ;;  %v684_v47 = vld [vmem:[#allocation2 + $0x60] sm:$0xff]  ;;  %v974_v55 = vsel %vm859_vm14, %v805_v35, %v920_v43  ;;  %v5917_v56 = vpack.c.bf16 %v5908_v51, %v1324_v52  ;;  %v827_v57 = vadd.f32 %v5777_v61, %v766_v32  ;;  %v710_v43 = vld [vmem:[#allocation2 + $0x98] sm:$0x3] }
  0x4b   : > { %5102 = vmatprep.subr.bf16.mxu1 %v5537_v18  ;;  %5150 = vmatprep.subr.bf16.mxu0 %v5538_v19  ;;  %v828_v58 = vadd.f32 %v5777_v61, %v767_v41  ;;  %v5922_v62 = vsel %vm1424_vm5, %v1539_v48, %v1543_v50  ;;  %v1326_v63 = vsel %vm1155_vm1, %v974_v55, 0.0  ;;  %v829_v0 = vadd.f32 %v5777_v61, %v768_v46  ;;  %v708_v35 = vld [vmem:[#allocation2 + $0xe0] sm:$0xff]  ;;  %v5546_v52 = vld [vmem:[%s7383_s4 + $0x98] sm:$0xff]  }
  0x4c   : > { %7444 = vst [vmem:[#allocation18_spill] sm:$0xff] %v5922_v62  ;;  %v745_v2 = vmul.f32 %v5772_v60, %v684_v47  ;;  %v5932_v6 = vpack.c.bf16 %v1326_v63, %v1326_v63  ;;  %v1450_v7 = vshrl.u32 %v5917_v56, 16  ;;  %v1452_v9 = vshll.u32 %v5917_v56, 16  ;;  %v5543_v46 = vld [vmem:[%s7383_s4 + $0x20] sm:$0xff]  }
  0x4d   : > { %5071 = vmatmul.mubr.bf16.vlgmr.msra.gmra.mxu0 %v5871_v15  ;;  %5087 = vmatmul.mubr.bf16.vlgmr.msra.gmra.mxu1 %v5922_v62  ;;  %vm881_vm15 = vcmp.gt.f32.partialorder %v827_v57, 0.0  ;;  %vm882_vm2 = vcmp.gt.f32.partialorder %v828_v58, 0.0  ;;  %vm883_vm3 = vcmp.gt.f32.partialorder %v829_v0, 0.0  ;;  %v942_v12 = vmul.f32 %v5785_v4, %v827_v57 }
  0x4e   : > { %5151 = vmatpush3.bf16.msra.mxu0 %v5538_v19  ;;  %5103 = vmatpush3.bf16.msra.mxu1 %v5537_v18  ;;  %v943_v13 = vmul.f32 %v5785_v4, %v828_v58  ;;  %v1454_v16 = vrot.slane %v1452_v9, 1  ;;  %v1457_v19 = vshll.u32 %v5932_v6, 16  ;;  %v944_v20 = vmul.f32 %v5785_v4, %v829_v0 }
  0x4f   : > { %5152 = vmatprep.subr.bf16.mxu0 %v5540_v33  ;;  %5104 = vmatprep.subr.bf16.mxu1 %v5539_v53  ;;  %v746_v22 = vmul.f32 %v5772_v60, %v685_v1  ;;  %v5944_v18 = vsel %vm881_vm15, %v827_v57, %v942_v12  ;;  %v747_v25 = vmul.f32 %v5772_v60, %v686_v11  ;;  %v687_v1 = vld [vmem:[#allocation2 + $0x188] sm:$0xff] }
  0x50   : > { %7445 = vst [vmem:[#allocation19_spill] sm:$0xff] %v5944_v18  ;;  %v5946_v23 = vsel %vm882_vm2, %v828_v58, %v943_v13  ;;  %v806_v26 = vadd.f32 %v5777_v61, %v745_v2  ;;  %v1455_v30 = vor.u32 %v1454_v16, %v1450_v7  ;;  %v1459_v31 = vrot.slane %v1457_v19, 1  ;;  %v5545_v19 = vld [vmem:[%s7383_s4 + $0x18] sm:$0xff]  }
  0x51   : > { %7446 = vst [vmem:[#allocation20_spill] sm:$0xff] %v5946_v23  ;;  %v998_v32 = vsel %vm883_vm3, %v829_v0, %v944_v20  ;;  %v807_v40 = vadd.f32 %v5777_v61, %v746_v22  ;;  %v808_v41 = vadd.f32 %v5777_v61, %v747_v25  ;;  %v769_v7 = vmul.f32 %v5772_v60, %v708_v35  ;;  %v5548_v35 = vld [vmem:[%s7383_s4 + $0x90] sm:$0xff]  }
  0x52   : > { %5153 = vmatpush3.bf16.msra.mxu0 %v5540_v33  ;;  %v1348_v33 = vsel %vm1096_vm0, %v5944_v18, 0.0  ;;  %5105 = vmatpush3.bf16.msra.mxu1 %v5539_v53  ;;  %v1350_v38 = vsel %vm1155_vm1, %v998_v32, 0.0  ;;  %v5968_v47 = vsel %vm1424_vm5, %v1455_v30, %v1459_v31  ;;  %vm860_vm4 = vcmp.gt.f32.partialorder %v806_v26, 0.0  ;;  %v689_v30 = vld [vmem:[#allocation2 + $0xa0] sm:$0x3] }
  0x53   : > { %5154 = vmatprep.subr.bf16.mxu0 %v5542_v3  ;;  %v5960_v39 = vpack.c.bf16 %v5946_v23, %v1348_v33  ;;  %7448 = vst [vmem:[#allocation22_spill] sm:$0xff] %v5968_v47  ;;  %v5970_v48 = vpack.c.bf16 %v1350_v38, %v1350_v38  ;;  %v921_v50 = vmul.f32 %v5785_v4, %v806_v26  ;;  %vm861_vm6 = vcmp.gt.f32.partialorder %v807_v40, 0.0  ;;  %v694_v18 = vld [vmem:[#allocation2 + $0x180] sm:$0xff] }
  0x54   : > { %5106 = vmatprep.subr.bf16.mxu1 %v5541_v14  ;;  %5074 = vmatprep.mubr.bf16.mxu0 %v5968_v47  ;;  %vm862_vm7 = vcmp.gt.f32.partialorder %v808_v41, 0.0  ;;  %v922_v58 = vmul.f32 %v5785_v4, %v807_v40  ;;  %v923_v63 = vmul.f32 %v5785_v4, %v808_v41  ;;  %v770_v9 = vmul.f32 %v5772_v60, %v709_v36 }
  0x55   : > { %7447 = vst [vmem:[#allocation21_spill] sm:$0xff] %v5960_v39  ;;  %7449 = vst [vmem:[#allocation23_spill] sm:$0xff] %v5970_v48  ;;  %v1546_v53 = vshrl.u32 %v5960_v39, 16  ;;  %v1548_v55 = vshll.u32 %v5960_v39, 16  ;;  %v1553_v57 = vshll.u32 %v5970_v48, 16  ;;  %v5982_v0 = vsel %vm860_vm4, %v806_v26, %v921_v50  ;;  %v688_v26 = vld [vmem:[#allocation2 + $0x198] sm:$0xff] }
  0x56   : > { %5155 = vmatpush3.bf16.msra.mxu0 %v5542_v3  ;;  %v1327_v3 = vsel %vm1096_vm0, %v5982_v0, 0.0  ;;  %5107 = vmatpush3.bf16.msra.mxu1 %v5541_v14  ;;  %v5989_v12 = vsel %vm861_vm6, %v807_v40, %v922_v58  ;;  %v977_v13 = vsel %vm862_vm7, %v808_v41, %v923_v63  ;;  %v771_v16 = vmul.f32 %v5772_v60, %v710_v43  ;;  %v5547_v50 = vld [vmem:[%s7383_s4 + $0x10] sm:$0xff]   ;;  %v6227_v39 = vld [vmem:[%s7381_s2] ss:$0 sm:$0xff] }
  0x57   : > { %5156 = vmatprep.subr.bf16.mxu0 %v5544_v27  ;;  %v1550_v2 = vrot.slane %v1548_v55, 1  ;;  %v1555_v11 = vrot.slane %v1553_v57, 1  ;;  %5108 = vmatprep.subr.bf16.mxu1 %v5543_v46  ;;  %v1329_v22 = vsel %vm1155_vm1, %v977_v13, 0.0  ;;  %v5998_v25 = vpack.c.bf16 %v5989_v12, %v1327_v3  ;;  %v5550_v3 = vld [vmem:[%s7383_s4 + $0x88] sm:$0xff]   ;;  %v711_v13 = vld [vmem:[#allocation2 + $0xc0] sm:$0xff] }
  0x58   : > { %v830_v14 = vadd.f32 %v5777_v61, %v769_v7  ;;  %v6001_v31 = vpack.c.bf16 %v1329_v22, %v1329_v22  ;;  %v832_v32 = vadd.f32 %v5777_v61, %v771_v16  ;;  %v748_v33 = vmul.f32 %v5772_v60, %v687_v1  ;;  %v712_v16 = vld [vmem:[#allocation2 + $0xf8] sm:$0xff] }
  0x59   : > { %v1551_v20 = vor.u32 %v1550_v2, %v1546_v53  ;;  %v1462_v38 = vshrl.u32 %v5998_v25, 16  ;;  %v1464_v40 = vshll.u32 %v5998_v25, 16  ;;  %v750_v1 = vmul.f32 %v5772_v60, %v689_v30  ;;  %v713_v30 = vld [vmem:[#allocation2 + $0x50] sm:$0x3] }
  0x5a   : > { %5157 = vmatpush3.bf16.msra.mxu0 %v5544_v27  ;;  %v831_v27 = vadd.f32 %v5777_v61, %v770_v9  ;;  %vm884_vm8 = vcmp.gt.f32.partialorder %v830_v14, 0.0  ;;  %5109 = vmatpush3.bf16.msra.mxu1 %v5543_v46  ;;  %v1469_v41 = vshll.u32 %v6001_v31, 16  ;;  %vm886_vm10 = vcmp.gt.f32.partialorder %v832_v32, 0.0 }
  0x5b   : > { %5158 = vmatprep.subr.bf16.mxu0 %v5546_v52  ;;  %v6010_v36 = vsel %vm1424_vm5, %v1551_v20, %v1555_v11  ;;  %v945_v43 = vmul.f32 %v5785_v4, %v830_v14  ;;  %5110 = vmatprep.subr.bf16.mxu1 %v5545_v19  ;;  %v1466_v53 = vrot.slane %v1464_v40, 1  ;;  %v947_v57 = vmul.f32 %v5785_v4, %v832_v32 }
  0x5c   : > { %7450 = vst [vmem:[#allocation24_spill] sm:$0xff] %v6010_v36  ;;  %5090 = vmatprep.mubr.bf16.mxu1 %v6010_v36  ;;  %vm885_vm9 = vcmp.gt.f32.partialorder %v831_v27, 0.0  ;;  %v946_v55 = vmul.f32 %v5785_v4, %v831_v27  ;;  %v749_v46 = vmul.f32 %v5772_v60, %v688_v26  ;;  %v1471_v58 = vrot.slane %v1469_v41, 1  ;;  %v692_v36 = vld [vmem:[#allocation2 + $0x48] sm:$0x3] }
  0x5d   : > { %v6023_v63 = vsel %vm884_vm8, %v830_v14, %v945_v43  ;;  %v809_v2 = vadd.f32 %v5777_v61, %v748_v33  ;;  %v1467_v7 = vor.u32 %v1466_v53, %v1462_v38  ;;  %v1001_v11 = vsel %vm886_vm10, %v832_v32, %v947_v57  ;;  %v5552_v38 = vld [vmem:[%s7383_s4 + $0x80] sm:$0xff]  }
  0x5e   : > { %5159 = vmatpush3.bf16.msra.mxu0 %v5546_v52  ;;  %v6031_v9 = vsel %vm885_vm9, %v831_v27, %v946_v55  ;;  %v1351_v52 = vsel %vm1096_vm0, %v6023_v63, 0.0  ;;  %5111 = vmatpush3.bf16.msra.mxu1 %v5545_v19  ;;  %v1353_v20 = vsel %vm1155_vm1, %v1001_v11, 0.0  ;;  %v810_v14 = vadd.f32 %v5777_v61, %v749_v46  ;;  %v5549_v27 = vld [vmem:[%s7383_s4 + $0x8] sm:$0xff]   ;;  %v5551_v11 = vld [vmem:[%s7383_s4] sm:$0xff]  }
  0x5f   : > { %5160 = vmatprep.subr.bf16.mxu0 %v5548_v35  ;;  %v6040_v22 = vpack.c.bf16 %v6031_v9, %v1351_v52  ;;  %v811_v26 = vadd.f32 %v5777_v61, %v750_v1  ;;  %5112 = vmatprep.subr.bf16.mxu1 %v5547_v50  ;;  %v6048_v32 = vsel %vm1424_vm5, %v1467_v7, %v1471_v58  ;;  %vm863_vm11 = vcmp.gt.f32.partialorder %v809_v2, 0.0  ;;  %v690_v7 = vld [vmem:[#allocation2 + $0xd8] sm:$0xff] }
  0x60   : > { %7451 = vst [vmem:[#allocation25_spill] sm:$0xff] %v6048_v32  ;;  %v6050_v19 = vpack.c.bf16 %v1353_v20, %v1353_v20  ;;  %v924_v33 = vmul.f32 %v5785_v4, %v809_v2  ;;  %5075 = vmatmul.mubr.bf16.gmra.mxu0 %v6048_v32  ;;  %vm864_vm12 = vcmp.gt.f32.partialorder %v810_v14, 0.0  ;;  %v925_v53 = vmul.f32 %v5785_v4, %v810_v14 }
  0x61   : > { %v1558_v40 = vshrl.u32 %v6040_v22, 16  ;;  %v1560_v41 = vshll.u32 %v6040_v22, 16  ;;  %vm865_vm13 = vcmp.gt.f32.partialorder %v811_v26, 0.0  ;;  %v926_v55 = vmul.f32 %v5785_v4, %v811_v26 }
  0x62   : > { %5161 = vmatpush3.bf16.msra.mxu0 %v5548_v35  ;;  %v1565_v43 = vshll.u32 %v6050_v19, 16  ;;  %v6062_v35 = vsel %vm863_vm11, %v809_v2, %v924_v33  ;;  %5113 = vmatpush3.bf16.msra.mxu1 %v5547_v50  ;;  %v772_v58 = vmul.f32 %v5772_v60, %v711_v13  ;;  %v773_v1 = vmul.f32 %v5772_v60, %v712_v16  ;;  %v691_v33 = vld [vmem:[#allocation2 + $0x1a0] sm:$0xff] }
  0x63   : > { %5162 = vmatprep.subr.bf16.mxu0 %v5550_v3  ;;  %v1562_v57 = vrot.slane %v1560_v41, 1  ;;  %v1330_v46 = vsel %vm1096_vm0, %v6062_v35, 0.0  ;;  %5114 = vmatprep.subr.bf16.mxu1 %v5549_v27  ;;  %v6073_v2 = vsel %vm864_vm12, %v810_v14, %v925_v53  ;;  %v980_v50 = vsel %vm865_vm13, %v811_v26, %v926_v55  ;;  %v6086_v14 = vld [vmem:[%s7383_s4 + $0x138] sm:$0xff]  }
  0x64   : > { %v1567_v52 = vrot.slane %v1565_v43, 1  ;;  %v774_v20 = vmul.f32 %v5772_v60, %v713_v30  ;;  %v1332_v13 = vsel %vm1155_vm1, %v980_v50, 0.0  ;;  %v6080_v16 = vpack.c.bf16 %v6073_v2, %v1330_v46 }
  0x65   : > { %v1563_v41 = vor.u32 %v1562_v57, %v1558_v40  ;;  %v833_v49 = vadd.f32 %v5777_v61, %v772_v58  ;;  %v6088_v26 = vpack.c.bf16 %v1332_v13, %v1332_v13  ;;  %v751_v40 = vmul.f32 %v5772_v60, %v690_v7  ;;  %v6101_v57 = vld [vmem:[%s7383_s4 + $0xf8] sm:$0xff]  }
  0x66   : > { %5163 = vmatpush3.bf16.msra.mxu0 %v5550_v3  ;;  %v834_v3 = vadd.f32 %v5777_v61, %v773_v1  ;;  %v835_v30 = vadd.f32 %v5777_v61, %v774_v20  ;;  %5115 = vmatpush3.bf16.msra.mxu1 %v5549_v27  ;;  %v1474_v53 = vshrl.u32 %v6080_v16, 16  ;;  %v1476_v55 = vshll.u32 %v6080_v16, 16 }
  0x67   : > { %5164 = vmatprep.subr.bf16.mxu0 %v5552_v38  ;;  %v6094_v43 = vsel %vm1424_vm5, %v1563_v41, %v1567_v52  ;;  %vm887_vm14 = vcmp.gt.f32.partialorder %v833_v49, 0.0  ;;  %5116 = vmatprep.subr.bf16.mxu1 %v5551_v11  ;;  %v1481_v46 = vshll.u32 %v6088_v26, 16  ;;  %v948_v27 = vmul.f32 %v5785_v4, %v833_v49 }
  0x68   : > { %7452 = vst [vmem:[#allocation26_spill] sm:$0xff] %v6094_v43  ;;  %5091 = vmatmul.mubr.bf16.gmra.mxu1 %v6094_v43  ;;  %vm888_vm15 = vcmp.gt.f32.partialorder %v834_v3, 0.0  ;;  %vm889_vm2 = vcmp.gt.f32.partialorder %v835_v30, 0.0  ;;  %v1478_v58 = vrot.slane %v1476_v55, 1  ;;  %v949_v1 = vmul.f32 %v5785_v4, %v834_v3 }
  0x69   : > { %v950_v7 = vmul.f32 %v5785_v4, %v835_v30  ;;  %v752_v52 = vmul.f32 %v5772_v60, %v691_v33  ;;  %v1483_v50 = vrot.slane %v1481_v46, 1  ;;  %v6110_v20 = vsel %vm887_vm14, %v833_v49, %v948_v27  ;;  %v715_v27 = vld [vmem:[#allocation2] sm:$0xff] }
  0x6a   : > { %5165 = vmatpush3.bf16.msra.mxu0 %v5552_v38  ;;  %v753_v41 = vmul.f32 %v5772_v60, %v692_v36  ;;  %v812_v13 = vadd.f32 %v5777_v61, %v751_v40  ;;  %5117 = vmatpush3.bf16.msra.mxu1 %v5551_v11  ;;  %v1479_v43 = vor.u32 %v1478_v58, %v1474_v53  ;;  %v1354_v55 = vsel %vm1096_vm0, %v6110_v20, 0.0  ;;  %v714_v40 = vld [vmem:[#allocation2 + $0x38] sm:$0xff] }
  0x6b   : > { %5246 = vmatprep.subr.bf16.mxu0 %v6086_v14  ;;  %v6114_v62 = vsel %vm888_vm15, %v834_v3, %v949_v1  ;;  %v1004_v38 = vsel %vm889_vm2, %v835_v30, %v950_v7  ;;  %5198 = vmatprep.subr.bf16.mxu1 %v6101_v57  ;;  %v813_v36 = vadd.f32 %v5777_v61, %v752_v52  ;;  %v716_v3 = vld [vmem:[#allocation2 + $0x30] sm:$0x3] }
  0x6c   : > { %v1356_v33 = vsel %vm1155_vm1, %v1004_v38, 0.0  ;;  %v6123_v49 = vpack.c.bf16 %v6114_v62, %v1354_v55  ;;  %v814_v11 = vadd.f32 %v5777_v61, %v753_v41  ;;  %v6128_v30 = vsel %vm1424_vm5, %v1479_v43, %v1483_v50  ;;  %v693_v41 = vld [vmem:[#allocation2 + $0x88] sm:$0xff] }
  0x6d   : > { %7453 = vst [vmem:[#allocation27_spill] sm:$0xff] %v6128_v30  ;;  %v6130_v53 = vpack.c.bf16 %v1356_v33, %v1356_v33  ;;  %vm866_vm3 = vcmp.gt.f32.partialorder %v812_v13, 0.0  ;;  %v927_v46 = vmul.f32 %v5785_v4, %v812_v13  ;;  %5078 = vmatprep.mubr.bf16.mxu0 %v6128_v30  ;;  %vm867_vm4 = vcmp.gt.f32.partialorder %v813_v36, 0.0 }
  0x6e   : > { %v1570_v58 = vshrl.u32 %v6123_v49, 16  ;;  %v1572_v1 = vshll.u32 %v6123_v49, 16  ;;  %vm868_vm6 = vcmp.gt.f32.partialorder %v814_v11, 0.0  ;;  %v928_v52 = vmul.f32 %v5785_v4, %v813_v36 }
  0x6f   : > { %v1577_v7 = vshll.u32 %v6130_v53, 16  ;;  %v929_v43 = vmul.f32 %v5785_v4, %v814_v11  ;;  %v6139_v50 = vsel %vm866_vm3, %v812_v13, %v927_v46  ;;  %v775_v33 = vmul.f32 %v5772_v60, %v714_v40 }
  0x70   : > { %v1574_v38 = vrot.slane %v1572_v1, 1  ;;  %v1333_v55 = vsel %vm1096_vm0, %v6139_v50, 0.0  ;;  %v776_v5 = vmul.f32 %v5772_v60, %v715_v27  ;;  %v6146_v32 = vsel %vm867_vm4, %v813_v36, %v928_v52 }
  0x71   : > { %v1579_v30 = vrot.slane %v1577_v7, 1  ;;  %v983_v47 = vsel %vm868_vm6, %v814_v11, %v929_v43  ;;  %v777_v15 = vmul.f32 %v5772_v60, %v716_v3  ;;  %v6152_v46 = vpack.c.bf16 %v6146_v32, %v1333_v55 }
  0x72   : > { %v1575_v23 = vor.u32 %v1574_v38, %v1570_v58  ;;  %v1335_v13 = vsel %vm1155_vm1, %v983_v47, 0.0  ;;  %v836_v1 = vadd.f32 %v5777_v61, %v775_v33  ;;  %v837_v40 = vadd.f32 %v5777_v61, %v776_v5  ;;  %v695_v58 = vld [vmem:[#allocation2 + $0x170] sm:$0x3] }
  0x73   : > { %v6155_v10 = vpack.c.bf16 %v1335_v13, %v1335_v13  ;;  %v838_v36 = vadd.f32 %v5777_v61, %v777_v15  ;;  %v754_v11 = vmul.f32 %v5772_v60, %v693_v41  ;;  %v1486_v27 = vshrl.u32 %v6152_v46, 16 }
  0x74   : > { %v6161_v3 = vsel %vm1424_vm5, %v1575_v23, %v1579_v30  ;;  %v1488_v47 = vshll.u32 %v6152_v46, 16  ;;  %vm890_vm7 = vcmp.gt.f32.partialorder %v836_v1, 0.0  ;;  %vm891_vm8 = vcmp.gt.f32.partialorder %v837_v40, 0.0 }
  0x75   : > { %7454 = vst [vmem:[#allocation28_spill] sm:$0xff] %v6161_v3  ;;  %5094 = vmatprep.mubr.bf16.mxu1 %v6161_v3  ;;  %v1493_v7 = vshll.u32 %v6155_v10, 16  ;;  %vm892_vm9 = vcmp.gt.f32.partialorder %v838_v36, 0.0  ;;  %v951_v5 = vmul.f32 %v5785_v4, %v836_v1  ;;  %v952_v52 = vmul.f32 %v5785_v4, %v837_v40 }
  0x76   : > { %v1490_v15 = vrot.slane %v1488_v47, 1  ;;  %v953_v23 = vmul.f32 %v5785_v4, %v838_v36  ;;  %v755_v30 = vmul.f32 %v5772_v60, %v694_v18  ;;  %v756_v38 = vmul.f32 %v5772_v60, %v695_v58  ;;  %v717_v58 = vld [vmem:[#allocation2 + $0xe8] sm:$0xff] }
  0x77   : > { %v1495_v43 = vrot.slane %v1493_v7, 1  ;;  %v6171_v41 = vsel %vm890_vm7, %v836_v1, %v951_v5  ;;  %v815_v55 = vadd.f32 %v5777_v61, %v754_v11  ;;  %v6175_v13 = vsel %vm891_vm8, %v837_v40, %v952_v52  ;;  %v719_v11 = vld [vmem:[#allocation2 + $0xc8] sm:$0x3]  ;;  %v718_v7 = vld [vmem:[#allocation2 + $0x110] sm:$0xff] }
  0x78   : > { %v1491_v33 = vor.u32 %v1490_v15, %v1486_v27  ;;  %v1007_v3 = vsel %vm892_vm9, %v838_v36, %v953_v23  ;;  %v1357_v47 = vsel %vm1096_vm0, %v6171_v41, 0.0  ;;  %v816_v1 = vadd.f32 %v5777_v61, %v755_v30  ;;  %v6200_v15 = vld [vmem:[%s7382_s3] ss:$0 sm:$0xff] }
  0x79   : > { %v1359_v8 = vsel %vm1155_vm1, %v1007_v3, 0.0  ;;  %v6183_v18 = vpack.c.bf16 %v6175_v13, %v1357_v47  ;;  %v817_v60 = vadd.f32 %v5777_v61, %v756_v38  ;;  %vm869_vm10 = vcmp.gt.f32.partialorder %v815_v55, 0.0  ;;  %7456 = vst [vmem:[#allocation30_spill] sm:$0xff] %v6200_v15  ;;  %v696_v23 = vld [vmem:[#allocation2 + $0x80] sm:$0xff] }
  0x7a   : > { %v6188_v40 = vsel %vm1424_vm5, %v1491_v33, %v1495_v43  ;;  %v6190_v36 = vpack.c.bf16 %v1359_v8, %v1359_v8  ;;  %v930_v27 = vmul.f32 %v5785_v4, %v815_v55  ;;  %vm870_vm11 = vcmp.gt.f32.partialorder %v816_v1, 0.0  ;;  %v6212_v38 = vld [vmem:[%s7380_s1] ss:$0 sm:$0xff] }
  0x7b   : > { %7455 = vst [vmem:[#allocation29_spill] sm:$0xff] %v6188_v40  ;;  %5079 = vmatmul.mubr.bf16.gmra.mxu0 %v6188_v40  ;;  %v1582_v3 = vshrl.u32 %v6183_v18, 16  ;;  %v1584_v5 = vshll.u32 %v6183_v18, 16  ;;  %vm871_vm12 = vcmp.gt.f32.partialorder %v817_v60, 0.0  ;;  %v931_v8 = vmul.f32 %v6200_v15, %v816_v1 }
  0x7c   : > { %v1589_v61 = vshll.u32 %v6190_v36, 16  ;;  %v932_v4 = vmul.f32 %v6200_v15, %v817_v60  ;;  %v6204_v52 = vsel %vm869_vm10, %v815_v55, %v930_v27  ;;  %v778_v33 = vmul.f32 %v6212_v38, %v717_v58 }
  0x7d   : > { %7457 = vst [vmem:[#allocation31_spill] sm:$0xff] %v6204_v52  ;;  %v1586_v30 = vrot.slane %v1584_v5, 1  ;;  %v1336_v43 = vsel %vm1096_vm0, %v6204_v52, 0.0  ;;  %v779_v47 = vmul.f32 %v6212_v38, %v718_v7  ;;  %v6216_v24 = vsel %vm870_vm11, %v816_v1, %v931_v8  ;;  %v697_v7 = vld [vmem:[#allocation2 + $0x140] sm:$0xff] }
  0x7e   : > { %v1591_v40 = vrot.slane %v1589_v61, 1  ;;  %7458 = vst [vmem:[#allocation32_spill] sm:$0xff] %v6216_v24  ;;  %v986_v55 = vsel %vm871_vm12, %v817_v60, %v932_v4  ;;  %v780_v27 = vmul.f32 %v6212_v38, %v719_v11  ;;  %v6222_v48 = vpack.c.bf16 %v6216_v24, %v1336_v43  ;;  %v698_v1 = vld [vmem:[#allocation2 + $0x20] sm:$0x3] }
  0x7f   : > { %v1587_v5 = vor.u32 %v1586_v30, %v1582_v3  ;;  %v1338_v21 = vsel %vm1155_vm1, %v986_v55, 0.0  ;;  %v839_v58 = vadd.f32 %v6227_v39, %v778_v33  ;;  %v840_v60 = vadd.f32 %v6227_v39, %v779_v47 }
  0x80   : > { %7459 = vst [vmem:[#allocation33_spill] sm:$0xff] %v6222_v48  ;;  %v6230_v61 = vpack.c.bf16 %v1338_v21, %v1338_v21  ;;  %v841_v11 = vadd.f32 %v6227_v39, %v780_v27  ;;  %v757_v3 = vmul.f32 %v6212_v38, %v696_v23  ;;  %v1498_v4 = vshrl.u32 %v6222_v48, 16 }
  0x81   : > { %v6236_v8 = vsel %vm1424_vm5, %v1587_v5, %v1591_v40  ;;  %v1500_v30 = vshll.u32 %v6222_v48, 16  ;;  %vm893_vm13 = vcmp.gt.f32.partialorder %v839_v58, 0.0  ;;  %vm894_vm14 = vcmp.gt.f32.partialorder %v840_v60, 0.0 }
  0x82   : > { %7460 = vst [vmem:[#allocation34_spill] sm:$0xff] %v6230_v61  ;;  %7461 = vst [vmem:[#allocation35_spill] sm:$0xff] %v6236_v8  ;;  %5095 = vmatmul.mubr.bf16.gmra.mxu1 %v6236_v8  ;;  %v1505_v43 = vshll.u32 %v6230_v61, 16  ;;  %vm895_vm15 = vcmp.gt.f32.partialorder %v841_v11, 0.0  ;;  %v954_v21 = vmul.f32 %v6200_v15, %v839_v58  ;;  %v955_v47 = vmul.f32 %v6200_v15, %v840_v60 }
  0x83   : > { %v1502_v33 = vrot.slane %v1500_v30, 1  ;;  %v956_v23 = vmul.f32 %v6200_v15, %v841_v11  ;;  %v758_v40 = vmul.f32 %v6212_v38, %v697_v7  ;;  %v759_v5 = vmul.f32 %v6212_v38, %v698_v1 }
  0x84   : > { %v1507_v55 = vrot.slane %v1505_v43, 1  ;;  %v6246_v27 = vsel %vm893_vm13, %v839_v58, %v954_v21  ;;  %v818_v8 = vadd.f32 %v6227_v39, %v757_v3  ;;  %v6250_v17 = vsel %vm894_vm14, %v840_v60, %v955_v47  ;;  %v720_v43 = vld [vmem:[#allocation2 + $0x1a8] sm:$0xff]  ;;  %v722_v3 = vld [vmem:[#allocation2 + $0x150] sm:$0x3] }
  0x85   : > { %v1503_v28 = vor.u32 %v1502_v33, %v1498_v4  ;;  %v1010_v24 = vsel %vm895_vm15, %v841_v11, %v956_v23  ;;  %v1360_v30 = vsel %vm1096_vm0, %v6246_v27, 0.0  ;;  %v819_v58 = vadd.f32 %v6227_v39, %v758_v40  ;;  %v721_v21 = vld [vmem:[#allocation2 + $0x70] sm:$0xff] }
  0x86   : > { %v1362_v52 = vsel %vm1155_vm1, %v1010_v24, 0.0  ;;  %v6258_v7 = vpack.c.bf16 %v6250_v17, %v1360_v30  ;;  %v820_v1 = vadd.f32 %v6227_v39, %v759_v5  ;;  %vm872_vm2 = vcmp.gt.f32.partialorder %v818_v8, 0.0 }
  0x87   : > { %v6263_v60 = vsel %vm1424_vm5, %v1503_v28, %v1507_v55  ;;  %v6265_v11 = vpack.c.bf16 %v1362_v52, %v1362_v52  ;;  %v933_v4 = vmul.f32 %v6200_v15, %v818_v8  ;;  %vm873_vm3 = vcmp.gt.f32.partialorder %v819_v58, 0.0 }
  0x88   : > { %7462 = vst [vmem:[#allocation36_spill] sm:$0xff] %v6263_v60  ;;  %5082 = vmatprep.mubr.bf16.mxu0 %v6263_v60  ;;  %v1594_v24 = vshrl.u32 %v6258_v7, 16  ;;  %v1596_v33 = vshll.u32 %v6258_v7, 16  ;;  %vm874_vm4 = vcmp.gt.f32.partialorder %v820_v1, 0.0  ;;  %v934_v23 = vmul.f32 %v6200_v15, %v819_v58 }
  0x89   : > { %v1601_v47 = vshll.u32 %v6265_v11, 16  ;;  %v935_v28 = vmul.f32 %v6200_v15, %v820_v1  ;;  %v6274_v52 = vsel %vm872_vm2, %v818_v8, %v933_v4  ;;  %v781_v5 = vmul.f32 %v6212_v38, %v720_v43 }
  0x8a   : > { %7463 = vst [vmem:[#allocation37_spill] sm:$0xff] %v6274_v52  ;;  %v1598_v40 = vrot.slane %v1596_v33, 1  ;;  %v1339_v55 = vsel %vm1096_vm0, %v6274_v52, 0.0  ;;  %v782_v30 = vmul.f32 %v6212_v38, %v721_v21  ;;  %v6281_v34 = vsel %vm873_vm3, %v819_v58, %v934_v23 }
  0x8b   : > { %v1603_v60 = vrot.slane %v1601_v47, 1  ;;  %v989_v29 = vsel %vm874_vm4, %v820_v1, %v935_v28  ;;  %v783_v61 = vmul.f32 %v6212_v38, %v722_v3  ;;  %v6287_v4 = vpack.c.bf16 %v6281_v34, %v1339_v55 }
  0x8c   : > { %v1599_v48 = vor.u32 %v1598_v40, %v1594_v24  ;;  %v1341_v8 = vsel %vm1155_vm1, %v989_v29, 0.0  ;;  %v842_v33 = vadd.f32 %v6227_v39, %v781_v5  ;;  %v843_v43 = vadd.f32 %v6227_v39, %v782_v30 }
  0x8d   : > { %v6290_v52 = vpack.c.bf16 %v1341_v8, %v1341_v8  ;;  %v844_v21 = vadd.f32 %v6227_v39, %v783_v61  ;;  %v1510_v1 = vshrl.u32 %v6287_v4, 16  ;;  %v1512_v3 = vshll.u32 %v6287_v4, 16 }
  0x8e   : > { %v6295_v58 = vsel %vm1424_vm5, %v1599_v48, %v1603_v60  ;;  %vm896_vm6 = vcmp.gt.f32.partialorder %v842_v33, 0.0  ;;  %vm897_vm7 = vcmp.gt.f32.partialorder %v843_v43, 0.0  ;;  %v957_v24 = vmul.f32 %v6200_v15, %v842_v33 }
  0x8f   : > { %7464 = vst [vmem:[#allocation38_spill] sm:$0xff] %v6295_v58  ;;  %5098 = vmatprep.mubr.bf16.mxu1 %v6295_v58  ;;  %v1517_v29 = vshll.u32 %v6290_v52, 16  ;;  %vm898_vm8 = vcmp.gt.f32.partialorder %v844_v21, 0.0  ;;  %v1514_v47 = vrot.slane %v1512_v3, 1  ;;  %v958_v23 = vmul.f32 %v6200_v15, %v843_v43 }
  0x90   : > { %v959_v61 = vmul.f32 %v6200_v15, %v844_v21  ;;  %v1011_v60 = vsel %vm896_vm6, %v842_v33, %v957_v24  ;;  %v5631_v28 = vmov 0.0|0.0   ;;  %v6315_v15 = vpack.c.bf16 %v5989_v12, %v5982_v0 }
  0x91   : > { %v1519_v48 = vrot.slane %v1517_v29, 1  ;;  %v6305_v40 = vrot.slane %v5631_v28, 1  ;;  %v1515_v55 = vor.u32 %v1514_v47, %v1510_v1  ;;  %v1012_v5 = vsel %vm897_vm7, %v843_v43, %v958_v23 }
  0x92   : > { %v1013_v30 = vsel %vm898_vm8, %v844_v21, %v959_v61  ;;  %v1363_v8 = vsel %vm1096_vm0, %v1011_v60, 0.0  ;;  %v2110_v43 = vrot.slane %v5998_v25, 1  ;;  %v2111_v21 = vrot.slane %v6001_v31, 1 }
  0x93   : > { %7465 = vst [vmem:[#allocation39_spill] sm:$0xff] %v6305_v40  ;;  %v1365_v58 = vsel %vm1155_vm1, %v1013_v30, 0.0  ;;  %v6311_v3 = vpack.c.bf16 %v1012_v5, %v1363_v8  ;;  %v6318_v33 = vsel %vm1424_vm5, %v1515_v55, %v1519_v48  ;;  %vm2100_vm9 = vcmask 1046528  }
  0x94   : > { %v6320_v29 = vpack.c.bf16 %v1365_v58, %v1365_v58  ;;  %5083 = vmatmul.mubr.bf16.gmra.mxu0 %v6318_v33  ;;  %v6329_v0 = vpack.c.bf16 %v6073_v2, %v6062_v35  ;;  %v2104_v58 = vrot.slane %v5839_v42, 1  ;;  %v2105_v25 = vrot.slane %v5842_v44, 1 }
  0x95   : > { %v1606_v1 = vshrl.u32 %v6311_v3, 16  ;;  %v1608_v24 = vshll.u32 %v6311_v3, 16  ;;  %5166 = vmatprep.mubr.bf16.mxu0 %v6305_v40  ;;  %v6336_v31 = vsel %vm2100_vm9, %v2110_v43, %v2111_v21  ;;  %v2107_v23 = vrot.slane %v5917_v56, 1  ;;  %v5556_v56 = vld [vmem:[%s7383_s4 + $0x130] sm:$0xff]   ;;  %v7469_v21 = vld [vmem:[#allocation34_spill] sm:$0xff] }
  0x96   : > { %v1613_v12 = vshll.u32 %v6320_v29, 16  ;;  %v2108_v61 = vrot.slane %v5932_v6, 1  ;;  %v6342_v35 = vpack.c.bf16 %v6146_v32, %v6139_v50  ;;  %v6345_v55 = vsel %vm2100_vm9, %v2104_v58, %v2105_v25  ;;  %v5564_v58 = vld [vmem:[%s7383_s4 + $0x110] sm:$0xff]   ;;  %v5561_v25 = vld [vmem:[%s7383_s4 + $0xd8] sm:$0xff]  }
  0x97   : > { %v1610_v47 = vrot.slane %v1608_v24, 1  ;;  %v6361_v6 = vpack.c.bf16 %v5908_v51, %v5903_v45  ;;  %v6365_v32 = vpack.c.bf16 %v6031_v9, %v6023_v63  ;;  %v2113_v50 = vrot.slane %v6080_v16, 1  ;;  %v5558_v51 = vld [vmem:[%s7383_s4 + $0x128] sm:$0xff]   ;;  %v5562_v24 = vld [vmem:[%s7383_s4 + $0x118] sm:$0xff]  }
  0x98   : > { %v1615_v2 = vrot.slane %v1613_v12, 1  ;;  %v6351_v44 = vsel %vm2100_vm9, %v2107_v23, %v2108_v61  ;;  %v2134_v30 = vrot.slane %v6040_v22, 1  ;;  %v2135_v8 = vrot.slane %v6050_v19, 1  ;;  %v5559_v12 = vld [vmem:[%s7383_s4 + $0xe0] sm:$0xff]   ;;  %v7470_v61 = vld [vmem:[#allocation10_spill] sm:$0xff] }
  0x99   : > { %v1611_v48 = vor.u32 %v1610_v47, %v1606_v1  ;;  %v6374_v43 = vpack.c.bf16 %v6114_v62, %v6110_v20  ;;  %v2114_v45 = vrot.slane %v6088_v26, 1  ;;  %v2137_v63 = vrot.slane %v6123_v49, 1 }
  0x9a   : > { %v2138_v9 = vrot.slane %v6130_v53, 1  ;;  %v6384_v22 = vpack.c.bf16 %v6175_v13, %v6171_v41  ;;  %v6387_v19 = vsel %vm2100_vm9, %v2134_v30, %v2135_v8  ;;  %v2140_v62 = vrot.slane %v6183_v18, 1  ;;  %v7472_v30 = vld [vmem:[#allocation31_spill] sm:$0xff]  ;;  %v7473_v8 = vld [vmem:[#allocation32_spill] sm:$0xff] }
  0x9b   : > { %v6348_v42 = vsel %vm1424_vm5, %v1611_v48, %v1615_v2  ;;  %v2141_v16 = vrot.slane %v6190_v36, 1  ;;  %vm5632_vm10 = vmmov 1   ;;  %v2143_v49 = vrot.slane %v6258_v7, 1  ;;  %v5557_v7 = vld [vmem:[%s7383_s4 + $0xe8] sm:$0xff]   ;;  %v7471_v48 = vld [vmem:[#allocation11_spill] sm:$0xff] }
  0x9c   : > { %5099 = vmatmul.mubr.bf16.gmra.mxu1 %v6348_v42  ;;  %5167 = vmatmul.mubr.bf16.vlgmr.msra.gmra.mxu0 %v6345_v55  ;;  %vm6397_vm11 = vmpackc.low %vm5632_vm10, %vm1096_vm0  ;;  %v6402_v20 = vsel %vm2100_vm9, %v2137_v63, %v2138_v9  ;;  %v2144_v53 = vrot.slane %v6265_v11, 1  ;;  %v6406_v41 = vpack.c.bf16 %v1012_v5, %v1011_v60  ;;  %v6421_v36 = vsel %vm2100_vm9, %v2113_v50, %v2114_v45  ;;  %v7468_v5 = vld [vmem:[#allocation33_spill] sm:$0xff]  ;;  %v5566_v50 = vld [vmem:[%s7383_s4 + $0x108] sm:$0xff]  }
  0x9d   : > { %5118 = vmatprep.mubr.bf16.mxu1 %v5631_v28  ;;  %5247 = vmatpush3.bf16.msra.mxu0 %v6086_v14  ;;  %v6393_v14 = vpack.c.bf16 %v6250_v17, %v6246_v27  ;;  %v5555_v17 = vld [vmem:[%s7383_s4 + $0xf0] sm:$0xff]   ;;  %v6412_v13 = vsel %vm2100_vm9, %v2140_v62, %v2141_v16  ;;  %v5560_v27 = vld [vmem:[%s7383_s4 + $0x120] sm:$0xff]   ;;  %v2116_v11 = vrot.slane %v6152_v46, 1  ;;  %v2117_v60 = vrot.slane %v6155_v10, 1  ;;  %v5565_v9 = vld [vmem:[%s7383_s4 + $0xc8] sm:$0xff]  }
  0x9e   : > { %5170 = vmatprep.mubr.bf16.mxu0 %v6351_v44  ;;  %5248 = vmatprep.subr.bf16.mxu0 %v5556_v56  ;;  %v6415_v18 = vsel %vm2100_vm9, %v2143_v49, %v2144_v53  ;;  %v2120_v1 = vrot.slane %v7469_v21, 1  ;;  %v2122_v47 = vrot.slane %v6287_v4, 1  ;;  %v2123_v23 = vrot.slane %v6290_v52, 1  ;;  %v5563_v52 = vld [vmem:[%s7383_s4 + $0xd0] sm:$0xff]   ;;  %v5568_v63 = vld [vmem:[%s7383_s4 + $0x100] sm:$0xff]   ;;  %v7474_v62 = vld [vmem:[#allocation16_spill] sm:$0xff] }
  0x9f   : > { %v6446_v46 = vsel %vm2100_vm9, %v2116_v11, %v2117_v60  ;;  %v2125_v2 = vrot.slane %v7470_v61, 1  ;;  %v6474_v45 = vpack.c.bf16 %v7473_v8, %v7472_v30  ;;  %v2128_v16 = vrot.slane %v7474_v62, 1  ;;  %v7475_v49 = vld [vmem:[#allocation17_spill] sm:$0xff]  ;;  %v7478_v60 = vld [vmem:[#allocation23_spill] sm:$0xff]  ;;  %v7479_v21 = vld [vmem:[#allocation8_spill] sm:$0xff] }
  0xa0   : > { %v6480_v4 = vsel %vm2100_vm9, %v2122_v47, %v2123_v23  ;;  %v2129_v53 = vrot.slane %v7475_v49, 1  ;;  %v7481_v47 = vld [vmem:[#allocation13_spill] sm:$0xff]  ;;  %v7482_v23 = vld [vmem:[#allocation14_spill] sm:$0xff] }
  0xa1   : > { %5249 = vmatpush3.bf16.msra.mxu0 %v5556_v56  ;;  %v2126_v56 = vrot.slane %v7471_v48, 1  ;;  %v6539_v61 = vpack.c.bf16 %v7482_v23, %v7481_v47  ;;  %v7484_v48 = vld [vmem:[#allocation20_spill] sm:$0xff]  ;;  %v725_v30 = vld [vmem:[#allocation2 + $0x10] sm:$0x3] }
  0xa2   : > { %5250 = vmatprep.subr.bf16.mxu0 %v5558_v51  ;;  %v724_v8 = vld [vmem:[#allocation2 + $0xf0] sm:$0xff] }
  0xa4   : > { %5119 = vmatmul.mubr.msk.bf16.vlgmr.msra.gmra.mxu1 %vm6397_vm11, %v5830_v37  ;;  %5171 = vmatmul.mubr.bf16.gmra.mxu0 %v6336_v31 }
  0xa5   : > { %5199 = vmatpush3.bf16.msra.mxu1 %v6101_v57  ;;  %5122 = vmatprep.mubr.msk.bf16.mxu1 %vm6397_vm11, %v6361_v6  ;;  %v2119_v57 = vrot.slane %v7468_v5, 1  ;;  %v2132_v5 = vrot.slane %v7478_v60, 1 }
  0xa6   : > { %5200 = vmatprep.subr.bf16.mxu1 %v5555_v17  ;;  %5174 = vmatprep.mubr.bf16.mxu0 %v6421_v36 }
  0xa7   : > { %5251 = vmatpush3.bf16.msra.mxu0 %v5558_v51  ;;  %v6452_v10 = vsel %vm2100_vm9, %v2119_v57, %v2120_v1  ;;  %v6486_v51 = vsel %vm2100_vm9, %v2125_v2, %v2126_v56  ;;  %v6510_v57 = vld [vmem:[%s7383_s4 + $0x1b8] sm:$0xff]   ;;  %v7480_v1 = vld [vmem:[#allocation9_spill] sm:$0xff]  ;;  %v7483_v2 = vld [vmem:[#allocation19_spill] sm:$0xff] }
  0xa8   : > { %5252 = vmatprep.subr.bf16.mxu0 %v5560_v27  ;;  %v6543_v56 = vpack.c.bf16 %v7484_v48, %v7483_v2  ;;  %v5572_v48 = vld [vmem:[%s7383_s4 + $0x1b0] sm:$0xff]  }
  0xa9   : > { %5201 = vmatpush3.bf16.msra.mxu1 %v5555_v17  ;;  %v7476_v17 = vld [vmem:[#allocation37_spill] sm:$0xff] }
  0xaa   : > { %5202 = vmatprep.subr.bf16.mxu1 %v5557_v7 }
  0xab   : > { %5253 = vmatpush3.bf16.msra.mxu0 %v5560_v27  ;;  %v6503_v27 = vpack.c.bf16 %v6281_v34, %v7476_v17  ;;  %v5567_v34 = vld [vmem:[%s7383_s4 + $0xc0] sm:$0xff]  }
  0xac   : > { %5123 = vmatmul.mubr.msk.bf16.gmra.mxu1 %vm6397_vm11, %v6315_v15  ;;  %5254 = vmatprep.subr.bf16.mxu0 %v5562_v24 }
  0xad   : > { %5126 = vmatprep.mubr.msk.bf16.mxu1 %vm6397_vm11, %v6329_v0  ;;  %5203 = vmatpush3.bf16.msra.mxu1 %v5557_v7  ;;  %v7477_v7 = vld [vmem:[#allocation21_spill] sm:$0xff] }
  0xae   : > { %5175 = vmatmul.mubr.bf16.gmra.mxu0 %v6446_v46  ;;  %5204 = vmatprep.subr.bf16.mxu1 %v5559_v12  ;;  %v2131_v11 = vrot.slane %v7477_v7, 1 }
  0xaf   : > { %5178 = vmatprep.mubr.bf16.mxu0 %v6452_v10  ;;  %5255 = vmatpush3.bf16.msra.mxu0 %v5562_v24  ;;  %v6514_v24 = vpack.c.bf16 %v7480_v1, %v7479_v21 }
  0xb0   : > { %5256 = vmatprep.subr.bf16.mxu0 %v5564_v58 }
  0xb1   : > { %5205 = vmatpush3.bf16.msra.mxu1 %v5559_v12  ;;  %v6520_v12 = vsel %vm2100_vm9, %v2128_v16, %v2129_v53  ;;  %v7485_v53 = vld [vmem:[#allocation30_spill] sm:$0xff] }
  0xb2   : > { %5206 = vmatprep.subr.bf16.mxu1 %v5561_v25 }
  0xb3   : > { %5257 = vmatpush3.bf16.msra.mxu0 %v5564_v58  ;;  %v6526_v58 = vsel %vm2100_vm9, %v2131_v11, %v2132_v5  ;;  %v2147_v11 = vrot.slane %v6320_v29, 1 }
  0xb4   : > { %5127 = vmatmul.mubr.msk.bf16.gmra.mxu1 %vm6397_vm11, %v6342_v35  ;;  %5258 = vmatprep.subr.bf16.mxu0 %v5566_v50 }
  0xb5   : > { %5130 = vmatprep.mubr.msk.bf16.mxu1 %vm6397_vm11, %v6474_v45  ;;  %5207 = vmatpush3.bf16.msra.mxu1 %v5561_v25  ;;  %v5569_v25 = vld [vmem:[%s7383_s4 + $0x178] sm:$0xff]  }
  0xb6   : > { %5179 = vmatmul.mubr.bf16.gmra.mxu0 %v6480_v4  ;;  %5208 = vmatprep.subr.bf16.mxu1 %v5563_v52 }
  0xb7   : > { %5182 = vmatprep.mubr.bf16.mxu0 %v6486_v51  ;;  %5259 = vmatpush3.bf16.msra.mxu0 %v5566_v50  ;;  %v723_v50 = vld [vmem:[#allocation2 + $0x78] sm:$0xff] }
  0xb8   : > { %5260 = vmatprep.subr.bf16.mxu0 %v5568_v63 }
  0xb9   : > { %5209 = vmatpush3.bf16.msra.mxu1 %v5563_v52  ;;  %v784_v52 = vmul.f32 %v6212_v38, %v723_v50  ;;  %v7487_v50 = vld [vmem:[#allocation22_spill] sm:$0xff] }
  0xba   : > { %5210 = vmatprep.subr.bf16.mxu1 %v5565_v9 }
  0xbb   : > { %5261 = vmatpush3.bf16.msra.mxu0 %v5568_v63  ;;  %v786_v63 = vmul.f32 %v6212_v38, %v725_v30  ;;  %v845_v62 = vadd.f32 %v6227_v39, %v784_v52  ;;  %v7488_v30 = vld [vmem:[#allocation25_spill] sm:$0xff] }
  0xbc   : > { %5131 = vmatmul.mubr.msk.bf16.gmra.mxu1 %vm6397_vm11, %v6503_v27  ;;  %5342 = vmatprep.subr.bf16.mxu0 %v6510_v57  ;;  %v5571_v52 = vld [vmem:[%s7383_s4 + $0x170] sm:$0xff]  }
  0xbd   : > { %5134 = vmatprep.mubr.msk.bf16.mxu1 %vm6397_vm11, %v6514_v24  ;;  %5211 = vmatpush3.bf16.msra.mxu1 %v5565_v9  ;;  %v785_v9 = vmul.f32 %v6212_v38, %v724_v8  ;;  %v847_v16 = vadd.f32 %v6227_v39, %v786_v63  ;;  %v960_v17 = vmul.f32 %v7485_v53, %v845_v62  ;;  %vm899_vm12 = vcmp.gt.f32.partialorder %v845_v62, 0.0  ;;  %v5574_v8 = vld [vmem:[%s7383_s4 + $0x1a8] sm:$0xff]  }
  0xbe   : > { %5183 = vmatmul.mubr.bf16.gmra.mxu0 %v6520_v12  ;;  %5212 = vmatprep.subr.bf16.mxu1 %v5567_v34  ;;  %v2146_v38 = vrot.slane %v6311_v3, 1  ;;  %v5573_v63 = vld [vmem:[%s7383_s4 + $0x168] sm:$0xff]  }
  0xbf   : > { %5186 = vmatprep.mubr.bf16.mxu0 %v6526_v58  ;;  %v846_v49 = vadd.f32 %v6227_v39, %v785_v9  ;;  %v962_v7 = vmul.f32 %v7485_v53, %v847_v16  ;;  %vm901_vm13 = vcmp.gt.f32.partialorder %v847_v16, 0.0  ;;  %v6572_v60 = vsel %vm899_vm12, %v845_v62, %v960_v17  ;;  %v7490_v9 = vld [vmem:[#allocation29_spill] sm:$0xff]  ;;  %v5578_v62 = vld [vmem:[%s7383_s4 + $0x198] sm:$0xff]   ;;  %v5582_v17 = vld [vmem:[%s7383_s4 + $0x188] sm:$0xff]  }
  0xc0   : > { %v6575_v21 = vsel %vm2100_vm9, %v2146_v38, %v2147_v11  ;;  %v1366_v3 = vsel %vm1096_vm0, %v6572_v60, 0.0  ;;  %v5584_v38 = vld [vmem:[%s7383_s4 + $0x180] sm:$0xff]   ;;  %v7492_v11 = vld [vmem:[#allocation12_spill] sm:$0xff]  ;;  %vm4147_vm0 = vcmask 1040384  }
  0xc1   : > { %5213 = vmatpush3.bf16.msra.mxu1 %v5567_v34  ;;  %v961_v39 = vmul.f32 %v7485_v53, %v846_v49  ;;  %vm900_vm14 = vcmp.gt.f32.partialorder %v846_v49, 0.0  ;;  %v1016_v5 = vsel %vm901_vm13, %v847_v16, %v962_v7  ;;  %v7486_v34 = vld [vmem:[#allocation15_spill] sm:$0xff]  ;;  %v5580_v16 = vld [vmem:[%s7383_s4 + $0x190] sm:$0xff]   ;;  %v5577_v53 = vld [vmem:[%s7383_s4 + $0x158] sm:$0xff]  }
  0xc2   : > { %5294 = vmatprep.subr.bf16.mxu1 %v5569_v25  ;;  %v1368_v29 = vsel %vm1155_vm1, %v1016_v5, 0.0  ;;  %v5579_v7 = vld [vmem:[%s7383_s4 + $0x150] sm:$0xff]   ;;  %v7493_v5 = vld [vmem:[#allocation18_spill] sm:$0xff] }
  0xc3   : > { %v6580_v1 = vsel %vm900_vm14, %v846_v49, %v961_v39  ;;  %v6595_v23 = vpack.c.bf16 %v1368_v29, %v1368_v29  ;;  %v7491_v49 = vld [vmem:[#allocation36_spill] sm:$0xff]  ;;  %v5583_v29 = vld [vmem:[%s7383_s4 + $0x140] sm:$0xff]  }
  0xc4   : > { %5135 = vmatmul.mubr.msk.bf16.gmra.mxu1 %vm6397_vm11, %v6539_v61  ;;  %v6593_v47 = vpack.c.bf16 %v6580_v1, %v1366_v3  ;;  %v5581_v39 = vld [vmem:[%s7383_s4 + $0x148] sm:$0xff]   ;;  %v5586_v3 = vld [vmem:[%s7383_s4 + $0x238] sm:$0xff]  }
  0xc5   : > { %5138 = vmatprep.mubr.msk.bf16.mxu1 %vm6397_vm11, %v6543_v56  ;;  %v2955_v54 = vrot.slane %v6595_v23, 1 }
  0xc6   : > { %5187 = vmatmul.mubr.bf16.gmra.mxu0 %v6387_v19  ;;  %v2954_v2 = vrot.slane %v6593_v47, 1 }
  0xc7   : > { %5190 = vmatprep.mubr.bf16.mxu0 %v6402_v20 }
  0xc8   : > { %v6600_v59 = vsel %vm2100_vm9, %v2954_v2, %v2955_v54  ;;  %v5585_v2 = vld [vmem:[%s7383_s4 + $0x1f8] sm:$0xff]  }
  0xc9   : > { %v7495_v54 = vld [vmem:[#allocation26_spill] sm:$0xff] }
  0xcc   : > { %5139 = vmatmul.mubr.msk.bf16.gmra.mxu1 %vm6397_vm11, %v6365_v32 }
  0xcd   : > { %5142 = vmatprep.mubr.msk.bf16.mxu1 %vm6397_vm11, %v6374_v43 }
  0xce   : > { %5191 = vmatmul.mubr.bf16.gmra.mxu0 %v6412_v13 }
  0xcf   : > { %5194 = vmatprep.mubr.bf16.mxu0 %v6415_v18 }
  0xd4   : > { %5143 = vmatmul.mubr.msk.bf16.gmra.mxu1 %vm6397_vm11, %v6384_v22 }
  0xd5   : > { %5146 = vmatprep.mubr.msk.bf16.mxu1 %vm6397_vm11, %v6393_v14 }
  0xd6   : > { %5195 = vmatmul.mubr.bf16.gmra.mxu0 %v6575_v21 }
  0xd7   : > { %5262 = vmatprep.mubr.bf16.mxu0 %v7486_v34  ;;  %v7494_v34 = vld [vmem:[#allocation24_spill] sm:$0xff] }
  0xdc   : > { %5147 = vmatmul.mubr.msk.bf16.gmra.mxu1 %vm6397_vm11, %v6406_v41 }
  0xdd   : > { %5214 = vmatprep.mubr.msk.bf16.mxu1 %vm6397_vm11, %v5830_v37  ;;  %v5576_v37 = vld [vmem:[%s7383_s4 + $0x1a0] sm:$0xff]  }
  0xde   : > { %5263 = vmatmul.mubr.bf16.vlgmr.msra.gmra.mxu0 %v7487_v50 }
  0xdf   : > { %5343 = vmatpush3.bf16.msra.mxu0 %v6510_v57  ;;  %5266 = vmatprep.mubr.bf16.mxu0 %v7488_v30  ;;  %v7489_v57 = vld [vmem:[#allocation27_spill] sm:$0xff] }
  0xe0   : > { %5344 = vmatprep.subr.bf16.mxu0 %v5572_v48 }
  0xe3   : > { %5345 = vmatpush3.bf16.msra.mxu0 %v5572_v48  ;;  %v7496_v48 = vld [vmem:[#allocation28_spill] sm:$0xff] }
  0xe4   : > { %5215 = vmatmul.mubr.msk.bf16.vlgmr.msra.gmra.mxu1 %vm6397_vm11, %v6361_v6  ;;  %5346 = vmatprep.subr.bf16.mxu0 %v5574_v8 }
  0xe5   : > { %5295 = vmatpush3.bf16.msra.mxu1 %v5569_v25  ;;  %5218 = vmatprep.mubr.msk.bf16.mxu1 %vm6397_vm11, %v6315_v15  ;;  %v5575_v25 = vld [vmem:[%s7383_s4 + $0x160] sm:$0xff]  }
  0xe6   : > { %5267 = vmatmul.mubr.bf16.gmra.mxu0 %v7489_v57  ;;  %5296 = vmatprep.subr.bf16.mxu1 %v5571_v52 }
  0xe7   : > { %5270 = vmatprep.mubr.bf16.mxu0 %v7490_v9  ;;  %5347 = vmatpush3.bf16.msra.mxu0 %v5574_v8  ;;  %v7497_v8 = vld [vmem:[#allocation35_spill] sm:$0xff] }
  0xe8   : > { %5348 = vmatprep.subr.bf16.mxu0 %v5576_v37 }
  0xe9   : > { %5297 = vmatpush3.bf16.msra.mxu1 %v5571_v52  ;;  %v2684_v52 = vshll.u32 %v6593_v47, 16 }
  0xea   : > { %5298 = vmatprep.subr.bf16.mxu1 %v5573_v63 }
  0xeb   : > { %5349 = vmatpush3.bf16.msra.mxu0 %v5576_v37  ;;  %v2682_v37 = vshrl.u32 %v6593_v47, 16  ;;  %v6725_v47 = vpack.c.bf16 %v6580_v1, %v6572_v60  ;;  %v5587_v60 = vld [vmem:[%s7383_s4 + $0x1f0] sm:$0xff]   ;;  %v5594_v1 = vld [vmem:[%s7383_s4 + $0x218] sm:$0xff]  }
  0xec   : > { %5219 = vmatmul.mubr.msk.bf16.gmra.mxu1 %vm6397_vm11, %v6329_v0  ;;  %5350 = vmatprep.subr.bf16.mxu0 %v5578_v62 }
  0xed   : > { %5222 = vmatprep.mubr.msk.bf16.mxu1 %vm6397_vm11, %v6342_v35  ;;  %5299 = vmatpush3.bf16.msra.mxu1 %v5573_v63  ;;  %v2686_v63 = vrot.slane %v2684_v52, 1 }
  0xee   : > { %5271 = vmatmul.mubr.bf16.gmra.mxu0 %v7491_v49  ;;  %5300 = vmatprep.subr.bf16.mxu1 %v5575_v25 }
  0xef   : > { %5274 = vmatprep.mubr.bf16.mxu0 %v6318_v33  ;;  %5351 = vmatpush3.bf16.msra.mxu0 %v5578_v62  ;;  %v2689_v62 = vshll.u32 %v6595_v23, 16  ;;  %v5588_v23 = vld [vmem:[%s7383_s4 + $0x230] sm:$0xff]  }
  0xf0   : > { %5352 = vmatprep.subr.bf16.mxu0 %v5580_v16 }
  0xf1   : > { %5301 = vmatpush3.bf16.msra.mxu1 %v5575_v25  ;;  %v7498_v25 = vld [vmem:[#allocation38_spill] sm:$0xff] }
  0xf2   : > { %5302 = vmatprep.subr.bf16.mxu1 %v5577_v53 }
  0xf3   : > { %5353 = vmatpush3.bf16.msra.mxu0 %v5580_v16  ;;  %v2687_v16 = vor.u32 %v2686_v63, %v2682_v37  ;;  %v5600_v37 = vld [vmem:[%s7383_s4 + $0x200] sm:$0xff]  }
  0xf4   : > { %5223 = vmatmul.mubr.msk.bf16.gmra.mxu1 %vm6397_vm11, %v6474_v45  ;;  %5354 = vmatprep.subr.bf16.mxu0 %v5582_v17 }
  0xf5   : > { %5226 = vmatprep.mubr.msk.bf16.mxu1 %vm6397_vm11, %v6503_v27  ;;  %5303 = vmatpush3.bf16.msra.mxu1 %v5577_v53  ;;  %v2691_v53 = vrot.slane %v2689_v62, 1  ;;  %v5597_v62 = vld [vmem:[%s7383_s4 + $0x1c8] sm:$0xff]  }
  0xf6   : > { %5275 = vmatmul.mubr.bf16.gmra.mxu0 %v7492_v11  ;;  %5304 = vmatprep.subr.bf16.mxu1 %v5579_v7 }
  0xf7   : > { %5278 = vmatprep.mubr.bf16.mxu0 %v7493_v5  ;;  %5355 = vmatpush3.bf16.msra.mxu0 %v5582_v17  ;;  %v6711_v17 = vsel %vm1424_vm5, %v2687_v16, %v2691_v53 }
  0xf8   : > { %5356 = vmatprep.subr.bf16.mxu0 %v5584_v38  ;;  %7499 = vst [vmem:[#allocation33_spill] sm:$0xff] %v6711_v17 }
  0xf9   : > { %5305 = vmatpush3.bf16.msra.mxu1 %v5579_v7 }
  0xfa   : > { %5306 = vmatprep.subr.bf16.mxu1 %v5581_v39 }
  0xfb   : > { %5357 = vmatpush3.bf16.msra.mxu0 %v5584_v38 }
  0xfc   : > { %5227 = vmatmul.mubr.msk.bf16.gmra.mxu1 %vm6397_vm11, %v6514_v24  ;;  %5438 = vmatprep.subr.bf16.mxu0 %v5586_v3 }
  0xfd   : > { %5230 = vmatprep.mubr.msk.bf16.mxu1 %vm6397_vm11, %v6539_v61  ;;  %5307 = vmatpush3.bf16.msra.mxu1 %v5581_v39 }
  0xfe   : > { %5279 = vmatmul.mubr.bf16.gmra.mxu0 %v7494_v34  ;;  %5308 = vmatprep.subr.bf16.mxu1 %v5583_v29 }
  0xff   : > { %5282 = vmatprep.mubr.bf16.mxu0 %v7495_v54 }
 0x101   : > { %5309 = vmatpush3.bf16.msra.mxu1 %v5583_v29 }
 0x102   : > { %5390 = vmatprep.subr.bf16.mxu1 %v5585_v2 }
 0x104   : > { %5231 = vmatmul.mubr.msk.bf16.gmra.mxu1 %vm6397_vm11, %v6543_v56 }
 0x105   : > { %5234 = vmatprep.mubr.msk.bf16.mxu1 %vm6397_vm11, %v6365_v32 }
 0x106   : > { %5283 = vmatmul.mubr.bf16.gmra.mxu0 %v7496_v48 }
 0x107   : > { %5286 = vmatprep.mubr.bf16.mxu0 %v7497_v8 }
 0x10c   : > { %5235 = vmatmul.mubr.msk.bf16.gmra.mxu1 %vm6397_vm11, %v6374_v43 }
 0x10d   : > { %5238 = vmatprep.mubr.msk.bf16.mxu1 %vm6397_vm11, %v6384_v22  ;;  %v6771_v38 = vpop.f32.mrf.mxu1 }
 0x10e   : > { %5287 = vmatmul.mubr.bf16.gmra.mxu0 %v7498_v25 }
 0x10f   : > { %5290 = vmatprep.mubr.bf16.mxu0 %v6348_v42  ;;  %v6788_v29 = vpop.f32.mrf.mxu1 }
 0x114   : > { %5239 = vmatmul.mubr.msk.bf16.gmra.mxu1 %vm6397_vm11, %v6393_v14 }
 0x115   : > { %5242 = vmatprep.mubr.msk.bf16.mxu1 %vm6397_vm11, %v6406_v41 }
 0x116   : > { %5291 = vmatmul.mubr.bf16.gmra.mxu0 %v6711_v17 }
 0x117   : > { %5358 = vmatprep.mubr.msk.bf16.mxu0 %vm6397_vm11, %v6361_v6  ;;  %v5590_v6 = vld [vmem:[%s7383_s4 + $0x228] sm:$0xff]  }
 0x11c   : > { %5243 = vmatmul.mubr.msk.bf16.gmra.mxu1 %vm6397_vm11, %v6725_v47 }
 0x11d   : > { %5310 = vmatprep.mubr.bf16.mxu1 %v6345_v55  ;;  %v5589_v55 = vld [vmem:[%s7383_s4 + $0x1e8] sm:$0xff]  }
 0x11e   : > { %5359 = vmatmul.mubr.msk.bf16.vlgmr.msra.gmra.mxu0 %vm6397_vm11, %v6315_v15  ;;  %v5592_v15 = vld [vmem:[%s7383_s4 + $0x220] sm:$0xff]  }
 0x11f   : > { %5439 = vmatpush3.bf16.msra.mxu0 %v5586_v3  ;;  %5362 = vmatprep.mubr.msk.bf16.mxu0 %vm6397_vm11, %v6329_v0  ;;  %v6751_v0 = vpop.f32.mrf.mxu0  ;;  %v5593_v3 = vld [vmem:[%s7383_s4 + $0x1d8] sm:$0xff]  }
 0x120   : > { %5440 = vmatprep.subr.bf16.mxu0 %v5588_v23 }
 0x121   : > { %v6765_v7 = vpop.f32.mrf.mxu0 }
 0x123   : > { %5441 = vmatpush3.bf16.msra.mxu0 %v5588_v23  ;;  %v6777_v39 = vpop.f32.mrf.mxu0 }
 0x124   : > { %5311 = vmatmul.mubr.bf16.vlgmr.msra.gmra.mxu1 %v6351_v44  ;;  %5442 = vmatprep.subr.bf16.mxu0 %v5590_v6 }
 0x125   : > { %5391 = vmatpush3.bf16.msra.mxu1 %v5585_v2  ;;  %5314 = vmatprep.mubr.bf16.mxu1 %v6336_v31  ;;  %v5598_v2 = vld [vmem:[%s7383_s4 + $0x208] sm:$0xff]   ;;  %v6793_v52 = vpop.f32.mrf.mxu0 }
 0x126   : > { %5363 = vmatmul.mubr.msk.bf16.gmra.mxu0 %vm6397_vm11, %v6342_v35  ;;  %5392 = vmatprep.subr.bf16.mxu1 %v5587_v60  ;;  %v5591_v35 = vld [vmem:[%s7383_s4 + $0x1e0] sm:$0xff]  }
 0x127   : > { %5366 = vmatprep.mubr.msk.bf16.mxu0 %vm6397_vm11, %v6474_v45  ;;  %5443 = vmatpush3.bf16.msra.mxu0 %v5590_v6  ;;  %v5596_v45 = vld [vmem:[%s7383_s4 + $0x210] sm:$0xff]   ;;  %v6805_v63 = vpop.f32.mrf.mxu0 }
 0x128   : > { %5444 = vmatprep.subr.bf16.mxu0 %v5592_v15 }
 0x129   : > { %5393 = vmatpush3.bf16.msra.mxu1 %v5587_v60  ;;  %v6818_v53 = vpop.f32.mrf.mxu0 }
 0x12a   : > { %5394 = vmatprep.subr.bf16.mxu1 %v5589_v55 }
 0x12b   : > { %5445 = vmatpush3.bf16.msra.mxu0 %v5592_v15 }
 0x12c   : > { %5315 = vmatmul.mubr.bf16.gmra.mxu1 %v6421_v36  ;;  %5446 = vmatprep.subr.bf16.mxu0 %v5594_v1 }
 0x12d   : > { %5318 = vmatprep.mubr.bf16.mxu1 %v6446_v46  ;;  %5395 = vmatpush3.bf16.msra.mxu1 %v5589_v55 }
 0x12e   : > { %5367 = vmatmul.mubr.msk.bf16.gmra.mxu0 %vm6397_vm11, %v6503_v27  ;;  %5396 = vmatprep.subr.bf16.mxu1 %v5591_v35  ;;  %v5595_v27 = vld [vmem:[%s7383_s4 + $0x1d0] sm:$0xff]  }
 0x12f   : > { %5370 = vmatprep.mubr.msk.bf16.mxu0 %vm6397_vm11, %v6514_v24  ;;  %5447 = vmatpush3.bf16.msra.mxu0 %v5594_v1  ;;  %v6799_v24 = vpop.f32.mrf.mxu1 }
 0x130   : > { %5448 = vmatprep.subr.bf16.mxu0 %v5596_v45 }
 0x131   : > { %5397 = vmatpush3.bf16.msra.mxu1 %v5591_v35  ;;  %v6816_v16 = vpop.f32.mrf.mxu1 }
 0x132   : > { %5398 = vmatprep.subr.bf16.mxu1 %v5593_v3 }
 0x133   : > { %5449 = vmatpush3.bf16.msra.mxu0 %v5596_v45  ;;  %v6824_v23 = vpop.f32.mrf.mxu1 }
 0x134   : > { %5319 = vmatmul.mubr.bf16.gmra.mxu1 %v6452_v10  ;;  %5450 = vmatprep.subr.bf16.mxu0 %v5598_v2 }
 0x135   : > { %5322 = vmatprep.mubr.bf16.mxu1 %v6480_v4  ;;  %5399 = vmatpush3.bf16.msra.mxu1 %v5593_v3  ;;  %v6835_v6 = vpop.f32.mrf.mxu1 }
 0x136   : > { %5371 = vmatmul.mubr.msk.bf16.gmra.mxu0 %vm6397_vm11, %v6539_v61  ;;  %5400 = vmatprep.subr.bf16.mxu1 %v5595_v27  ;;  %v5599_v61 = vld [vmem:[%s7383_s4 + $0x1c0] sm:$0xff]  }
 0x137   : > { %5374 = vmatprep.mubr.msk.bf16.mxu0 %vm6397_vm11, %v6543_v56  ;;  %5451 = vmatpush3.bf16.msra.mxu0 %v5598_v2  ;;  %v6827_v56 = vpop.f32.mrf.mxu0  ;;  %v6840_v15 = vpop.f32.mrf.mxu1 }
 0x138   : > { %5452 = vmatprep.subr.bf16.mxu0 %v5600_v37 }
 0x139   : > { %5401 = vmatpush3.bf16.msra.mxu1 %v5595_v27  ;;  %v6837_v60 = vpop.f32.mrf.mxu0 }
 0x13a   : > { %5402 = vmatprep.subr.bf16.mxu1 %v5597_v62 }
 0x13b   : > { %5453 = vmatpush3.bf16.msra.mxu0 %v5600_v37  ;;  %v6843_v55 = vpop.f32.mrf.mxu0 }
 0x13c   : > { %5323 = vmatmul.mubr.bf16.gmra.mxu1 %v6486_v51 }
 0x13d   : > { %5326 = vmatprep.mubr.bf16.mxu1 %v6520_v12  ;;  %5403 = vmatpush3.bf16.msra.mxu1 %v5597_v62 }
 0x13e   : > { %5375 = vmatmul.mubr.msk.bf16.gmra.mxu0 %vm6397_vm11, %v6365_v32  ;;  %5404 = vmatprep.subr.bf16.mxu1 %v5599_v61  ;;  %v6851_v32 = vpop.f32.mrf.mxu1 }
 0x13f   : > { %5378 = vmatprep.mubr.msk.bf16.mxu0 %vm6397_vm11, %v6374_v43  ;;  %v6853_v43 = vpop.f32.mrf.mxu0 }
 0x141   : > { %5405 = vmatpush3.bf16.msra.mxu1 %v5599_v61  ;;  %v6859_v35 = vpop.f32.mrf.mxu0 }
 0x142   : > { %v6856_v1 = vpop.f32.mrf.mxu1 }
 0x143   : > { %7500 = vst [vmem:[#allocation34_spill] sm:$0xff] %v6856_v1 }
 0x144   : > { %5327 = vmatmul.mubr.bf16.gmra.mxu1 %v6526_v58 }
 0x145   : > { %5330 = vmatprep.mubr.bf16.mxu1 %v6387_v19 }
 0x146   : > { %5379 = vmatmul.mubr.msk.bf16.gmra.mxu0 %vm6397_vm11, %v6384_v22  ;;  %v6867_v22 = vpop.f32.mrf.mxu1 }
 0x147   : > { %5382 = vmatprep.mubr.msk.bf16.mxu0 %vm6397_vm11, %v6393_v14  ;;  %7501 = vst [vmem:[#allocation10_spill] sm:$0xff] %v6867_v22  ;;  %v6869_v14 = vpop.f32.mrf.mxu0 }
 0x148   : > { %v6872_v45 = vpop.f32.mrf.mxu1 }
 0x149   : > { %7502 = vst [vmem:[#allocation11_spill] sm:$0xff] %v6872_v45 }
 0x14a   : > { %v6881_v26 = vpop.f32.mrf.mxu1 }
 0x14b   : > { %7503 = vst [vmem:[#allocation31_spill] sm:$0xff] %v6881_v26 }
 0x14c   : > { %5331 = vmatmul.mubr.bf16.gmra.mxu1 %v6402_v20 }
 0x14d   : > { %5334 = vmatprep.mubr.bf16.mxu1 %v6412_v13 }
 0x14e   : > { %5383 = vmatmul.mubr.msk.bf16.gmra.mxu0 %vm6397_vm11, %v6406_v41 }
 0x14f   : > { %5386 = vmatprep.mubr.msk.bf16.mxu0 %vm6397_vm11, %v6725_v47 }
 0x154   : > { %5335 = vmatmul.mubr.bf16.gmra.mxu1 %v6415_v18  ;;  %v6875_v3 = vpop.f32.mrf.mxu0 }
 0x155   : > { %5338 = vmatprep.mubr.bf16.mxu1 %v6575_v21 }
 0x156   : > { %5387 = vmatmul.mubr.bf16.gmra.mxu0 %v5631_v28  ;;  %v6878_v2 = vpop.f32.mrf.mxu0 }
 0x157   : > { %5454 = vmatprep.mubr.bf16.mxu0 %v6351_v44 }
 0x158   : > { %v6883_v41 = vpop.f32.mrf.mxu0 }
 0x15a   : > { %v6885_v47 = vpop.f32.mrf.mxu0 }
 0x15c   : > { %v6887_v27 = vpop.f32.mrf.mxu1  ;;  %5339 = vmatmul.mubr.bf16.gmra.mxu1 %v6600_v59  ;;  %v5168_v37 = vpop.f32.mrf.mxu0 }
 0x15d   : > { %7504 = vst [vmem:[#allocation32_spill] sm:$0xff] %v6887_v27  ;;  %5406 = vmatprep.mubr.bf16.mxu1 %v7487_v50 }
 0x15e   : > { %v6891_v62 = vpop.f32.mrf.mxu1  ;;  %5455 = vmatmul.mubr.bf16.vlgmr.msra.gmra.mxu0 %v6336_v31  ;;  %v2264_v28 = vpop.f32.mrf.mxu0 }
 0x15f   : > { %7505 = vst [vmem:[#allocation16_spill] sm:$0xff] %v6891_v62  ;;  %5458 = vmatprep.mubr.bf16.mxu0 %v6421_v36 }
 0x160   : > { %v6895_v44 = vpop.f32.mrf.mxu1  ;;  %v5169_v61 = vpop.f32.mrf.mxu0 }
 0x161   : > { %7506 = vst [vmem:[#allocation17_spill] sm:$0xff] %v6895_v44 }
 0x162   : > { %v6897_v26 = vpop.f32.mrf.mxu1  ;;  %v2267_v45 = vpop.f32.mrf.mxu0 }
 0x163   : > { %7507 = vst [vmem:[#allocation37_spill] sm:$0xff] %v6897_v26 }
 0x164   : > { %v5120_v22 = vpop.f32.mrf.mxu1  ;;  %5407 = vmatmul.mubr.bf16.vlgmr.msra.gmra.mxu1 %v7488_v30  ;;  %v5172_v62 = vpop.f32.mrf.mxu0 }
 0x165   : > { %v1950_v27 = vadd.f32 %v5120_v22, %v6751_v0  ;;  %5410 = vmatprep.mubr.bf16.mxu1 %v7489_v57 }
 0x166   : > { %v1941_v50 = vpop.f32.mrf.mxu1  ;;  %5459 = vmatmul.mubr.bf16.gmra.mxu0 %v6446_v46  ;;  %v2280_v26 = vpop.f32.mrf.mxu0 }
 0x167   : > { %v6903_v31 = vadd.f32 %v5168_v37, %v1950_v27  ;;  %v1942_v36 = vadd.f32 %v1941_v50, %v6765_v7  ;;  %5462 = vmatprep.mubr.bf16.mxu0 %v6452_v10 }
 0x168   : > { %v5121_v44 = vpop.f32.mrf.mxu1  ;;  %v5173_v0 = vpop.f32.mrf.mxu0 }
 0x169   : > { %v6907_v40 = vadd.f32 %v2264_v28, %v1942_v36  ;;  %v1953_v30 = vadd.f32 %v5121_v44, %v6777_v39 }
 0x16a   : > { %v1944_v17 = vpop.f32.mrf.mxu1  ;;  %v2283_v46 = vpop.f32.mrf.mxu0 }
 0x16b   : > { %v6910_v22 = vadd.f32 %v5169_v61, %v1953_v30  ;;  %v1945_v57 = vadd.f32 %v1944_v17, %v6793_v52 }
 0x16c   : > { %v5124_v1 = vpop.f32.mrf.mxu1  ;;  %5411 = vmatmul.mubr.bf16.gmra.mxu1 %v7490_v9 }
 0x16d   : > { %v6914_v27 = vadd.f32 %v2267_v45, %v1945_v57  ;;  %v1966_v10 = vadd.f32 %v5124_v1, %v6805_v63  ;;  %5414 = vmatprep.mubr.bf16.mxu1 %v7491_v49 }
 0x16e   : > { %v1957_v7 = vpop.f32.mrf.mxu1  ;;  %v5176_v37 = vpop.f32.mrf.mxu0  ;;  %5463 = vmatmul.mubr.bf16.gmra.mxu0 %v6480_v4 }
 0x16f   : > { %v6919_v39 = vadd.f32 %v5172_v62, %v1966_v10  ;;  %v1958_v28 = vadd.f32 %v1957_v7, %v6818_v53  ;;  %5466 = vmatprep.mubr.bf16.mxu0 %v6486_v51 }
 0x170   : > { %v5125_v17 = vpop.f32.mrf.mxu1  ;;  %v2296_v52 = vpop.f32.mrf.mxu0 }
 0x171   : > { %v6923_v9 = vadd.f32 %v2280_v26, %v1958_v28  ;;  %v1969_v45 = vadd.f32 %v5125_v17, %v6827_v56 }
 0x172   : > { %v1960_v44 = vpop.f32.mrf.mxu1  ;;  %v5177_v63 = vpop.f32.mrf.mxu0 }
 0x173   : > { %v6926_v1 = vadd.f32 %v5173_v0, %v1969_v45  ;;  %v1961_v49 = vadd.f32 %v1960_v44, %v6837_v60 }
 0x174   : > { %v5128_v61 = vpop.f32.mrf.mxu1  ;;  %5415 = vmatmul.mubr.bf16.gmra.mxu1 %v6318_v33  ;;  %v2299_v4 = vpop.f32.mrf.mxu0 }
 0x175   : > { %v6930_v62 = vadd.f32 %v2283_v46, %v1961_v49  ;;  %v1982_v51 = vadd.f32 %v5128_v61, %v6843_v55  ;;  %5418 = vmatprep.mubr.bf16.mxu1 %v7492_v11 }
 0x176   : > { %v1973_v53 = vpop.f32.mrf.mxu1  ;;  %v5180_v26 = vpop.f32.mrf.mxu0  ;;  %5467 = vmatmul.mubr.bf16.gmra.mxu0 %v6520_v12 }
 0x177   : > { %v6935_v56 = vadd.f32 %v5176_v37, %v1982_v51  ;;  %v1974_v50 = vadd.f32 %v1973_v53, %v6853_v43  ;;  %5470 = vmatprep.mubr.bf16.mxu0 %v6526_v58 }
 0x178   : > { %v5129_v60 = vpop.f32.mrf.mxu1  ;;  %v2312_v36 = vpop.f32.mrf.mxu0 }
 0x179   : > { %v6939_v33 = vadd.f32 %v2296_v52, %v1974_v50  ;;  %v1985_v30 = vadd.f32 %v5129_v60, %v6859_v35 }
 0x17a   : > { %v1976_v0 = vpop.f32.mrf.mxu1  ;;  %v5181_v55 = vpop.f32.mrf.mxu0 }
 0x17b   : > { %v6942_v57 = vadd.f32 %v5177_v63, %v1985_v30  ;;  %v1977_v11 = vadd.f32 %v1976_v0, %v6869_v14 }
 0x17c   : > { %v5132_v46 = vpop.f32.mrf.mxu1  ;;  %5419 = vmatmul.mubr.bf16.gmra.mxu1 %v7493_v5  ;;  %v2315_v12 = vpop.f32.mrf.mxu0 }
 0x17d   : > { %v6946_v10 = vadd.f32 %v2299_v4, %v1977_v11  ;;  %v1998_v58 = vadd.f32 %v5132_v46, %v6875_v3  ;;  %5422 = vmatprep.mubr.bf16.mxu1 %v7494_v34 }
 0x17e   : > { %v1989_v43 = vpop.f32.mrf.mxu1  ;;  %v5184_v7 = vpop.f32.mrf.mxu0  ;;  %5471 = vmatmul.mubr.bf16.gmra.mxu0 %v6387_v19 }
 0x17f   : > { %v6951_v35 = vadd.f32 %v5180_v26, %v1998_v58  ;;  %v1990_v37 = vadd.f32 %v1989_v43, %v6878_v2  ;;  %5474 = vmatprep.mubr.bf16.mxu0 %v6402_v20  ;;  %v7509_v43 = vld [vmem:[#allocation33_spill] sm:$0xff] }
 0x180   : > { %v5133_v14 = vpop.f32.mrf.mxu1  ;;  %v2328_v28 = vpop.f32.mrf.mxu0 }
 0x181   : > { %v6955_v5 = vadd.f32 %v2312_v36, %v1990_v37  ;;  %v2001_v17 = vadd.f32 %v5133_v14, %v6883_v41  ;;  %v7510_v14 = vld [vmem:[#allocation39_spill] sm:$0xff] }
 0x182   : > { %v1992_v52 = vpop.f32.mrf.mxu1  ;;  %v5185_v3 = vpop.f32.mrf.mxu0 }
 0x183   : > { %v6958_v45 = vadd.f32 %v5181_v55, %v2001_v17  ;;  %v1993_v34 = vadd.f32 %v1992_v52, %v6885_v47 }
 0x184   : > { %v5136_v44 = vpop.f32.mrf.mxu1  ;;  %5423 = vmatmul.mubr.bf16.gmra.mxu1 %v7495_v54  ;;  %v2331_v19 = vpop.f32.mrf.mxu0 }
 0x185   : > { %v6962_v63 = vadd.f32 %v2315_v12, %v1993_v34  ;;  %v2014_v20 = vadd.f32 %v5136_v44, %v6771_v38  ;;  %5426 = vmatprep.mubr.bf16.mxu1 %v7496_v48 }
 0x186   : > { %v2005_v2 = vpop.f32.mrf.mxu1  ;;  %v5188_v49 = vpop.f32.mrf.mxu0  ;;  %5475 = vmatmul.mubr.bf16.gmra.mxu0 %v6412_v13 }
 0x187   : > { %v6967_v41 = vadd.f32 %v5184_v7, %v2014_v20  ;;  %v2006_v61 = vadd.f32 %v2005_v2, %v6788_v29  ;;  %5478 = vmatprep.mubr.bf16.mxu0 %v6415_v18  ;;  %v7513_v2 = vld [vmem:[#allocation31_spill] sm:$0xff] }
 0x188   : > { %v5137_v47 = vpop.f32.mrf.mxu1  ;;  %v2344_v4 = vpop.f32.mrf.mxu0 }
 0x189   : > { %v6971_v54 = vadd.f32 %v2328_v28, %v2006_v61  ;;  %v2017_v51 = vadd.f32 %v5137_v47, %v6799_v24  ;;  %v7511_v28 = vld [vmem:[#allocation10_spill] sm:$0xff]  ;;  %v7514_v47 = vld [vmem:[#allocation7_spill] sm:$0xff] }
 0x18a   : > { %v2008_v53 = vpop.f32.mrf.mxu1  ;;  %v5189_v38 = vpop.f32.mrf.mxu0 }
 0x18b   : > { %v6974_v26 = vadd.f32 %v5185_v3, %v2017_v51  ;;  %v2009_v48 = vadd.f32 %v2008_v53, %v6816_v16  ;;  %v7515_v53 = vld [vmem:[#allocation32_spill] sm:$0xff] }
 0x18c   : > { %v5140_v50 = vpop.f32.mrf.mxu1  ;;  %5427 = vmatmul.mubr.bf16.gmra.mxu1 %v7497_v8  ;;  %v2347_v13 = vpop.f32.mrf.mxu0 }
 0x18d   : > { %v6978_v60 = vadd.f32 %v2331_v19, %v2009_v48  ;;  %v2030_v18 = vadd.f32 %v5140_v50, %v6824_v23  ;;  %5430 = vmatprep.mubr.bf16.mxu1 %v7498_v25 }
 0x18e   : > { %v2021_v29 = vpop.f32.mrf.mxu1  ;;  %v5192_v36 = vpop.f32.mrf.mxu0  ;;  %5479 = vmatmul.mubr.bf16.gmra.mxu0 %v6575_v21 }
 0x18f   : > { %v6983_v24 = vadd.f32 %v5188_v49, %v2030_v18  ;;  %v2022_v30 = vadd.f32 %v2021_v29, %v6835_v6  ;;  %5482 = vmatprep.mubr.bf16.mxu0 %v6600_v59  ;;  %v7508_v6 = vld [vmem:[#allocation34_spill] sm:$0xff]  ;;  %v7516_v18 = vld [vmem:[#allocation16_spill] sm:$0xff] }
 0x190   : > { %v5141_v16 = vpop.f32.mrf.mxu1  ;;  %v2360_v0 = vpop.f32.mrf.mxu0 }
 0x191   : > { %v6987_v8 = vadd.f32 %v2344_v4, %v2022_v30  ;;  %v2033_v55 = vadd.f32 %v5141_v16, %v6840_v15 }
 0x192   : > { %v2024_v11 = vpop.f32.mrf.mxu1  ;;  %v5193_v23 = vpop.f32.mrf.mxu0 }
 0x193   : > { %v6990_v46 = vadd.f32 %v5189_v38, %v2033_v55  ;;  %v2025_v25 = vadd.f32 %v2024_v11, %v6851_v32 }
 0x194   : > { %v5144_v12 = vpop.f32.mrf.mxu1  ;;  %5431 = vmatmul.mubr.bf16.gmra.mxu1 %v6348_v42  ;;  %v2363_v21 = vpop.f32.mrf.mxu0  ;;  %v7512_v42 = vld [vmem:[#allocation11_spill] sm:$0xff] }
 0x195   : > { %v6994_v58 = vadd.f32 %v2347_v13, %v2025_v25  ;;  %v2046_v59 = vadd.f32 %v5144_v12, %v7508_v6  ;;  %5434 = vmatprep.mubr.bf16.mxu1 %v7509_v43  ;;  %v7518_v12 = vld [vmem:[#allocation37_spill] sm:$0xff] }
 0x196   : > { %v2037_v7 = vpop.f32.mrf.mxu1  ;;  %v5196_v37 = vpop.f32.mrf.mxu0  ;;  %5483 = vmatmul.mubr.bf16.gmra.mxu0 %v7510_v14 }
 0x197   : > { %v6999_v15 = vadd.f32 %v5192_v36, %v2046_v59  ;;  %v2038_v17 = vadd.f32 %v2037_v7, %v7511_v28 }
 0x198   : > { %v5145_v52 = vpop.f32.mrf.mxu1  ;;  %v2376_v32 = vpop.f32.mrf.mxu0 }
 0x199   : > { %v7002_v3 = vadd.f32 %v2360_v0, %v2038_v17  ;;  %v2049_v34 = vadd.f32 %v5145_v52, %v7512_v42  ;;  %v7517_v0 = vld [vmem:[#allocation17_spill] sm:$0xff] }
 0x19a   : > { %v2040_v44 = vpop.f32.mrf.mxu1  ;;  %v5197_v19 = vpop.f32.mrf.mxu0 }
 0x19b   : > { %v7005_v20 = vadd.f32 %v5193_v23, %v2049_v34  ;;  %v2041_v49 = vadd.f32 %v2040_v44, %v7513_v2 }
 0x19c   : > { %v5148_v61 = vpop.f32.mrf.mxu1  ;;  %5435 = vmatmul.mubr.bf16.gmra.mxu1 %v7514_v47  ;;  %v2379_v4 = vpop.f32.mrf.mxu0 }
 0x19d   : > { %v7009_v51 = vadd.f32 %v2363_v21, %v2041_v49  ;;  %v2062_v38 = vadd.f32 %v5148_v61, %v7515_v53 }
 0x19e   : > { %v2053_v48 = vpop.f32.mrf.mxu1  ;;  %v5264_v50 = vpop.f32.mrf.mxu0 }
 0x19f   : > { %v7012_v13 = vadd.f32 %v5196_v37, %v2062_v38  ;;  %v2054_v29 = vadd.f32 %v2053_v48, %v7516_v18 }
 0x1a0   : > { %v5149_v36 = vpop.f32.mrf.mxu1  ;;  %v2793_v30 = vpop.f32.mrf.mxu0 }
 0x1a1   : > { %v7015_v16 = vadd.f32 %v2376_v32, %v2054_v29  ;;  %v2065_v55 = vadd.f32 %v5149_v36, %v7517_v0 }
 0x1a2   : > { %v2056_v11 = vpop.f32.mrf.mxu1  ;;  %v5265_v23 = vpop.f32.mrf.mxu0 }
 0x1a3   : > { %v7018_v25 = vadd.f32 %v5197_v19, %v2065_v55  ;;  %v2057_v21 = vadd.f32 %v2056_v11, %v7518_v12 }
 0x1a4   : > { %v5216_v6 = vpop.f32.mrf.mxu1  ;;  %v2796_v59 = vpop.f32.mrf.mxu0 }
 0x1a5   : > { %v7021_v43 = vadd.f32 %v2379_v4, %v2057_v21  ;;  %v2651_v7 = vadd.f32 %v5216_v6, %v6903_v31 }
 0x1a6   : > { %v2522_v37 = vpop.f32.mrf.mxu1  ;;  %v5268_v14 = vpop.f32.mrf.mxu0 }
 0x1a7   : > { %v7024_v28 = vadd.f32 %v5264_v50, %v2651_v7  ;;  %v2649_v17 = vadd.f32 %v2522_v37, %v6907_v40 }
 0x1a8   : > { %v5217_v52 = vpop.f32.mrf.mxu1  ;;  %v2809_v32 = vpop.f32.mrf.mxu0 }
 0x1a9   : > { %v7027_v42 = vadd.f32 %v2793_v30, %v2649_v17  ;;  %v2652_v34 = vadd.f32 %v5217_v52, %v6910_v22 }
 0x1aa   : > { %v2525_v44 = vpop.f32.mrf.mxu1  ;;  %v5269_v19 = vpop.f32.mrf.mxu0 }
 0x1ab   : > { %v7030_v2 = vadd.f32 %v5265_v23, %v2652_v34  ;;  %v2650_v49 = vadd.f32 %v2525_v44, %v6914_v27 }
 0x1ac   : > { %v5220_v61 = vpop.f32.mrf.mxu1  ;;  %v2812_v31 = vpop.f32.mrf.mxu0 }
 0x1ad   : > { %v7033_v47 = vadd.f32 %v2796_v59, %v2650_v49  ;;  %v2655_v4 = vadd.f32 %v5220_v61, %v6919_v39 }
 0x1ae   : > { %v2538_v53 = vpop.f32.mrf.mxu1  ;;  %v5272_v40 = vpop.f32.mrf.mxu0 }
 0x1af   : > { %v7036_v38 = vadd.f32 %v5268_v14, %v2655_v4  ;;  %v2653_v48 = vadd.f32 %v2538_v53, %v6923_v9 }
 0x1b0   : > { %v5221_v50 = vpop.f32.mrf.mxu1  ;;  %v2825_v22 = vpop.f32.mrf.mxu0 }
 0x1b1   : > { %v7039_v18 = vadd.f32 %v2809_v32, %v2653_v48  ;;  %v2656_v29 = vadd.f32 %v5221_v50, %v6926_v1 }
 0x1b2   : > { %v2541_v36 = vpop.f32.mrf.mxu1  ;;  %v5273_v27 = vpop.f32.mrf.mxu0 }
 0x1b3   : > { %v7042_v30 = vadd.f32 %v5269_v19, %v2656_v29  ;;  %v2654_v0 = vadd.f32 %v2541_v36, %v6930_v62 }
 0x1b4   : > { %v5224_v55 = vpop.f32.mrf.mxu1  ;;  %v2828_v39 = vpop.f32.mrf.mxu0 }
 0x1b5   : > { %v7045_v11 = vadd.f32 %v2812_v31, %v2654_v0  ;;  %v2659_v23 = vadd.f32 %v5224_v55, %v6935_v56 }
 0x1b6   : > { %v2554_v12 = vpop.f32.mrf.mxu1  ;;  %v5276_v9 = vpop.f32.mrf.mxu0 }
 0x1b7   : > { %v7048_v21 = vadd.f32 %v5272_v40, %v2659_v23  ;;  %v2657_v6 = vadd.f32 %v2554_v12, %v6939_v33 }
 0x1b8   : > { %v5225_v59 = vpop.f32.mrf.mxu1  ;;  %v2841_v1 = vpop.f32.mrf.mxu0 }
 0x1b9   : > { %v7051_v7 = vadd.f32 %v2825_v22, %v2657_v6  ;;  %v2660_v37 = vadd.f32 %v5225_v59, %v6942_v57 }
 0x1ba   : > { %v2557_v14 = vpop.f32.mrf.mxu1  ;;  %v5277_v62 = vpop.f32.mrf.mxu0 }
 0x1bb   : > { %v7054_v17 = vadd.f32 %v5273_v27, %v2660_v37  ;;  %v2658_v52 = vadd.f32 %v2557_v14, %v6946_v10 }
 0x1bc   : > { %v5228_v32 = vpop.f32.mrf.mxu1  ;;  %v2844_v56 = vpop.f32.mrf.mxu0 }
 0x1bd   : > { %v7057_v34 = vadd.f32 %v2828_v39, %v2658_v52  ;;  %v2663_v44 = vadd.f32 %v5228_v32, %v6951_v35 }
 0x1be   : > { %v2570_v19 = vpop.f32.mrf.mxu1  ;;  %v5280_v33 = vpop.f32.mrf.mxu0 }
 0x1bf   : > { %v7060_v49 = vadd.f32 %v5276_v9, %v2663_v44  ;;  %v2661_v61 = vadd.f32 %v2570_v19, %v6955_v5 }
 0x1c0   : > { %v5229_v31 = vpop.f32.mrf.mxu1  ;;  %v2857_v57 = vpop.f32.mrf.mxu0 }
 0x1c1   : > { %v7063_v4 = vadd.f32 %v2841_v1, %v2661_v61  ;;  %v2664_v53 = vadd.f32 %v5229_v31, %v6958_v45 }
 0x1c2   : > { %v2573_v40 = vpop.f32.mrf.mxu1  ;;  %v5281_v10 = vpop.f32.mrf.mxu0 }
 0x1c3   : > { %v7066_v48 = vadd.f32 %v5277_v62, %v2664_v53  ;;  %v2662_v50 = vadd.f32 %v2573_v40, %v6962_v63 }
 0x1c4   : > { %v5232_v22 = vpop.f32.mrf.mxu1  ;;  %v2860_v35 = vpop.f32.mrf.mxu0 }
 0x1c5   : > { %v7069_v29 = vadd.f32 %v2844_v56, %v2662_v50  ;;  %v2667_v36 = vadd.f32 %v5232_v22, %v6967_v41 }
 0x1c6   : > { %v2586_v27 = vpop.f32.mrf.mxu1  ;;  %v5284_v5 = vpop.f32.mrf.mxu0 }
 0x1c7   : > { %v7072_v0 = vadd.f32 %v5280_v33, %v2667_v36  ;;  %v2665_v55 = vadd.f32 %v2586_v27, %v6971_v54 }
 0x1c8   : > { %v5233_v39 = vpop.f32.mrf.mxu1  ;;  %v2873_v45 = vpop.f32.mrf.mxu0 }
 0x1c9   : > { %v7075_v23 = vadd.f32 %v2857_v57, %v2665_v55  ;;  %v2668_v12 = vadd.f32 %v5233_v39, %v6974_v26 }
 0x1ca   : > { %v2589_v9 = vpop.f32.mrf.mxu1  ;;  %v5285_v63 = vpop.f32.mrf.mxu0 }
 0x1cb   : > { %v7078_v6 = vadd.f32 %v5281_v10, %v2668_v12  ;;  %v2666_v59 = vadd.f32 %v2589_v9, %v6978_v60 }
 0x1cc   : > { %v5236_v1 = vpop.f32.mrf.mxu1  ;;  %v2876_v41 = vpop.f32.mrf.mxu0 }
 0x1cd   : > { %7519 = vst [vmem:[#allocation21_spill] sm:$0xff] %v7078_v6  ;;  %v7081_v37 = vadd.f32 %v2860_v35, %v2666_v59  ;;  %v2671_v14 = vadd.f32 %v5236_v1, %v6983_v24 }
 0x1ce   : > { %v2602_v62 = vpop.f32.mrf.mxu1  ;;  %v5288_v54 = vpop.f32.mrf.mxu0 }
 0x1cf   : > { %7520 = vst [vmem:[#allocation23_spill] sm:$0xff] %v7081_v37  ;;  %v7084_v52 = vadd.f32 %v5284_v5, %v2671_v14  ;;  %v2669_v32 = vadd.f32 %v2602_v62, %v6987_v8 }
 0x1d0   : > { %v5237_v56 = vpop.f32.mrf.mxu1  ;;  %v2889_v26 = vpop.f32.mrf.mxu0 }
 0x1d1   : > { %7521 = vst [vmem:[#allocation8_spill] sm:$0xff] %v7084_v52  ;;  %v7087_v44 = vadd.f32 %v2873_v45, %v2669_v32  ;;  %v2672_v19 = vadd.f32 %v5237_v56, %v6990_v46 }
 0x1d2   : > { %v2605_v33 = vpop.f32.mrf.mxu1  ;;  %v5289_v60 = vpop.f32.mrf.mxu0 }
 0x1d3   : > { %7522 = vst [vmem:[#allocation9_spill] sm:$0xff] %v7087_v44  ;;  %v7090_v61 = vadd.f32 %v5285_v63, %v2672_v19  ;;  %v2670_v31 = vadd.f32 %v2605_v33, %v6994_v58 }
 0x1d4   : > { %v5240_v57 = vpop.f32.mrf.mxu1  ;;  %v2892_v24 = vpop.f32.mrf.mxu0 }
 0x1d5   : > { %7523 = vst [vmem:[#allocation13_spill] sm:$0xff] %v7090_v61  ;;  %v7093_v53 = vadd.f32 %v2876_v41, %v2670_v31  ;;  %v2675_v40 = vadd.f32 %v5240_v57, %v6999_v15 }
 0x1d6   : > { %v2618_v10 = vpop.f32.mrf.mxu1  ;;  %v5292_v8 = vpop.f32.mrf.mxu0 }
 0x1d7   : > { %7524 = vst [vmem:[#allocation14_spill] sm:$0xff] %v7093_v53  ;;  %v7096_v50 = vadd.f32 %v5288_v54, %v2675_v40  ;;  %v2673_v22 = vadd.f32 %v2618_v10, %v7002_v3 }
 0x1d8   : > { %v5241_v35 = vpop.f32.mrf.mxu1  ;;  %v2905_v46 = vpop.f32.mrf.mxu0 }
 0x1d9   : > { %7525 = vst [vmem:[#allocation19_spill] sm:$0xff] %v7096_v50  ;;  %v7099_v36 = vadd.f32 %v2889_v26, %v2673_v22  ;;  %v2676_v27 = vadd.f32 %v5241_v35, %v7005_v20 }
 0x1da   : > { %v2621_v5 = vpop.f32.mrf.mxu1  ;;  %v5293_v58 = vpop.f32.mrf.mxu0 }
 0x1db   : > { %7526 = vst [vmem:[#allocation20_spill] sm:$0xff] %v7099_v36  ;;  %v7102_v55 = vadd.f32 %v5289_v60, %v2676_v27  ;;  %v2674_v39 = vadd.f32 %v2621_v5, %v7009_v51 }
 0x1dc   : > { %v5244_v45 = vpop.f32.mrf.mxu1  ;;  %v2908_v15 = vpop.f32.mrf.mxu0 }
 0x1dd   : > { %7527 = vst [vmem:[#allocation30_spill] sm:$0xff] %v7102_v55  ;;  %v7105_v12 = vadd.f32 %v2892_v24, %v2674_v39  ;;  %v2679_v9 = vadd.f32 %v5244_v45, %v7012_v13 }
 0x1de   : > { %v2634_v63 = vpop.f32.mrf.mxu1  ;;  %v7108_v3 = vpop.f32.mrf.mxu0 }
 0x1df   : > { %7528 = vst [vmem:[#allocation15_spill] sm:$0xff] %v7105_v12  ;;  %v7110_v59 = vadd.f32 %v5292_v8, %v2679_v9  ;;  %v2677_v1 = vadd.f32 %v2634_v63, %v7015_v16 }
 0x1e0   : > { %v5245_v20 = vpop.f32.mrf.mxu1  ;;  %v7113_v41 = vpop.f32.mrf.mxu0 }
 0x1e1   : > { %7529 = vst [vmem:[#allocation22_spill] sm:$0xff] %v7110_v59  ;;  %v7115_v14 = vadd.f32 %v2905_v46, %v2677_v1  ;;  %v2680_v51 = vadd.f32 %v5245_v20, %v7018_v25 }
 0x1e2   : > { %v2637_v62 = vpop.f32.mrf.mxu1  ;;  %v7118_v54 = vpop.f32.mrf.mxu0 }
 0x1e3   : > { %7530 = vst [vmem:[#allocation25_spill] sm:$0xff] %v7115_v14  ;;  %v7120_v32 = vadd.f32 %v5293_v58, %v2680_v51  ;;  %v2678_v13 = vadd.f32 %v2637_v62, %v7021_v43 }
 0x1e4   : > { %v5312_v56 = vpop.f32.mrf.mxu1  ;;  %v7123_v26 = vpop.f32.mrf.mxu0 }
 0x1e5   : > { %7531 = vst [vmem:[#allocation27_spill] sm:$0xff] %v7120_v32  ;;  %v7125_v19 = vadd.f32 %v2908_v15, %v2678_v13 }
 0x1e6   : > { %v3057_v16 = vpop.f32.mrf.mxu1  ;;  %v7127_v33 = vpop.f32.mrf.mxu0 }
 0x1e7   : > { %7532 = vst [vmem:[#allocation29_spill] sm:$0xff] %v7125_v19 }
 0x1e8   : > { %v7129_v60 = vpop.f32.mrf.mxu1  ;;  %v7131_v31 = vpop.f32.mrf.mxu0 }
 0x1ea   : > { %v7133_v25 = vpop.f32.mrf.mxu1  ;;  %v7135_v57 = vpop.f32.mrf.mxu0 }
 0x1ec   : > { %v7137_v24 = vpop.f32.mrf.mxu1  ;;  %v7139_v40 = vpop.f32.mrf.mxu0 }
 0x1ee   : > { %v7141_v43 = vpop.f32.mrf.mxu1  ;;  %v7143_v10 = vpop.f32.mrf.mxu0 }
 0x1f0   : > { %v7145_v8 = vpop.f32.mrf.mxu1  ;;  %v7147_v22 = vpop.f32.mrf.mxu0 }
 0x1f2   : > { %v7149_v35 = vpop.f32.mrf.mxu1  ;;  %v7151_v46 = vpop.f32.mrf.mxu0 }
 0x1f4   : > { %v7153_v27 = vpop.f32.mrf.mxu1  ;;  %v7155_v5 = vpop.f32.mrf.mxu0 }
 0x1f6   : > { %v7157_v58 = vpop.f32.mrf.mxu1  ;;  %v7159_v39 = vpop.f32.mrf.mxu0 }
 0x1f8   : > { %v7161_v45 = vpop.f32.mrf.mxu1  ;;  %v7163_v15 = vpop.f32.mrf.mxu0 }
 0x1fa   : > { %v7165_v9 = vpop.f32.mrf.mxu1  ;;  %v7167_v63 = vpop.f32.mrf.mxu0 }
 0x1fc   : > { %v7169_v1 = vpop.f32.mrf.mxu1  ;;  %v7171_v20 = vpop.f32.mrf.mxu0 }
 0x1fd   : > { %7533 = vst [vmem:[#allocation36_spill] sm:$0xff] %v7171_v20 }
 0x1fe   : > { %v7173_v51 = vpop.f32.mrf.mxu1  ;;  %v7175_v62 = vpop.f32.mrf.mxu0 }
 0x1ff   : > { %7534 = vst [vmem:[#allocation12_spill] sm:$0xff] %v7175_v62 }
 0x200   : > { %v7177_v13 = vpop.f32.mrf.mxu1  ;;  %v7179_v19 = vpop.f32.mrf.mxu0 }
 0x201   : > { %7535 = vst [vmem:[#allocation18_spill] sm:$0xff] %v7179_v19 }
 0x202   : > { %v7181_v32 = vpop.f32.mrf.mxu1  ;;  %v7183_v14 = vpop.f32.mrf.mxu0 }
 0x203   : > { %7536 = vst [vmem:[#allocation24_spill] sm:$0xff] %v7183_v14 }
 0x204   : > { %v7185_v59 = vpop.f32.mrf.mxu1  ;;  %v7187_v12 = vpop.f32.mrf.mxu0 }
 0x205   : > { %7537 = vst [vmem:[#allocation26_spill] sm:$0xff] %v7187_v12 }
 0x206   : > { %v7189_v55 = vpop.f32.mrf.mxu1  ;;  %v7191_v36 = vpop.f32.mrf.mxu0 }
 0x207   : > { %7538 = vst [vmem:[#allocation28_spill] sm:$0xff] %v7191_v36 }
 0x208   : > { %v7193_v50 = vpop.f32.mrf.mxu1  ;;  %v7195_v53 = vpop.f32.mrf.mxu0 }
 0x209   : > { %7539 = vst [vmem:[#allocation35_spill] sm:$0xff] %v7193_v50  ;;  %7540 = vst [vmem:[#allocation38_spill] sm:$0xff] %v7195_v53 }
 0x20a   : > { %v7197_v61 = vpop.f32.mrf.mxu1  ;;  %v7199_v44 = vpop.f32.mrf.mxu0 }
 0x20b   : > { %7541 = vst [vmem:[#allocation34_spill] sm:$0xff] %v7197_v61  ;;  %7542 = vst [vmem:[#allocation33_spill] sm:$0xff] %v7199_v44 }
 0x20c   : > { %v7201_v52 = vpop.f32.mrf.mxu1  ;;  %v7203_v37 = vpop.f32.mrf.mxu0 }
 0x20d   : > { %7543 = vst [vmem:[#allocation39_spill] sm:$0xff] %v7201_v52  ;;  %7544 = vst [vmem:[#allocation10_spill] sm:$0xff] %v7203_v37 }
 0x20e   : > { %v7205_v14 = vpop.f32.mrf.mxu1  ;;  %v7207_v19 = vpop.f32.mrf.mxu0 }
 0x20f   : > { %7545 = vst [vmem:[#allocation11_spill] sm:$0xff] %v7205_v14  ;;  %7546 = vst [vmem:[#allocation31_spill] sm:$0xff] %v7207_v19 }
 0x210   : > { %v7209_v12 = vpop.f32.mrf.mxu1  ;;  %v7211_v6 = vpop.f32.mrf.mxu0 }
 0x211   : > { %7547 = vst [vmem:[#allocation7_spill] sm:$0xff] %v7209_v12  ;;  %7548 = vst [vmem:[#allocation32_spill] sm:$0xff] %v7211_v6 }
 0x212   : > { %v7213_v36 = vpop.f32.mrf.mxu1  ;;  %v7215_v50 = vpop.f32.mrf.mxu0 }
 0x213   : > { %7549 = vst [vmem:[#allocation16_spill] sm:$0xff] %v7213_v36  ;;  %7550 = vst [vmem:[#allocation17_spill] sm:$0xff] %v7215_v50 }
 0x214   : > { %v7217_v53 = vpop.f32.mrf.mxu1  ;;  %v7219_v61 = vpop.f32.mrf.mxu0 }
 0x215   : > { %7551 = vst [vmem:[#allocation37_spill] sm:$0xff] %v7217_v53  ;;  %7552 = vst [vmem:[#allocation40_spill] sm:$0xff] %v7219_v61  ;;  %v3186_v61 = vadd.f32 %v5312_v56, %v7024_v28  ;;  %v3185_v28 = vadd.f32 %v7133_v25, %v7033_v47 }
 0x216   : > { %v7221_v44 = vpop.f32.mrf.mxu1  ;;  %v7223_v52 = vpop.f32.mrf.mxu0 }
 0x217   : > { %7553 = vst [vmem:[#allocation41_spill] sm:$0xff] %v7221_v44  ;;  %7554 = vst [vmem:[#allocation42_spill] sm:$0xff] %v7223_v52  ;;  %v3443_v20 = vadd.f32 %v7123_v26, %v3185_v28 }
 0x218   : > { %v7225_v37 = vpop.f32.mrf.mxu1  ;;  %v7227_v14 = vpop.f32.mrf.mxu0 }
 0x219   : > { %7555 = vst [vmem:[#allocation43_spill] sm:$0xff] %v7225_v37  ;;  %7556 = vst [vmem:[#allocation44_spill] sm:$0xff] %v7227_v14  ;;  %v3184_v37 = vadd.f32 %v3057_v16, %v7027_v42 }
 0x21a   : > { %v7229_v19 = vpop.f32.mrf.mxu1  ;;  %v7231_v12 = vpop.f32.mrf.mxu0 }
 0x21b   : > { %7557 = vst [vmem:[#allocation45_spill] sm:$0xff] %v7229_v19  ;;  %7558 = vst [vmem:[#allocation46_spill] sm:$0xff] %v7231_v12  ;;  %v3444_v19 = vadd.f32 %v7108_v3, %v3186_v61  ;;  %v3187_v12 = vadd.f32 %v7129_v60, %v7030_v2  ;;  %v3190_v61 = vadd.f32 %v7137_v24, %v7036_v38 }
 0x21c   : > { %v7233_v6 = vpop.f32.mrf.mxu1  ;;  %v7235_v36 = vpop.f32.mrf.mxu0 }
 0x21d   : > { %7559 = vst [vmem:[#allocation47_spill] sm:$0xff] %v7233_v6  ;;  %7560 = vst [vmem:[#allocation48_spill] sm:$0xff] %v7235_v36  ;;  %v3445_v16 = vadd.f32 %v7118_v54, %v3187_v12  ;;  %v3448_v12 = vadd.f32 %v7127_v33, %v3190_v61  ;;  %v3194_v33 = vadd.f32 %v7153_v27, %v7048_v21 }
 0x21e   : > { %v7237_v50 = vpop.f32.mrf.mxu1  ;;  %v5456_v53 = vpop.f32.mrf.mxu0  ;;  %v3192_v61 = vadd.f32 %v7157_v58, %v7051_v7 }
 0x21f   : > { %7561 = vst [vmem:[#allocation49_spill] sm:$0xff] %v7237_v50  ;;  %v3442_v50 = vadd.f32 %v7113_v41, %v3184_v37  ;;  %v3188_v37 = vadd.f32 %v7141_v43, %v7039_v18  ;;  %v3452_v27 = vadd.f32 %v7143_v10, %v3194_v33 }
 0x220   : > { %v7240_v44 = vpop.f32.mrf.mxu1  ;;  %v3850_v52 = vpop.f32.mrf.mxu0 }
 0x221   : > { %7562 = vst [vmem:[#allocation50_spill] sm:$0xff] %v7240_v44  ;;  %v3446_v18 = vadd.f32 %v7131_v31, %v3188_v37 }
 0x222   : > { %v7243_v62 = vpop.f32.mrf.mxu1  ;;  %v5457_v14 = vpop.f32.mrf.mxu0 }
 0x223   : > { %7563 = vst [vmem:[#allocation51_spill] sm:$0xff] %v7243_v62 }
 0x224   : > { %v5408_v36 = vpop.f32.mrf.mxu1  ;;  %v3853_v6 = vpop.f32.mrf.mxu0 }
 0x225   : > { %v3715_v56 = vadd.f32 %v5408_v36, %v3444_v19 }
 0x226   : > { %v3586_v44 = vpop.f32.mrf.mxu1  ;;  %v5460_v42 = vpop.f32.mrf.mxu0 }
 0x227   : > { %v3979_v3 = vadd.f32 %v5456_v53, %v3715_v56  ;;  %v3713_v62 = vadd.f32 %v3586_v44, %v3442_v50  ;;  %v3191_v44 = vadd.f32 %v7145_v8, %v7042_v30  ;;  %v3189_v50 = vadd.f32 %v7149_v35, %v7045_v11 }
 0x228   : > { %v5409_v2 = vpop.f32.mrf.mxu1  ;;  %v3866_v60 = vpop.f32.mrf.mxu0 }
 0x229   : > { %4011 = vst [vmem:[%s5695_s9 + $0x10] sm:$0xff] %v3979_v3  ;;  %v3977_v47 = vadd.f32 %v3850_v52, %v3713_v62  ;;  %v3716_v36 = vadd.f32 %v5409_v2, %v3445_v16  ;;  %v3449_v11 = vadd.f32 %v7135_v57, %v3191_v44  ;;  %v3447_v35 = vadd.f32 %v7139_v40, %v3189_v50 }
 0x22a   : > { %v3589_v41 = vpop.f32.mrf.mxu1  ;;  %v5461_v19 = vpop.f32.mrf.mxu0  ;;  %v4080_v28 = vmul.f32 %v3979_v3, %v3979_v3  ;;  %v3450_v44 = vadd.f32 %v7147_v22, %v3192_v61  ;;  %v3202_v61 = vadd.f32 %v7185_v59, %v7072_v0 }
 0x22b   : > { %4009 = vst [vmem:[%s5695_s9] sm:$0xff] %v3977_v47  ;;  %v3980_v38 = vadd.f32 %v5457_v14, %v3716_v36  ;;  %v3714_v53 = vadd.f32 %v3589_v41, %v3443_v20  ;;  %v4078_v24 = vmul.f32 %v3977_v47, %v3977_v47 }
 0x22c   : > { %v5412_v54 = vpop.f32.mrf.mxu1  ;;  %v3869_v26 = vpop.f32.mrf.mxu0 }
 0x22d   : > { %4012 = vst [vmem:[%s5695_s9 + $0x18] sm:$0xff] %v3980_v38  ;;  %v3978_v52 = vadd.f32 %v3853_v6, %v3714_v53  ;;  %v3719_v25 = vadd.f32 %v5412_v54, %v3448_v12  ;;  %v4081_v40 = vmul.f32 %v3980_v38, %v3980_v38 }
 0x22e   : > { %v3602_v14 = vpop.f32.mrf.mxu1  ;;  %v5464_v43 = vpop.f32.mrf.mxu0 }
 0x22f   : > { %4010 = vst [vmem:[%s5695_s9 + $0x8] sm:$0xff] %v3978_v52  ;;  %v4041_v20 = vadd.f32 %v3978_v52, %v3977_v47  ;;  %v4079_v30 = vmul.f32 %v3978_v52, %v3978_v52  ;;  %v3983_v8 = vadd.f32 %v5460_v42, %v3719_v25  ;;  %v3717_v62 = vadd.f32 %v3602_v14, %v3446_v18 }
 0x230   : > { %v5413_v31 = vpop.f32.mrf.mxu1  ;;  %v3882_v6 = vpop.f32.mrf.mxu0  ;;  %v3195_v42 = vadd.f32 %v7161_v45, %v7054_v17  ;;  %v3198_v25 = vadd.f32 %v7169_v1, %v7060_v49 }
 0x231   : > { %v4042_v56 = vadd.f32 %v4041_v20, %v3979_v3  ;;  %v4110_v16 = vadd.f32 %v4079_v30, %v4078_v24  ;;  %4015 = vst [vmem:[%s5695_s9 + $0x30] sm:$0xff] %v3983_v8  ;;  %v3981_v21 = vadd.f32 %v3866_v60, %v3717_v62  ;;  %v3720_v2 = vadd.f32 %v5413_v31, %v3449_v11 }
 0x232   : > { %v3605_v57 = vpop.f32.mrf.mxu1  ;;  %v5465_v37 = vpop.f32.mrf.mxu0  ;;  %v3193_v60 = vadd.f32 %v7165_v9, %v7057_v34  ;;  %v3453_v50 = vadd.f32 %v7151_v46, %v3195_v42  ;;  %v4084_v24 = vmul.f32 %v3983_v8, %v3983_v8  ;;  %v3456_v31 = vadd.f32 %v7159_v39, %v3198_v25 }
 0x233   : > { %v4111_v47 = vadd.f32 %v4110_v16, %v4080_v28  ;;  %4013 = vst [vmem:[%s5695_s9 + $0x20] sm:$0xff] %v3981_v21  ;;  %v4043_v36 = vadd.f32 %v4042_v56, %v3980_v38  ;;  %v3718_v3 = vadd.f32 %v3605_v57, %v3447_v35  ;;  %v4082_v10 = vmul.f32 %v3981_v21, %v3981_v21 }
 0x234   : > { %v3984_v41 = vadd.f32 %v5461_v19, %v3720_v2  ;;  %v5416_v12 = vpop.f32.mrf.mxu1  ;;  %v3885_v7 = vpop.f32.mrf.mxu0  ;;  %v3451_v19 = vadd.f32 %v7155_v5, %v3193_v60 }
 0x235   : > { %v4044_v58 = vadd.f32 %v4043_v36, %v3981_v21  ;;  %v4112_v53 = vadd.f32 %v4111_v47, %v4081_v40  ;;  %v3982_v17 = vadd.f32 %v3869_v26, %v3718_v3  ;;  %v3723_v45 = vadd.f32 %v5416_v12, %v3452_v27  ;;  %v7565_v12 = vld [vmem:[#allocation12_spill] sm:$0xff] }
 0x236   : > { %4016 = vst [vmem:[%s5695_s9 + $0x38] sm:$0xff] %v3984_v41  ;;  %v3618_v54 = vpop.f32.mrf.mxu1  ;;  %v5468_v38 = vpop.f32.mrf.mxu0  ;;  %v3196_v26 = vadd.f32 %v7173_v51, %v7063_v4  ;;  %v4085_v62 = vmul.f32 %v3984_v41, %v3984_v41  ;;  %v3197_v27 = vadd.f32 %v7181_v32, %v7069_v29  ;;  %v3200_v47 = vadd.f32 %v7189_v55, %v7075_v23 }
 0x237   : > { %v4113_v18 = vadd.f32 %v4112_v53, %v4082_v10  ;;  %4014 = vst [vmem:[%s5695_s9 + $0x28] sm:$0xff] %v3982_v17  ;;  %v4045_v52 = vadd.f32 %v4044_v58, %v3982_v17  ;;  %v4083_v34 = vmul.f32 %v3982_v17, %v3982_v17  ;;  %v3987_v9 = vadd.f32 %v5464_v43, %v3723_v45  ;;  %v7564_v10 = vld [vmem:[#allocation36_spill] sm:$0xff]  ;;  %v7566_v58 = vld [vmem:[#allocation21_spill] sm:$0xff]  ;;  %v7567_v53 = vld [vmem:[#allocation35_spill] sm:$0xff] }
 0x238   : > { %v3721_v22 = vadd.f32 %v3618_v54, %v3450_v44  ;;  %v5417_v33 = vpop.f32.mrf.mxu1  ;;  %v3898_v46 = vpop.f32.mrf.mxu0  ;;  %v3199_v43 = vadd.f32 %v7177_v13, %v7066_v48  ;;  %v3454_v28 = vadd.f32 %v7163_v15, %v3196_v26  ;;  %v3203_v17 = vadd.f32 %v7567_v53, %v7566_v58  ;;  %v7582_v58 = vld [vmem:[#allocation16_spill] sm:$0xff] }
 0x239   : > { %v4046_v14 = vadd.f32 %v4045_v52, %v3983_v8  ;;  %v4114_v20 = vadd.f32 %v4113_v18, %v4083_v34  ;;  %4019 = vst [vmem:[%s5695_s9 + $0x50] sm:$0xff] %v3987_v9  ;;  %v3724_v30 = vadd.f32 %v5417_v33, %v3453_v50  ;;  %v4088_v36 = vmul.f32 %v3987_v9, %v3987_v9  ;;  %v7569_v52 = vld [vmem:[#allocation23_spill] sm:$0xff]  ;;  %v7570_v34 = vld [vmem:[#allocation34_spill] sm:$0xff] }
 0x23a   : > { %v3985_v5 = vadd.f32 %v3882_v6, %v3721_v22  ;;  %v3621_v11 = vpop.f32.mrf.mxu1  ;;  %v5469_v49 = vpop.f32.mrf.mxu0  ;;  %v3457_v6 = vadd.f32 %v7167_v63, %v3199_v43 }
 0x23b   : > { %v4115_v1 = vadd.f32 %v4114_v20, %v4084_v24  ;;  %v4047_v35 = vadd.f32 %v4046_v14, %v3984_v41  ;;  %v3988_v4 = vadd.f32 %v5465_v37, %v3724_v30  ;;  %v3722_v51 = vadd.f32 %v3621_v11, %v3451_v19  ;;  %v7571_v14 = vld [vmem:[#allocation24_spill] sm:$0xff]  ;;  %v7573_v11 = vld [vmem:[#allocation39_spill] sm:$0xff] }
 0x23c   : > { %4017 = vst [vmem:[%s5695_s9 + $0x40] sm:$0xff] %v3985_v5  ;;  %v5420_v8 = vpop.f32.mrf.mxu1  ;;  %v3901_v56 = vpop.f32.mrf.mxu0  ;;  %v4086_v21 = vmul.f32 %v3985_v5, %v3985_v5  ;;  %v3455_v41 = vadd.f32 %v7564_v10, %v3197_v27  ;;  %v3461_v20 = vadd.f32 %v7571_v14, %v3203_v17 }
 0x23d   : > { %v4048_v16 = vadd.f32 %v4047_v35, %v3985_v5  ;;  %v4116_v48 = vadd.f32 %v4115_v1, %v4085_v62  ;;  %4020 = vst [vmem:[%s5695_s9 + $0x58] sm:$0xff] %v3988_v4  ;;  %v3986_v13 = vadd.f32 %v3885_v7, %v3722_v51  ;;  %v3727_v39 = vadd.f32 %v5420_v8, %v3456_v31  ;;  %v7572_v5 = vld [vmem:[#allocation8_spill] sm:$0xff] }
 0x23e   : > { %v3634_v42 = vpop.f32.mrf.mxu1  ;;  %v5472_v15 = vpop.f32.mrf.mxu0  ;;  %v3460_v7 = vadd.f32 %v7565_v12, %v3202_v61  ;;  %v4089_v55 = vmul.f32 %v3988_v4, %v3988_v4  ;;  %v7577_v61 = vld [vmem:[#allocation13_spill] sm:$0xff] }
 0x23f   : > { %v4117_v2 = vadd.f32 %v4116_v48, %v4086_v21  ;;  %4018 = vst [vmem:[%s5695_s9 + $0x48] sm:$0xff] %v3986_v13  ;;  %v4049_v57 = vadd.f32 %v4048_v16, %v3986_v13  ;;  %v4087_v37 = vmul.f32 %v3986_v13, %v3986_v13  ;;  %v3725_v40 = vadd.f32 %v3634_v42, %v3454_v28  ;;  %v7574_v16 = vld [vmem:[#allocation26_spill] sm:$0xff]  ;;  %v7575_v48 = vld [vmem:[#allocation9_spill] sm:$0xff]  ;;  %v7576_v13 = vld [vmem:[#allocation11_spill] sm:$0xff] }
 0x240   : > { %v3991_v63 = vadd.f32 %v5468_v38, %v3727_v39  ;;  %v5421_v3 = vpop.f32.mrf.mxu1  ;;  %v3914_v29 = vpop.f32.mrf.mxu0  ;;  %v7568_v38 = vld [vmem:[#allocation18_spill] sm:$0xff]  ;;  %v7578_v39 = vld [vmem:[#allocation7_spill] sm:$0xff] }
 0x241   : > { %v4050_v32 = vadd.f32 %v4049_v57, %v3987_v9  ;;  %v4118_v60 = vadd.f32 %v4117_v2, %v4087_v37  ;;  %v3989_v0 = vadd.f32 %v3898_v46, %v3725_v40  ;;  %v3728_v59 = vadd.f32 %v5421_v3, %v3457_v6 }
 0x242   : > { %4023 = vst [vmem:[%s5695_s9 + $0x70] sm:$0xff] %v3991_v63  ;;  %v3637_v45 = vpop.f32.mrf.mxu1  ;;  %v5473_v23 = vpop.f32.mrf.mxu0  ;;  %v3458_v18 = vadd.f32 %v7568_v38, %v3200_v47  ;;  %v3201_v9 = vadd.f32 %v7570_v34, %v7569_v52  ;;  %v3204_v6 = vadd.f32 %v7576_v13, %v7575_v48  ;;  %v3207_v42 = vadd.f32 %v7578_v39, %v7577_v61  ;;  %v7579_v47 = vld [vmem:[#allocation28_spill] sm:$0xff]  ;;  %v7584_v52 = vld [vmem:[#allocation19_spill] sm:$0xff] }
 0x243   : > { %v4119_v44 = vadd.f32 %v4118_v60, %v4088_v36  ;;  %4021 = vst [vmem:[%s5695_s9 + $0x60] sm:$0xff] %v3989_v0  ;;  %v4051_v50 = vadd.f32 %v4050_v32, %v3988_v4  ;;  %v3992_v54 = vadd.f32 %v5469_v49, %v3728_v59  ;;  %v3726_v19 = vadd.f32 %v3637_v45, %v3455_v41  ;;  %v7580_v41 = vld [vmem:[#allocation38_spill] sm:$0xff]  ;;  %v7583_v45 = vld [vmem:[#allocation33_spill] sm:$0xff] }
 0x244   : > { %v5424_v25 = vpop.f32.mrf.mxu1  ;;  %v3917_v26 = vpop.f32.mrf.mxu0  ;;  %v4090_v33 = vmul.f32 %v3989_v0, %v3989_v0  ;;  %v3206_v49 = vadd.f32 %v7573_v11, %v7572_v5  ;;  %v3459_v21 = vadd.f32 %v7574_v16, %v3201_v9  ;;  %v4092_v2 = vmul.f32 %v3991_v63, %v3991_v63 }
 0x245   : > { %v4052_v22 = vadd.f32 %v4051_v50, %v3989_v0  ;;  %v4120_v46 = vadd.f32 %v4119_v44, %v4089_v55  ;;  %4024 = vst [vmem:[%s5695_s9 + $0x78] sm:$0xff] %v3992_v54  ;;  %v3731_v24 = vadd.f32 %v5424_v25, %v3460_v7  ;;  %v3990_v30 = vadd.f32 %v3901_v56, %v3726_v19  ;;  %v7581_v7 = vld [vmem:[#allocation14_spill] sm:$0xff] }
 0x246   : > { %v3650_v43 = vpop.f32.mrf.mxu1  ;;  %v5476_v62 = vpop.f32.mrf.mxu0  ;;  %v3464_v36 = vadd.f32 %v7579_v47, %v3206_v49  ;;  %v4093_v60 = vmul.f32 %v3992_v54, %v3992_v54  ;;  %v3462_v12 = vadd.f32 %v7580_v41, %v3204_v6  ;;  %v3205_v53 = vadd.f32 %v7582_v58, %v7581_v7  ;;  %v7589_v49 = vld [vmem:[#allocation30_spill] sm:$0xff]  ;;  %v7597_v41 = vld [vmem:[#allocation47_spill] sm:$0xff] }
 0x247   : > { %v4121_v1 = vadd.f32 %v4120_v46, %v4090_v33  ;;  %v3995_v35 = vadd.f32 %v5472_v15, %v3731_v24  ;;  %v3729_v4 = vadd.f32 %v3650_v43, %v3458_v18  ;;  %4022 = vst [vmem:[%s5695_s9 + $0x68] sm:$0xff] %v3990_v30  ;;  %v4053_v51 = vadd.f32 %v4052_v22, %v3990_v30  ;;  %v7586_v24 = vld [vmem:[#allocation10_spill] sm:$0xff] }
 0x248   : > { %v4091_v31 = vmul.f32 %v3990_v30, %v3990_v30  ;;  %v5425_v28 = vpop.f32.mrf.mxu1  ;;  %v3930_v8 = vpop.f32.mrf.mxu0  ;;  %v3465_v55 = vadd.f32 %v7583_v45, %v3207_v42  ;;  %v3463_v14 = vadd.f32 %v7586_v24, %v3205_v53  ;;  %v7588_v30 = vld [vmem:[#allocation41_spill] sm:$0xff]  ;;  %v7592_v42 = vld [vmem:[#allocation32_spill] sm:$0xff] }
 0x249   : > { %4027 = vst [vmem:[%s5695_s9 + $0x90] sm:$0xff] %v3995_v35  ;;  %v3993_v56 = vadd.f32 %v3914_v29, %v3729_v4  ;;  %v3732_v27 = vadd.f32 %v5425_v28, %v3461_v20  ;;  %v4054_v15 = vadd.f32 %v4053_v51, %v3991_v63  ;;  %v7587_v20 = vld [vmem:[#allocation20_spill] sm:$0xff]  ;;  %v4096_v51 = vmul.f32 %v3995_v35, %v3995_v35 }
 0x24a   : > { %v4122_v57 = vadd.f32 %v4121_v1, %v4091_v31  ;;  %v3653_v37 = vpop.f32.mrf.mxu1  ;;  %v5477_v40 = vpop.f32.mrf.mxu0  ;;  %v3208_v43 = vadd.f32 %v7588_v30, %v7587_v20  ;;  %v7590_v1 = vld [vmem:[#allocation43_spill] sm:$0xff]  ;;  %v7598_v45 = vld [vmem:[#allocation40_spill] sm:$0xff] }
 0x24b   : > { %4025 = vst [vmem:[%s5695_s9 + $0x80] sm:$0xff] %v3993_v56  ;;  %v3996_v3 = vadd.f32 %v5473_v23, %v3732_v27  ;;  %v3730_v32 = vadd.f32 %v3653_v37, %v3459_v21  ;;  %v4055_v59 = vadd.f32 %v4054_v15, %v3992_v54  ;;  %v4094_v23 = vmul.f32 %v3993_v56, %v3993_v56  ;;  %v7585_v54 = vld [vmem:[#allocation37_spill] sm:$0xff]  ;;  %v7591_v21 = vld [vmem:[#allocation31_spill] sm:$0xff] }
 0x24c   : > { %v4123_v0 = vadd.f32 %v4122_v57, %v4092_v2  ;;  %v5428_v29 = vpop.f32.mrf.mxu1  ;;  %v3933_v10 = vpop.f32.mrf.mxu0  ;;  %v3210_v34 = vadd.f32 %v7585_v54, %v7584_v52  ;;  %v3211_v4 = vadd.f32 %v7590_v1, %v7589_v49  ;;  %v3466_v2 = vadd.f32 %v7592_v42, %v3208_v43  ;;  %v7593_v15 = vld [vmem:[#allocation15_spill] sm:$0xff]  ;;  %v7594_v57 = vld [vmem:[#allocation45_spill] sm:$0xff]  ;;  %v7604_v49 = vld [vmem:[#allocation44_spill] sm:$0xff] }
 0x24d   : > { %4028 = vst [vmem:[%s5695_s9 + $0x98] sm:$0xff] %v3996_v3  ;;  %v3994_v63 = vadd.f32 %v3917_v26, %v3730_v32  ;;  %v3735_v17 = vadd.f32 %v5428_v29, %v3464_v36  ;;  %v4056_v44 = vadd.f32 %v4055_v59, %v3993_v56  ;;  %v4097_v56 = vmul.f32 %v3996_v3, %v3996_v3  ;;  %v7595_v36 = vld [vmem:[#allocation17_spill] sm:$0xff]  ;;  %v7596_v29 = vld [vmem:[#allocation22_spill] sm:$0xff] }
 0x24e   : > { %v4124_v50 = vadd.f32 %v4123_v0, %v4093_v60  ;;  %v3666_v38 = vpop.f32.mrf.mxu1  ;;  %v5480_v18 = vpop.f32.mrf.mxu0  ;;  %v3468_v48 = vadd.f32 %v7591_v21, %v3210_v34  ;;  %v3209_v37 = vadd.f32 %v7594_v57, %v7593_v15  ;;  %v3469_v32 = vadd.f32 %v7595_v36, %v3211_v4  ;;  %v7605_v4 = vld [vmem:[#allocation29_spill] sm:$0xff]  ;;  %v7608_v57 = vld [vmem:[#allocation48_spill] sm:$0xff] }
 0x24f   : > { %4026 = vst [vmem:[%s5695_s9 + $0x88] sm:$0xff] %v3994_v63  ;;  %v4095_v9 = vmul.f32 %v3994_v63, %v3994_v63  ;;  %v3999_v19 = vadd.f32 %v5476_v62, %v3735_v17  ;;  %v3733_v25 = vadd.f32 %v3666_v38, %v3462_v12  ;;  %v4057_v33 = vadd.f32 %v4056_v44, %v3994_v63  ;;  %v7599_v44 = vld [vmem:[#allocation25_spill] sm:$0xff] }
 0x250   : > { %v4125_v22 = vadd.f32 %v4124_v50, %v4094_v23  ;;  %v5429_v26 = vpop.f32.mrf.mxu1  ;;  %v3946_v46 = vpop.f32.mrf.mxu0  ;;  %v7600_v23 = vld [vmem:[#allocation49_spill] sm:$0xff] }
 0x251   : > { %4031 = vst [vmem:[%s5695_s9 + $0xb0] sm:$0xff] %v3999_v19  ;;  %v3997_v5 = vadd.f32 %v3930_v8, %v3733_v25  ;;  %v3736_v11 = vadd.f32 %v5429_v26, %v3465_v55  ;;  %v4058_v62 = vadd.f32 %v4057_v33, %v3995_v35  ;;  %v3467_v55 = vadd.f32 %v7598_v45, %v3209_v37  ;;  %v7602_v33 = vld [vmem:[#allocation27_spill] sm:$0xff]  ;;  %v7603_v26 = vld [vmem:[#allocation50_spill] sm:$0xff] }
 0x252   : > { %v4126_v31 = vadd.f32 %v4125_v22, %v4095_v9  ;;  %v3669_v28 = vpop.f32.mrf.mxu1  ;;  %v5481_v16 = vpop.f32.mrf.mxu0  ;;  %v3212_v50 = vadd.f32 %v7600_v23, %v7599_v44  ;;  %v4100_v54 = vmul.f32 %v3999_v19, %v3999_v19  ;;  %v3215_v24 = vadd.f32 %v7603_v26, %v7602_v33 }
 0x253   : > { %4029 = vst [vmem:[%s5695_s9 + $0xa0] sm:$0xff] %v3997_v5  ;;  %v4000_v13 = vadd.f32 %v5477_v40, %v3736_v11  ;;  %v3734_v6 = vadd.f32 %v3669_v28, %v3463_v14  ;;  %v4059_v61 = vadd.f32 %v4058_v62, %v3996_v3  ;;  %v4098_v40 = vmul.f32 %v3997_v5, %v3997_v5 }
 0x254   : > { %v4127_v27 = vadd.f32 %v4126_v31, %v4096_v51  ;;  %v5432_v8 = vpop.f32.mrf.mxu1  ;;  %v3949_v39 = vpop.f32.mrf.mxu0  ;;  %v3214_v3 = vadd.f32 %v7597_v41, %v7596_v29  ;;  %v3470_v1 = vadd.f32 %v7604_v49, %v3212_v50 }
 0x255   : > { %4032 = vst [vmem:[%s5695_s9 + $0xb8] sm:$0xff] %v4000_v13  ;;  %v3998_v35 = vadd.f32 %v3933_v10, %v3734_v6  ;;  %v3739_v47 = vadd.f32 %v5432_v8, %v3468_v48  ;;  %v4060_v60 = vadd.f32 %v4059_v61, %v3997_v5  ;;  %v4101_v30 = vmul.f32 %v4000_v13, %v4000_v13  ;;  %v7607_v6 = vld [vmem:[#allocation46_spill] sm:$0xff] }
 0x256   : > { %v4128_v0 = vadd.f32 %v4127_v27, %v4097_v56  ;;  %v3682_v59 = vpop.f32.mrf.mxu1  ;;  %v5484_v10 = vpop.f32.mrf.mxu0  ;;  %v3473_v56 = vadd.f32 %v7607_v6, %v3215_v24 }
 0x257   : > { %4030 = vst [vmem:[%s5695_s9 + $0xa8] sm:$0xff] %v3998_v35  ;;  %v4099_v12 = vmul.f32 %v3998_v35, %v3998_v35  ;;  %v4003_v7 = vadd.f32 %v5480_v18, %v3739_v47  ;;  %v3737_v58 = vadd.f32 %v3682_v59, %v3466_v2  ;;  %v4061_v63 = vadd.f32 %v4060_v60, %v3998_v35  ;;  %v7601_v18 = vld [vmem:[#allocation42_spill] sm:$0xff] }
 0x258   : > { %v4129_v53 = vadd.f32 %v4128_v0, %v4098_v40  ;;  %v5433_v17 = vpop.f32.mrf.mxu1  ;;  %v3472_v22 = vadd.f32 %v7601_v18, %v3214_v3 }
 0x259   : > { %4035 = vst [vmem:[%s5695_s9 + $0xd0] sm:$0xff] %v4003_v7  ;;  %v4001_v38 = vadd.f32 %v3946_v46, %v3737_v58  ;;  %v3740_v52 = vadd.f32 %v5433_v17, %v3469_v32  ;;  %v4062_v34 = vadd.f32 %v4061_v63, %v3999_v19  ;;  %v3962_v46 = vpop.f32.mrf.mxu0  ;;  %v7606_v19 = vld [vmem:[#allocation51_spill] sm:$0xff]  ;;  %v4104_v47 = vmul.f32 %v4003_v7, %v4003_v7 }
 0x25a   : > { %v4130_v9 = vadd.f32 %v4129_v53, %v4099_v12  ;;  %v3685_v25 = vpop.f32.mrf.mxu1  ;;  %v3213_v51 = vadd.f32 %v7606_v19, %v7605_v4 }
 0x25b   : > { %4033 = vst [vmem:[%s5695_s9 + $0xc0] sm:$0xff] %v4001_v38  ;;  %v4004_v14 = vadd.f32 %v5481_v16, %v3740_v52  ;;  %v3738_v20 = vadd.f32 %v3685_v25, %v3467_v55  ;;  %v4063_v5 = vadd.f32 %v4062_v34, %v4000_v13  ;;  %v4102_v21 = vmul.f32 %v4001_v38, %v4001_v38  ;;  %v5485_v15 = vpop.f32.mrf.mxu0 }
 0x25c   : > { %v4131_v43 = vadd.f32 %v4130_v9, %v4100_v54  ;;  %v5436_v11 = vpop.f32.mrf.mxu1 }
 0x25d   : > { %4036 = vst [vmem:[%s5695_s9 + $0xd8] sm:$0xff] %v4004_v14  ;;  %v4002_v62 = vadd.f32 %v3949_v39, %v3738_v20  ;;  %v3743_v31 = vadd.f32 %v5436_v11, %v3472_v22  ;;  %v4064_v28 = vadd.f32 %v4063_v5, %v4001_v38  ;;  %v3471_v39 = vadd.f32 %v7608_v57, %v3213_v51  ;;  %v3965_v3 = vpop.f32.mrf.mxu0 }
 0x25e   : > { %v4132_v48 = vadd.f32 %v4131_v43, %v4101_v30  ;;  %v3698_v16 = vpop.f32.mrf.mxu1  ;;  %v4105_v59 = vmul.f32 %v4004_v14, %v4004_v14 }
 0x25f   : > { %4034 = vst [vmem:[%s5695_s9 + $0xc8] sm:$0xff] %v4002_v62  ;;  %v4103_v13 = vmul.f32 %v4002_v62, %v4002_v62  ;;  %v4007_v27 = vadd.f32 %v5484_v10, %v3743_v31  ;;  %v3741_v61 = vadd.f32 %v3698_v16, %v3470_v1  ;;  %v4065_v42 = vadd.f32 %v4064_v28, %v4002_v62 }
 0x260   : > { %v4133_v8 = vadd.f32 %v4132_v48, %v4102_v21  ;;  %v5437_v2 = vpop.f32.mrf.mxu1 }
 0x261   : > { %4039 = vst [vmem:[%s5695_s9 + $0xf0] sm:$0xff] %v4007_v27  ;;  %v4005_v37 = vadd.f32 %v3962_v46, %v3741_v61  ;;  %v3744_v35 = vadd.f32 %v5437_v2, %v3473_v56  ;;  %v4066_v36 = vadd.f32 %v4065_v42, %v4003_v7  ;;  %v4108_v55 = vmul.f32 %v4007_v27, %v4007_v27 }
 0x262   : > { %v4134_v32 = vadd.f32 %v4133_v8, %v4103_v13  ;;  %v3701_v60 = vpop.f32.mrf.mxu1 }
 0x263   : > { %4037 = vst [vmem:[%s5695_s9 + $0xe0] sm:$0xff] %v4005_v37  ;;  %v4008_v40 = vadd.f32 %v5485_v15, %v3744_v35  ;;  %v3742_v0 = vadd.f32 %v3701_v60, %v3471_v39  ;;  %v4067_v41 = vadd.f32 %v4066_v36, %v4004_v14  ;;  %v4106_v53 = vmul.f32 %v4005_v37, %v4005_v37 }
 0x264   : > { %v4135_v29 = vadd.f32 %v4134_v32, %v4104_v47 }
 0x265   : > { %4040 = vst [vmem:[%s5695_s9 + $0xf8] sm:$0xff] %v4008_v40  ;;  %v4006_v12 = vadd.f32 %v3965_v3, %v3742_v0  ;;  %v4068_v58 = vadd.f32 %v4067_v41, %v4005_v37  ;;  %v4109_v23 = vmul.f32 %v4008_v40, %v4008_v40 }
 0x266   : > { %v4136_v63 = vadd.f32 %v4135_v29, %v4105_v59 }
 0x267   : > { %4038 = vst [vmem:[%s5695_s9 + $0xe8] sm:$0xff] %v4006_v12  ;;  %v4107_v17 = vmul.f32 %v4006_v12, %v4006_v12  ;;  %v4069_v45 = vadd.f32 %v4068_v58, %v4006_v12 }
 0x268   : > { %v4137_v10 = vadd.f32 %v4136_v63, %v4106_v53 }
 0x269   : > { %v4070_v7 = vadd.f32 %v4069_v45, %v4007_v27 }
 0x26a   : > { %v4138_v44 = vadd.f32 %v4137_v10, %v4107_v17 }
 0x26b   : > { %v4071_v50 = vadd.f32 %v4070_v7, %v4008_v40 }
 0x26c   : > { %v4139_v38 = vadd.f32 %v4138_v44, %v4108_v55 }
 0x26d   : > { %v4072_v52 = vrot.slane %v4071_v50, 4 }
 0x26e   : > { %v4140_v54 = vadd.f32 %v4139_v38, %v4109_v23 }
 0x26f   : > { %v4073_v34 = vadd.f32 %v4072_v52, %v4071_v50 }
 0x270   : > { %v4141_v9 = vrot.slane %v4140_v54, 4 }
 0x271   : > { %v4074_v25 = vrot.slane %v4073_v34, 2 }
 0x272   : > { %v4142_v18 = vadd.f32 %v4141_v9, %v4140_v54 }
 0x273   : > { %v4075_v22 = vadd.f32 %v4074_v25, %v4073_v34 }
 0x274   : > { %v4143_v33 = vrot.slane %v4142_v18, 2 }
 0x275   : > { %v4076_v26 = vrot.slane %v4075_v22, 1 }
 0x276   : > { %v4144_v24 = vadd.f32 %v4143_v33, %v4142_v18 }
 0x277   : > { %v4077_v20 = vadd.f32 %v4076_v26, %v4075_v22 }
 0x278   : > { %v4145_v14 = vrot.slane %v4144_v24, 1 }
 0x27a   : > { %v4146_v30 = vadd.f32 %v4145_v14, %v4144_v24 }
 0x27c   : > { %v4148_v43 = vsel %vm4147_vm0, %v4077_v20, %v4146_v30 }
 0x27d   : > { %4149 = vst [vmem:[%s5700_s12] sm:$0x3] %v4148_v43 }
 0x27e PF: > { %s17_s23 = sadd.s32 1, %s5628_s23   ;;  %s7609_s21 = smov %s5624_s22 }
 0x27f   : > { %p14_p5 = scmp.ge.s32.totalorder %s17_s23, 4   ;;  %s7610_s22 = smov %s7612_s24 }
 0x281   :  { %16 = sbr.rel (!%p14_p5) target bundleno = 2 (0x2), region = 200 }
 0x286   :  { %4202 = vsyncmov [#allocation3] }
 0x289   :  { %s4203_s9 = vpop.sfrf %4202 }
 0x28a   :  { %p4835_p6 = scmp.ne.s32.totalorder %s4203_s9, 0 }
 0x28c   :  { %4207 = shalt.err (%p4835_p6)  }
 0x28d   :  { %4209 = vsyncmov [#allocation3 + $0x1] }
 0x290   :  { %s4210_s17 = vpop.sfrf %4209 }
 0x291   :  { %p4836_p7 = scmp.ne.s32.totalorder %s4210_s17, 0 }
 0x293   :  { %4214 = shalt.err (%p4836_p7)  }

</bundles_post_ra>
